<compile_context>
chip_gen: v7x
topology: tpu7x:2x2x1
jax: 0.10.0
libtpu: 0.0.40
codegen_flags: <defaults>
</compile_context>

<pallas_src>
import math

import jax
import jax.numpy as jnp
from jax.experimental import pallas as pl
from jax.experimental.pallas import tpu as pltpu

FEAT = 512        # feat_size in the reference
STATE = 256       # GCN state_size in the reference
NUM_LAYERS = 3
EPS = 1e-5        # BatchNorm eps


def _bn_train(v):
    # BatchNorm1d, training-mode stats over all (batch, node) rows per channel,
    # gamma=1, beta=0, biased variance (matches torch normalization).
    mean = jnp.mean(v, axis=0, keepdims=True)
    var = jnp.mean(jnp.square(v - mean), axis=0, keepdims=True)
    return (v - mean) * jax.lax.rsqrt(var + EPS)


# -----------------------------------------------------------------------------
# Fused kernel: grid=(L,) over layers; attention prologue at l==0; carry in VMEM.
# -----------------------------------------------------------------------------
def _fused_gcn_kernel(enc_ref, wc_ref, adjf_ref, adjb_ref,
                      wcond_ref, bcond_ref, wfwbw_ref,
                      woutc_ref, woutm_ref,
                      out_ref, x_ref):
    l = pl.program_id(0)
    B, HW, F = enc_ref.shape
    N = wc_ref.shape[0]              # num_classes + 1 (attention weight padded with mean row)
    BN = x_ref.shape[0]              # B * N
    S = wcond_ref.shape[-1]

    # ---- layer-0 prologue: ClsAttention + global mean -> node feats in the VMEM carry ----
    @pl.when(l == 0)
    def _prologue():
        wc = wc_ref[...]                                       # (N, F) bf16; row 0 is all-zero
        for b in range(B):                                     # B is small & static
            fb = enc_ref[b]                                    # (HW, F) bf16
            logits = jax.lax.dot_general(
                fb, wc, (((1,), (1,)), ((), ())),
                preferred_element_type=jnp.float32)            # (HW, N)
            m = jnp.max(logits, axis=0, keepdims=True)
            e = jnp.exp(logits - m)                            # softmax over HW, f32
            att = e * pl.reciprocal(jnp.sum(e, axis=0, keepdims=True), approx=True)
            node = jax.lax.dot_general(
                att.astype(fb.dtype), fb, (((0,), (0,)), ((), ())),
                preferred_element_type=jnp.float32)            # (N, F); row 0 == mean(feats)
            x_ref[pl.ds(b * N, N), :] = node

    # ---- one GraphConvolutionLayer on the carried activation ----
    x = x_ref[...]                                             # (BN, F) f32 residual/carry
    xb = x.astype(jnp.bfloat16)

    # condense: Conv1d(F, S, 1) + BN + relu, batch folded into M
    cond = jnp.dot(xb, wcond_ref[0], preferred_element_type=jnp.float32) + bcond_ref[0]
    cond = jnp.maximum(_bn_train(cond), 0.0)                   # (BN, S)

    # per-batch fw/bw supports with a fused (F, 2S) weight, stacked over batch rows
    sup = jnp.concatenate(
        [jnp.dot(xb[b * N:(b + 1) * N], wfwbw_ref[0, b],
                 preferred_element_type=jnp.float32) for b in range(B)],
        axis=0)                                                # (BN, 2S): cols = [fw | bw]

    # shared adjacency applied to all batches at once via block-diagonal kron(I_B, A)
    m_fw = jnp.dot(adjf_ref[...], sup, preferred_element_type=jnp.float32)
    m_bw = jnp.dot(adjb_ref[...], sup, preferred_element_type=jnp.float32)
    col = jax.lax.broadcasted_iota(jnp.int32, sup.shape, 1)
    msg = jnp.maximum(jnp.where(col < S, m_fw, m_bw), 0.0)     # relu([fw_msg | bw_msg])
    # gcn biases are identically zero in the reference -> dropped (no DMA / add)

    # conv1d(3S -> F, bias=False) as two accumulated matmuls (no (BN, 3S) concat)
    y = (jnp.dot(cond.astype(jnp.bfloat16), woutc_ref[0],
                 preferred_element_type=jnp.float32)
         + jnp.dot(msg.astype(jnp.bfloat16), woutm_ref[0],
                   preferred_element_type=jnp.float32))        # (BN, F)
    x_new = jnp.maximum(_bn_train(y) + x, 0.0)                 # relu(BN(conv) + residual)
    x_ref[...] = x_new

    @pl.when(l == pl.num_programs(0) - 1)
    def _epilogue():
        out_ref[...] = x_new


# -----------------------------------------------------------------------------
# Wrapper: builds block-diag adjacency, cost estimate, and the single pallas_call.
# -----------------------------------------------------------------------------
@jax.jit
def gcn_feature_extractor(encoder_feats, params, fw_A, bw_A):
    B, HW, F = encoder_feats.shape
    N = fw_A.shape[0]
    L, _, S = params["w_cond"].shape
    BN = B * N

    eye = jnp.eye(B, dtype=jnp.float32)
    adj_fw_big = jnp.kron(eye, fw_A.astype(jnp.float32))       # (BN, BN) block-diagonal
    adj_bw_big = jnp.kron(eye, bw_A.astype(jnp.float32))
    enc = encoder_feats.astype(jnp.bfloat16)

    mm_flops = 2 * L * (BN * F * S                 # condense
                        + B * N * F * 2 * S        # per-batch [fw|bw] supports
                        + 2 * BN * BN * 2 * S      # block-diag adjacency (fw + bw)
                        + BN * S * F               # w_out (condensed slice)
                        + BN * 2 * S * F)          # w_out (fw/bw slice)
    att_flops = 4 * B * HW * N * F
    weight_bytes = 2 * L * (F * S + B * F * 2 * S + 3 * S * F) + 4 * L * S
    io_bytes = enc.size * 2 + N * F * 2 + 2 * BN * BN * 4 + BN * F * 4
    cost = pl.CostEstimate(flops=mm_flops + att_flops,
                           transcendentals=B * HW * N + 2 * L * (S + F),
                           bytes_accessed=weight_bytes + io_bytes)

    # TODO(synk): v7x dual-TensorCore split (core_map + cross-core BN reduction) not
    # implemented; at these shapes the kernel is weight-DMA bound on a single core.
    out = pl.pallas_call(
        _fused_gcn_kernel,
        out_shape=jax.ShapeDtypeStruct((BN, F), jnp.float32),
        grid_spec=pltpu.PrefetchScalarGridSpec(
            num_scalar_prefetch=0,
            grid=(L,),
            in_specs=[
                pl.BlockSpec((B, HW, F), lambda l: (0, 0, 0)),          # encoder feats
                pl.BlockSpec((N, F), lambda l: (0, 0)),                 # padded attention W
                pl.BlockSpec((BN, BN), lambda l: (0, 0)),               # block-diag fw adj
                pl.BlockSpec((BN, BN), lambda l: (0, 0)),               # block-diag bw adj
                pl.BlockSpec((1, F, S), lambda l: (l, 0, 0)),           # condense W (per layer)
                pl.BlockSpec((1, 1, S), lambda l: (l, 0, 0)),           # condense bias
                pl.BlockSpec((1, B, F, 2 * S), lambda l: (l, 0, 0, 0)),  # [W_fw | W_bw]
                pl.BlockSpec((1, S, F), lambda l: (l, 0, 0)),           # W_out[:S]
                pl.BlockSpec((1, 2 * S, F), lambda l: (l, 0, 0)),       # W_out[S:]
            ],
            out_specs=pl.BlockSpec((BN, F), lambda l: (0, 0)),
            scratch_shapes=[pltpu.VMEM((BN, F), jnp.float32)]),         # activation carry
        compiler_params=pltpu.CompilerParams(
            dimension_semantics=("arbitrary",)),
        cost_estimate=cost,
    )(enc, params["wc_att"], adj_fw_big, adj_bw_big,
      params["w_cond"], params["b_cond"], params["w_fwbw"],
      params["w_out_cond"], params["w_out_msg"])
    return out.reshape(B, N, F)


# -----------------------------------------------------------------------------
# Glue (plain JAX): adjacency normalization and parameter init
# -----------------------------------------------------------------------------
def normalize_adj(adj):
    # D^{-1/2} A D^{-1/2} with inf -> 0 (as in the reference __init__)
    d = adj.sum(axis=1)
    inv_sqrt = jnp.where(d > 0, 1.0 / jnp.sqrt(d), 0.0)
    return inv_sqrt[:, None] * adj * inv_sqrt[None, :]


def init_params(key, batch_size, num_classes):
    """Deterministic stand-ins for the reference inits (see header notes)."""
    F, S, L = FEAT, STATE, NUM_LAYERS
    keys = iter(jax.random.split(key, 8 * L + 4))

    def nrm(shape, scale):
        return scale * jax.random.normal(next(keys), shape, jnp.float32)

    def uni(shape, bound):
        return jax.random.uniform(next(keys), shape, jnp.float32, -bound, bound)

    # xavier_normal_(gain=0.02) on a (B, F, S) tensor: std = 0.02*sqrt(2/(F*S + B*S))
    xav = 0.02 * math.sqrt(2.0 / (F * S + batch_size * S))

    # ClsAttention weight padded with a leading all-zero row: its softmax over HW is
    # uniform, so its pooled feature equals the global mean (node 0 for free).
    wc = nrm((num_classes, F), 1.0 / math.sqrt(F))
    wc_pad = jnp.concatenate([jnp.zeros((1, F), jnp.float32), wc], axis=0)

    w_cond, b_cond, w_fwbw, w_out_c, w_out_m = [], [], [], [], []
    for _ in range(L):
        w_cond.append(nrm((F, S), 1.0 / math.sqrt(F)))
        b_cond.append(uni((1, S), 1.0 / math.sqrt(F)))           # Conv1d default bias init
        wf = nrm((batch_size, F, S), xav)
        wb = nrm((batch_size, F, S), xav)
        w_fwbw.append(jnp.concatenate([wf, wb], axis=-1))        # (B, F, 2S)
        wo = nrm((3 * S, F), 1.0 / math.sqrt(3 * S))             # conv1d(3S->F, bias=False)
        w_out_c.append(wo[:S])                                   # condensed-message slice
        w_out_m.append(wo[S:])                                   # [fw | bw] slice
    # TODO(synk): fc2 (Linear(512, num_classes)), test_conv and nn.Dropout(0.5) exist in
    # the reference __init__ but are never used in its forward -> not materialized.
    return {
        "wc_att": wc_pad.astype(jnp.bfloat16),                   # (N, F)
        "w_cond": jnp.stack(w_cond).astype(jnp.bfloat16),        # (L, F, S)
        "b_cond": jnp.stack(b_cond),                             # (L, 1, S) f32
        "w_fwbw": jnp.stack(w_fwbw).astype(jnp.bfloat16),        # (L, B, F, 2S)
        "w_out_cond": jnp.stack(w_out_c).astype(jnp.bfloat16),   # (L, S, F)
        "w_out_msg": jnp.stack(w_out_m).astype(jnp.bfloat16),    # (L, 2S, F)
    }


if __name__ == "__main__":
    key = jax.random.PRNGKey(0)
    B, HW, C = 2, 16, 7
    N = C + 1

    k1, k2, k3 = jax.random.split(key, 3)
    encoder_feats = jax.random.normal(k1, (B, HW, FEAT), jnp.float32)
    fw_adj = (jax.random.uniform(k2, (N, N)) > 0.5).astype(jnp.float32)
    bw_adj = fw_adj.T
    fw_A = normalize_adj(fw_adj)
    bw_A = normalize_adj(bw_adj)

    params = init_params(k3, B, C)

    out = gcn_feature_extractor(encoder_feats, params, fw_A, bw_A)
    out = jax.block_until_ready(out)

    assert out.shape == (B, N, FEAT), out.shape
    assert bool(jnp.all(jnp.isfinite(out)))
    print("KERNEL_OK")
</pallas_src>

<mosaic_0001>
module attributes {stable_mosaic.version = 11 : i64} {
  func.func @_fused_gcn_kernel(%arg0: i32, %arg1: memref<2x16x512xbf16, #tpu.memory_space<vmem>>, %arg2: memref<8x512xbf16, #tpu.memory_space<vmem>>, %arg3: memref<16x16xf32, #tpu.memory_space<vmem>>, %arg4: memref<16x16xf32, #tpu.memory_space<vmem>>, %arg5: memref<1x512x256xbf16, #tpu.memory_space<vmem>>, %arg6: memref<1x1x256xf32, #tpu.memory_space<vmem>>, %arg7: memref<1x2x512x512xbf16, #tpu.memory_space<vmem>>, %arg8: memref<1x256x512xbf16, #tpu.memory_space<vmem>>, %arg9: memref<1x512x512xbf16, #tpu.memory_space<vmem>>, %arg10: memref<16x512xf32, #tpu.memory_space<vmem>>, %arg11: memref<16x512xf32, #tpu.memory_space<vmem>>) attributes {dimension_semantics = [#tpu.dimension_semantics<arbitrary>], iteration_bounds = array<i64: 3>, scalar_prefetch = 0 : i64, scratch_operands = 1 : i64, tpu.core_type = #tpu.core_type<tc>, window_params = [{pipeline_mode = #tpu.pipeline_mode<synchronous>, transform_indices = @transform_0, window_bounds = array<i64: 2, 16, 512>}, {pipeline_mode = #tpu.pipeline_mode<synchronous>, transform_indices = @transform_1, window_bounds = array<i64: 8, 512>}, {pipeline_mode = #tpu.pipeline_mode<synchronous>, transform_indices = @transform_2, window_bounds = array<i64: 16, 16>}, {pipeline_mode = #tpu.pipeline_mode<synchronous>, transform_indices = @transform_3, window_bounds = array<i64: 16, 16>}, {transform_indices = @transform_4, window_bounds = array<i64: 1, 512, 256>}, {transform_indices = @transform_5, window_bounds = array<i64: 1, 1, 256>}, {transform_indices = @transform_6, window_bounds = array<i64: 1, 2, 512, 512>}, {transform_indices = @transform_7, window_bounds = array<i64: 1, 256, 512>}, {transform_indices = @transform_8, window_bounds = array<i64: 1, 512, 512>}, {pipeline_mode = #tpu.pipeline_mode<synchronous>, transform_indices = @transform_9, window_bounds = array<i64: 16, 512>}]} {
    %c0_i32 = arith.constant 0 : i32
    %0 = arith.cmpi eq, %arg0, %c0_i32 : i32
    %1 = arith.extui %0 : i1 to i32
    %c0_i32_0 = arith.constant 0 : i32
    %2 = arith.cmpi ne, %1, %c0_i32_0 : i32
    scf.if %2 {
      %c0_47 = arith.constant 0 : index
      %c0_48 = arith.constant 0 : index
      %85 = vector.load %arg2[%c0_47, %c0_48] : memref<8x512xbf16, #tpu.memory_space<vmem>>, vector<8x512xbf16>
      %c0_49 = arith.constant 0 : index
      %c0_50 = arith.constant 0 : index
      %c0_51 = arith.constant 0 : index
      %86 = vector.load %arg1[%c0_49, %c0_50, %c0_51] : memref<2x16x512xbf16, #tpu.memory_space<vmem>>, vector<1x16x512xbf16>
      %87 = vector.shape_cast %86 : vector<1x16x512xbf16> to vector<16x512xbf16>
      %cst_52 = arith.constant dense<0.000000e+00> : vector<16x8xf32>
      %88 = tpu.matmul %87, %85, %cst_52 {dimension_numbers = #tpu.dot_dimension_numbers<[1], [1], [0], [0], [0, 0, 1, 0], [], []>} : vector<16x512xbf16>, vector<8x512xbf16>, vector<16x8xf32> -> vector<16x8xf32>
      %cst_53 = arith.constant dense<0xFF800000> : vector<8xf32>
      %89 = vector.multi_reduction <maximumf>, %88, %cst_53 [0] : vector<16x8xf32> to vector<8xf32>
      %90 = vector.shape_cast %89 : vector<8xf32> to vector<1x8xf32>
      %91 = vector.broadcast %90 : vector<1x8xf32> to vector<16x8xf32>
      %92 = arith.subf %88, %91 : vector<16x8xf32>
      %93 = math.exp %92 : vector<16x8xf32>
      %cst_54 = arith.constant dense<0.000000e+00> : vector<8xf32>
      %94 = vector.multi_reduction <add>, %93, %cst_54 [0] : vector<16x8xf32> to vector<8xf32>
      %95 = vector.shape_cast %94 : vector<8xf32> to vector<1x8xf32>
      %96 = tpu.reciprocal %95 {approx = true} : vector<1x8xf32> -> vector<1x8xf32>
      %97 = vector.broadcast %96 : vector<1x8xf32> to vector<16x8xf32>
      %98 = arith.mulf %93, %97 : vector<16x8xf32>
      %99 = arith.truncf %98 : vector<16x8xf32> to vector<16x8xbf16>
      %cst_55 = arith.constant dense<0.000000e+00> : vector<8x512xf32>
      %100 = tpu.matmul %99, %87, %cst_55 {dimension_numbers = #tpu.dot_dimension_numbers<[0], [0], [1], [1], [0, 1, 1, 1], [], []>} : vector<16x8xbf16>, vector<16x512xbf16>, vector<8x512xf32> -> vector<8x512xf32>
      %c0_56 = arith.constant 0 : index
      %c0_57 = arith.constant 0 : index
      %101 = vector.load %arg11[%c0_56, %c0_57] : memref<16x512xf32, #tpu.memory_space<vmem>>, vector<8x512xf32>
      tpu.vector_store %arg11[%c0_56, %c0_57], %100 {strides = array<i32>} : memref<16x512xf32, #tpu.memory_space<vmem>>, vector<8x512xf32>,
      %c1_58 = arith.constant 1 : index
      %c0_59 = arith.constant 0 : index
      %c0_60 = arith.constant 0 : index
      %102 = vector.load %arg1[%c1_58, %c0_59, %c0_60] : memref<2x16x512xbf16, #tpu.memory_space<vmem>>, vector<1x16x512xbf16>
      %103 = vector.shape_cast %102 : vector<1x16x512xbf16> to vector<16x512xbf16>
      %cst_61 = arith.constant dense<0.000000e+00> : vector<16x8xf32>
      %104 = tpu.matmul %103, %85, %cst_61 {dimension_numbers = #tpu.dot_dimension_numbers<[1], [1], [0], [0], [0, 0, 1, 0], [], []>} : vector<16x512xbf16>, vector<8x512xbf16>, vector<16x8xf32> -> vector<16x8xf32>
      %cst_62 = arith.constant dense<0xFF800000> : vector<8xf32>
      %105 = vector.multi_reduction <maximumf>, %104, %cst_62 [0] : vector<16x8xf32> to vector<8xf32>
      %106 = vector.shape_cast %105 : vector<8xf32> to vector<1x8xf32>
      %107 = vector.broadcast %106 : vector<1x8xf32> to vector<16x8xf32>
      %108 = arith.subf %104, %107 : vector<16x8xf32>
      %109 = math.exp %108 : vector<16x8xf32>
      %cst_63 = arith.constant dense<0.000000e+00> : vector<8xf32>
      %110 = vector.multi_reduction <add>, %109, %cst_63 [0] : vector<16x8xf32> to vector<8xf32>
      %111 = vector.shape_cast %110 : vector<8xf32> to vector<1x8xf32>
      %112 = tpu.reciprocal %111 {approx = true} : vector<1x8xf32> -> vector<1x8xf32>
      %113 = vector.broadcast %112 : vector<1x8xf32> to vector<16x8xf32>
      %114 = arith.mulf %109, %113 : vector<16x8xf32>
      %115 = arith.truncf %114 : vector<16x8xf32> to vector<16x8xbf16>
      %cst_64 = arith.constant dense<0.000000e+00> : vector<8x512xf32>
      %116 = tpu.matmul %115, %103, %cst_64 {dimension_numbers = #tpu.dot_dimension_numbers<[0], [0], [1], [1], [0, 1, 1, 1], [], []>} : vector<16x8xbf16>, vector<16x512xbf16>, vector<8x512xf32> -> vector<8x512xf32>
      %c8 = arith.constant 8 : index
      %c0_65 = arith.constant 0 : index
      %117 = vector.load %arg11[%c8, %c0_65] : memref<16x512xf32, #tpu.memory_space<vmem>>, vector<8x512xf32>
      tpu.vector_store %arg11[%c8, %c0_65], %116 {strides = array<i32>} : memref<16x512xf32, #tpu.memory_space<vmem>>, vector<8x512xf32>,
    } else {
    }
    %c0 = arith.constant 0 : index
    %c0_1 = arith.constant 0 : index
    %3 = vector.load %arg11[%c0, %c0_1] : memref<16x512xf32, #tpu.memory_space<vmem>>, vector<16x512xf32>
    %4 = arith.truncf %3 : vector<16x512xf32> to vector<16x512xbf16>
    %c0_2 = arith.constant 0 : index
    %c0_3 = arith.constant 0 : index
    %c0_4 = arith.constant 0 : index
    %5 = vector.load %arg5[%c0_2, %c0_3, %c0_4] : memref<1x512x256xbf16, #tpu.memory_space<vmem>>, vector<1x512x256xbf16>
    %6 = vector.shape_cast %5 : vector<1x512x256xbf16> to vector<512x256xbf16>
    %cst = arith.constant dense<0.000000e+00> : vector<16x256xf32>
    %7 = tpu.matmul %4, %6, %cst {dimension_numbers = #tpu.dot_dimension_numbers<[1], [0], [0], [1], [0, 0, 1, 1], [], []>} : vector<16x512xbf16>, vector<512x256xbf16>, vector<16x256xf32> -> vector<16x256xf32>
    %c0_5 = arith.constant 0 : index
    %c0_6 = arith.constant 0 : index
    %c0_7 = arith.constant 0 : index
    %8 = vector.load %arg6[%c0_5, %c0_6, %c0_7] : memref<1x1x256xf32, #tpu.memory_space<vmem>>, vector<1x1x256xf32>
    %9 = vector.shape_cast %8 : vector<1x1x256xf32> to vector<1x256xf32>
    %10 = vector.broadcast %9 : vector<1x256xf32> to vector<16x256xf32>
    %11 = arith.addf %7, %10 : vector<16x256xf32>
    %cst_8 = arith.constant dense<0.000000e+00> : vector<256xf32>
    %12 = vector.multi_reduction <add>, %11, %cst_8 [0] : vector<16x256xf32> to vector<256xf32>
    %13 = vector.shape_cast %12 : vector<256xf32> to vector<1x256xf32>
    %cst_9 = arith.constant 1.600000e+01 : f32
    %14 = vector.broadcast %cst_9 : f32 to vector<1x256xf32>
    %15 = arith.divf %13, %14 : vector<1x256xf32>
    %16 = vector.broadcast %15 : vector<1x256xf32> to vector<16x256xf32>
    %17 = arith.subf %11, %16 : vector<16x256xf32>
    %18 = arith.mulf %17, %17 : vector<16x256xf32>
    %cst_10 = arith.constant dense<0.000000e+00> : vector<256xf32>
    %19 = vector.multi_reduction <add>, %18, %cst_10 [0] : vector<16x256xf32> to vector<256xf32>
    %20 = vector.shape_cast %19 : vector<256xf32> to vector<1x256xf32>
    %cst_11 = arith.constant 1.600000e+01 : f32
    %21 = vector.broadcast %cst_11 : f32 to vector<1x256xf32>
    %22 = arith.divf %20, %21 : vector<1x256xf32>
    %23 = vector.broadcast %15 : vector<1x256xf32> to vector<16x256xf32>
    %24 = arith.subf %11, %23 : vector<16x256xf32>
    %cst_12 = arith.constant 9.99999974E-6 : f32
    %25 = vector.broadcast %cst_12 : f32 to vector<1x256xf32>
    %26 = arith.addf %22, %25 : vector<1x256xf32>
    %27 = math.rsqrt %26 : vector<1x256xf32>
    %28 = vector.broadcast %27 : vector<1x256xf32> to vector<16x256xf32>
    %29 = arith.mulf %24, %28 : vector<16x256xf32>
    %cst_13 = arith.constant 0.000000e+00 : f32
    %30 = vector.broadcast %cst_13 : f32 to vector<16x256xf32>
    %31 = arith.maximumf %29, %30 : vector<16x256xf32>
    %32 = vector.extract_strided_slice %4 {offsets = [0, 0], sizes = [8, 512], strides = [1, 1]} : vector<16x512xbf16> to vector<8x512xbf16>
    %c0_14 = arith.constant 0 : index
    %c0_15 = arith.constant 0 : index
    %c0_16 = arith.constant 0 : index
    %c0_17 = arith.constant 0 : index
    %33 = vector.load %arg7[%c0_14, %c0_15, %c0_16, %c0_17] : memref<1x2x512x512xbf16, #tpu.memory_space<vmem>>, vector<1x1x512x512xbf16>
    %34 = vector.shape_cast %33 : vector<1x1x512x512xbf16> to vector<512x512xbf16>
    %cst_18 = arith.constant dense<0.000000e+00> : vector<8x512xf32>
    %35 = tpu.matmul %32, %34, %cst_18 {dimension_numbers = #tpu.dot_dimension_numbers<[1], [0], [0], [1], [0, 0, 1, 1], [], []>} : vector<8x512xbf16>, vector<512x512xbf16>, vector<8x512xf32> -> vector<8x512xf32>
    %36 = vector.extract_strided_slice %4 {offsets = [8, 0], sizes = [8, 512], strides = [1, 1]} : vector<16x512xbf16> to vector<8x512xbf16>
    %c0_19 = arith.constant 0 : index
    %c1 = arith.constant 1 : index
    %c0_20 = arith.constant 0 : index
    %c0_21 = arith.constant 0 : index
    %37 = vector.load %arg7[%c0_19, %c1, %c0_20, %c0_21] : memref<1x2x512x512xbf16, #tpu.memory_space<vmem>>, vector<1x1x512x512xbf16>
    %38 = vector.shape_cast %37 : vector<1x1x512x512xbf16> to vector<512x512xbf16>
    %cst_22 = arith.constant dense<0.000000e+00> : vector<8x512xf32>
    %39 = tpu.matmul %36, %38, %cst_22 {dimension_numbers = #tpu.dot_dimension_numbers<[1], [0], [0], [1], [0, 0, 1, 1], [], []>} : vector<8x512xbf16>, vector<512x512xbf16>, vector<8x512xf32> -> vector<8x512xf32>
    %40 = tpu.concatenate %35, %39 in 0 : vector<8x512xf32>, vector<8x512xf32> -> vector<16x512xf32>
    %c0_23 = arith.constant 0 : index
    %c0_24 = arith.constant 0 : index
    %41 = vector.load %arg3[%c0_23, %c0_24] : memref<16x16xf32, #tpu.memory_space<vmem>>, vector<16x16xf32>
    %cst_25 = arith.constant dense<0.000000e+00> : vector<16x512xf32>
    %42 = tpu.matmul %41, %40, %cst_25 {dimension_numbers = #tpu.dot_dimension_numbers<[1], [0], [0], [1], [0, 0, 1, 1], [], []>} : vector<16x16xf32>, vector<16x512xf32>, vector<16x512xf32> -> vector<16x512xf32>
    %c0_26 = arith.constant 0 : index
    %c0_27 = arith.constant 0 : index
    %43 = vector.load %arg4[%c0_26, %c0_27] : memref<16x16xf32, #tpu.memory_space<vmem>>, vector<16x16xf32>
    %cst_28 = arith.constant dense<0.000000e+00> : vector<16x512xf32>
    %44 = tpu.matmul %43, %40, %cst_28 {dimension_numbers = #tpu.dot_dimension_numbers<[1], [0], [0], [1], [0, 0, 1, 1], [], []>} : vector<16x16xf32>, vector<16x512xf32>, vector<16x512xf32> -> vector<16x512xf32>
    %45 = tpu.iota {dimensions = array<i32: 1>} : vector<16x512xi32>
    %c256_i32 = arith.constant 256 : i32
    %46 = vector.broadcast %c256_i32 : i32 to vector<16x512xi32>
    %47 = arith.cmpi slt, %45, %46 : vector<16x512xi32>
    %48 = arith.select %47, %42, %44 : vector<16x512xi1>, vector<16x512xf32>
    %cst_29 = arith.constant 0.000000e+00 : f32
    %49 = vector.broadcast %cst_29 : f32 to vector<16x512xf32>
    %50 = arith.maximumf %48, %49 : vector<16x512xf32>
    %51 = arith.truncf %31 : vector<16x256xf32> to vector<16x256xbf16>
    %c0_30 = arith.constant 0 : index
    %c0_31 = arith.constant 0 : index
    %c0_32 = arith.constant 0 : index
    %52 = vector.load %arg8[%c0_30, %c0_31, %c0_32] : memref<1x256x512xbf16, #tpu.memory_space<vmem>>, vector<1x256x512xbf16>
    %53 = vector.shape_cast %52 : vector<1x256x512xbf16> to vector<256x512xbf16>
    %cst_33 = arith.constant dense<0.000000e+00> : vector<16x512xf32>
    %54 = tpu.matmul %51, %53, %cst_33 {dimension_numbers = #tpu.dot_dimension_numbers<[1], [0], [0], [1], [0, 0, 1, 1], [], []>} : vector<16x256xbf16>, vector<256x512xbf16>, vector<16x512xf32> -> vector<16x512xf32>
    %55 = arith.truncf %50 : vector<16x512xf32> to vector<16x512xbf16>
    %c0_34 = arith.constant 0 : index
    %c0_35 = arith.constant 0 : index
    %c0_36 = arith.constant 0 : index
    %56 = vector.load %arg9[%c0_34, %c0_35, %c0_36] : memref<1x512x512xbf16, #tpu.memory_space<vmem>>, vector<1x512x512xbf16>
    %57 = vector.shape_cast %56 : vector<1x512x512xbf16> to vector<512x512xbf16>
    %cst_37 = arith.constant dense<0.000000e+00> : vector<16x512xf32>
    %58 = tpu.matmul %55, %57, %cst_37 {dimension_numbers = #tpu.dot_dimension_numbers<[1], [0], [0], [1], [0, 0, 1, 1], [], []>} : vector<16x512xbf16>, vector<512x512xbf16>, vector<16x512xf32> -> vector<16x512xf32>
    %59 = arith.addf %54, %58 : vector<16x512xf32>
    %cst_38 = arith.constant dense<0.000000e+00> : vector<512xf32>
    %60 = vector.multi_reduction <add>, %59, %cst_38 [0] : vector<16x512xf32> to vector<512xf32>
    %61 = vector.shape_cast %60 : vector<512xf32> to vector<1x512xf32>
    %cst_39 = arith.constant 1.600000e+01 : f32
    %62 = vector.broadcast %cst_39 : f32 to vector<1x512xf32>
    %63 = arith.divf %61, %62 : vector<1x512xf32>
    %64 = vector.broadcast %63 : vector<1x512xf32> to vector<16x512xf32>
    %65 = arith.subf %59, %64 : vector<16x512xf32>
    %66 = arith.mulf %65, %65 : vector<16x512xf32>
    %cst_40 = arith.constant dense<0.000000e+00> : vector<512xf32>
    %67 = vector.multi_reduction <add>, %66, %cst_40 [0] : vector<16x512xf32> to vector<512xf32>
    %68 = vector.shape_cast %67 : vector<512xf32> to vector<1x512xf32>
    %cst_41 = arith.constant 1.600000e+01 : f32
    %69 = vector.broadcast %cst_41 : f32 to vector<1x512xf32>
    %70 = arith.divf %68, %69 : vector<1x512xf32>
    %71 = vector.broadcast %63 : vector<1x512xf32> to vector<16x512xf32>
    %72 = arith.subf %59, %71 : vector<16x512xf32>
    %cst_42 = arith.constant 9.99999974E-6 : f32
    %73 = vector.broadcast %cst_42 : f32 to vector<1x512xf32>
    %74 = arith.addf %70, %73 : vector<1x512xf32>
    %75 = math.rsqrt %74 : vector<1x512xf32>
    %76 = vector.broadcast %75 : vector<1x512xf32> to vector<16x512xf32>
    %77 = arith.mulf %72, %76 : vector<16x512xf32>
    %78 = arith.addf %77, %3 : vector<16x512xf32>
    %cst_43 = arith.constant 0.000000e+00 : f32
    %79 = vector.broadcast %cst_43 : f32 to vector<16x512xf32>
    %80 = arith.maximumf %78, %79 : vector<16x512xf32>
    %c0_44 = arith.constant 0 : index
    %c0_45 = arith.constant 0 : index
    %81 = vector.load %arg11[%c0_44, %c0_45] : memref<16x512xf32, #tpu.memory_space<vmem>>, vector<16x512xf32>
    tpu.vector_store %arg11[%c0_44, %c0_45], %80 {strides = array<i32>} : memref<16x512xf32, #tpu.memory_space<vmem>>, vector<16x512xf32>,
    %c2_i32 = arith.constant 2 : i32
    %82 = arith.cmpi eq, %arg0, %c2_i32 : i32
    %83 = arith.extui %82 : i1 to i32
    %c0_i32_46 = arith.constant 0 : i32
    %84 = arith.cmpi ne, %83, %c0_i32_46 : i32
    scf.if %84 {
      %c0_47 = arith.constant 0 : index
      %c0_48 = arith.constant 0 : index
      %85 = vector.load %arg10[%c0_47, %c0_48] : memref<16x512xf32, #tpu.memory_space<vmem>>, vector<16x512xf32>
      tpu.vector_store %arg10[%c0_47, %c0_48], %80 {strides = array<i32>} : memref<16x512xf32, #tpu.memory_space<vmem>>, vector<16x512xf32>,
    } else {
    }
    return
  }
  func.func @transform_0(%arg0: i32) -> (i32, i32, i32) {
    %c0_i32 = arith.constant 0 : i32
    %c0_i32_0 = arith.constant 0 : i32
    %c0_i32_1 = arith.constant 0 : i32
    %c0_i32_2 = arith.constant 0 : i32
    return %c0_i32, %c0_i32_0, %c0_i32_1 : i32, i32, i32
  }
  func.func @transform_1(%arg0: i32) -> (i32, i32) {
    %c0_i32 = arith.constant 0 : i32
    %c0_i32_0 = arith.constant 0 : i32
    %c0_i32_1 = arith.constant 0 : i32
    return %c0_i32, %c0_i32_0 : i32, i32
  }
  func.func @transform_2(%arg0: i32) -> (i32, i32) {
    %c0_i32 = arith.constant 0 : i32
    %c0_i32_0 = arith.constant 0 : i32
    %c0_i32_1 = arith.constant 0 : i32
    return %c0_i32, %c0_i32_0 : i32, i32
  }
  func.func @transform_3(%arg0: i32) -> (i32, i32) {
    %c0_i32 = arith.constant 0 : i32
    %c0_i32_0 = arith.constant 0 : i32
    %c0_i32_1 = arith.constant 0 : i32
    return %c0_i32, %c0_i32_0 : i32, i32
  }
  func.func @transform_4(%arg0: i32) -> (i32, i32, i32) {
    %c0_i32 = arith.constant 0 : i32
    %c0_i32_0 = arith.constant 0 : i32
    %c0_i32_1 = arith.constant 0 : i32
    return %arg0, %c0_i32, %c0_i32_0 : i32, i32, i32
  }
  func.func @transform_5(%arg0: i32) -> (i32, i32, i32) {
    %c0_i32 = arith.constant 0 : i32
    %c0_i32_0 = arith.constant 0 : i32
    %c0_i32_1 = arith.constant 0 : i32
    return %arg0, %c0_i32, %c0_i32_0 : i32, i32, i32
  }
  func.func @transform_6(%arg0: i32) -> (i32, i32, i32, i32) {
    %c0_i32 = arith.constant 0 : i32
    %c0_i32_0 = arith.constant 0 : i32
    %c0_i32_1 = arith.constant 0 : i32
    %c0_i32_2 = arith.constant 0 : i32
    return %arg0, %c0_i32, %c0_i32_0, %c0_i32_1 : i32, i32, i32, i32
  }
  func.func @transform_7(%arg0: i32) -> (i32, i32, i32) {
    %c0_i32 = arith.constant 0 : i32
    %c0_i32_0 = arith.constant 0 : i32
    %c0_i32_1 = arith.constant 0 : i32
    return %arg0, %c0_i32, %c0_i32_0 : i32, i32, i32
  }
  func.func @transform_8(%arg0: i32) -> (i32, i32, i32) {
    %c0_i32 = arith.constant 0 : i32
    %c0_i32_0 = arith.constant 0 : i32
    %c0_i32_1 = arith.constant 0 : i32
    return %arg0, %c0_i32, %c0_i32_0 : i32, i32, i32
  }
  func.func @transform_9(%arg0: i32) -> (i32, i32) {
    %c0_i32 = arith.constant 0 : i32
    %c0_i32_0 = arith.constant 0 : i32
    %c0_i32_1 = arith.constant 0 : i32
    return %c0_i32, %c0_i32_0 : i32, i32
  }
}

</mosaic_0001>

<bundles_post_ra>
// kernel: gcn_feature_extractor.1
= control target key start
LH: loop header
LB: loop body
LE: loop exit
PB: predicated region body
PF: predicated region fallthrough
CT: control target
= control target key end

     0   :  { %s8480_s0 = inlined_call_operand.vmem [shape: bf16[2,16,512], index: 0, kind: input, shape index: {}]   ;;  %s8481_s1 = inlined_call_operand.hbm [shape: bf16[8,512], index: 1, kind: input, shape index: {}]   ;;  %s8482_s2 = inlined_call_operand.vmem [shape: f32[16,16], index: 2, kind: input, shape index: {}]   ;;  %s8483_s3 = inlined_call_operand.vmem [shape: f32[16,16], index: 3, kind: input, shape index: {}]   ;;  %s8484_s4 = inlined_call_operand.hbm [shape: bf16[3,512,256], index: 4, kind: input, shape index: {}]   ;;  %s8485_s5 = inlined_call_operand.hbm [shape: f32[3,1,256], index: 5, kind: input, shape index: {}]   ;;  %s8486_s6 = inlined_call_operand.hbm [shape: bf16[3,2,512,512], index: 6, kind: input, shape index: {}]   ;;  %s8487_s7 = inlined_call_operand.hbm [shape: bf16[3,256,512], index: 7, kind: input, shape index: {}]   ;;  %s8488_s8 = inlined_call_operand.hbm [shape: bf16[3,512,512], index: 8, kind: input, shape index: {}]   ;;  %s8489_s9 = inlined_call_operand.hbm [shape: f32[16,512], index: 9, kind: output, shape index: {}]  }
   0x1   :  { %8508 = sst [smem:[#allocation23_spill]] %s8482_s2 }
   0x2   :  { %8509 = sst [smem:[#allocation24_spill]] %s8483_s3 }
   0x3   :  { %8510 = sst [smem:[#allocation25_spill]] %s8484_s4 }
   0x4   :  { %8511 = sst [smem:[#allocation26_spill]] %s8486_s6 }
   0x5   :  { %8512 = sst [smem:[#allocation27_spill]] %s8489_s9 }
   0x6   :  { %14 = vsyncpa [#allocation4], 0 }
   0x7   :  { %15 = vsyncpa [#allocation7], 0 }
   0x8   :  { %17 = vsyncpa [#allocation7 + $0x1], 0 }
   0x9   :  { %18 = vsyncpa [#allocation10], 0 }
   0xa   :  { %20 = vsyncpa [#allocation10 + $0x1], 0 }
   0xb   :  { %21 = vsyncpa [#allocation13], 0 }
   0xc   :  { %23 = vsyncpa [#allocation13 + $0x1], 0 }
   0xd   :  { %24 = vsyncpa [#allocation5], 0  ;;  %s7476_s30 = smov 0   ;;  %s7478_s10 = smov 0  }
   0xe   :  { %s7480_s11 = smov 0   ;;  %s7482_s12 = smov 0  }
   0xf LB: > { %8513 = sst [smem:[#allocation20_spill]] %s7405_s11  ;;  %s7497_s13 = sadd.s32 1, %s7409_s12   ;;  %s7409_s12 = sphi %s7482_s12, %s8537_s12   ;;  %s7405_s11 = sphi %s7480_s11, %s8539_s11   ;;  %s7401_s10 = sphi %s7478_s10, %s8541_s10   ;;  %s7397_s30 = sphi %s7476_s30, %s8540_s30  }
  0x10   : > { %8514 = sst [smem:[#allocation21_spill]] %s7497_s13  ;;  %s121_s14 = sadd.s32 1, %s7405_s11 }
  0x11   : > { %s118_s15 = ssub.s32 %s7409_s12, %s7497_s13  ;;  %p128_p0 = scmp.ne.s32.totalorder %s7405_s11, %s7401_s10 }
  0x12   : > { %p119_p1 = scmp.eq.s32.totalorder %s118_s15, 0  ;;  %p129_p2 = scmp.eq.s32.totalorder %s7409_s12, 0 }
  0x13   : > { %p6293_p3 = scmp.lt.s32.totalorder %s7409_s12, 3  ;;  %s8490_s17 = sand.u32 1, %s7409_s12  }
  0x14   : > { %s7507_s16 = scalar_select %p119_p1, %s7405_s11, %s121_s14  }
  0x15   : > { %p130_p4 = por %p129_p2, %p128_p0  ;;  %s7511_s18 = sand.u32 1, %s7405_s11  }
  0x16   : > { %8515 = sst [smem:[#allocation22_spill]] %s7507_s16  ;;  %s5489_s19 = sshll.u32 %s7511_s18, 9 }
  0x17   : > { %s6185_s20 = sshll.u32 %s7409_s12, 13  ;;  %s8516_s4 = sld [smem:[#allocation25_spill]] }
  0x18   : > { %s307_s24 = scalar_lea.vmem [#allocation6], %s5489_s19  ;;  %p7524_p5 = pnand %p6293_p3, %p130_p4 }
  0x19   : > { %s314_s25 = sshll.u32 %s307_s24, 4  ;;  %s7532_s27 = scalar_lea.sflag [#allocation7], %s8490_s17  ;;  %s7528_s25 = int_to_ptr.vmem [resolvable:$true] %s314_s25 }
  0x1a   : > { %s8517_s26 = scalar_select %p7524_p5, 1, 0 }
  0x1b   : > { %p7538_p7 = pneg %p7524_p5 }
  0x1d   : > { %s7520_s23 = scalar_lea.hbm %s8516_s4, %s6185_s20  ;;  %s7160_s21 = scalar_lea.hbm %s8516_s4, 24576 }
  0x1e   : > { %s7155_s28 = scalar_lea.hbm %s7520_s23, 8192  ;;  %p7161_p10 = scmp.lt.u32.totalorder %s7520_s23, %s8516_s4 }
  0x1f   : > { %p7156_p6 = scmp.ne.s32.totalorder %s7520_s23, %s7155_s28  ;;  %p7162_p11 = scmp.lt.u32.totalorder %s7160_s21, %s7155_s28 }
  0x20   : > { %s8518_s29 = scalar_select %p7538_p7, 1, 0 }
  0x21   : > { %p7158_p8 = pnand %p7538_p7, %p7156_p6  ;;  %p7163_p12 = por %p7162_p11, %p7161_p10 }
  0x22   : > { %p7164_p13 = scmp.lt.u32.totalorder %s7155_s28, %s7520_s23 }
  0x23   : > { %p7159_p9 = pneg %p7158_p8 }
  0x24   : > { %p7165_p0 = por %p7164_p13, %p7163_p12 }
  0x26   : > { %p7166_p1 = pnand %p7165_p0, %p7159_p9 }
  0x28   : > { %7169 = shalt.err (!%p7166_p1)
}
  0x29   : > { %s7170_s17 = scalar_lea.vmem %s7528_s25, 8192  ;;  %s7411_s14 = smov [#allocation6]  }
  0x2a   : > { %p7171_p2 = scmp.ne.s32.totalorder %s7528_s25, %s7170_s17  ;;  %s7175_s15 = sshll.u32 %s7411_s14, 4  ;;  %s7176_s15 = int_to_ptr.vmem [resolvable:$false] %s7175_s15 }
  0x2b   : > { %s7177_s22 = scalar_lea.vmem %s7176_s15, 16384  ;;  %p7178_p6 = scmp.lt.s32.totalorder %s7528_s25, %s7176_s15 }
  0x2c   : > { %p7173_p3 = pnand %p7171_p2, %p7538_p7  ;;  %p7179_p8 = scmp.lt.s32.totalorder %s7177_s22, %s7170_s17 }
  0x2e   : > { %p7174_p4 = pneg %p7173_p3  ;;  %p7180_p10 = por %p7179_p8, %p7178_p6 }
  0x30   : > { %p7181_p11 = pnand %p7180_p10, %p7174_p4 }
  0x32   : > { %7184 = shalt.err (!%p7181_p11)
}
  0x33   : > { %s7412_s28 = smov 128   ;;  %s7413_s21 = smov 8  }
  0x34   : > { %6279 = dma.hbm_to_vmem [thread:$0]  (!%p7524_p5), %s7520_s23, 8192, %s7528_s25, %s7532_s27, %s7412_s28, %s7412_s28, %s7413_s21  }
  0x35   : > { %s7567_s14 = scalar_lea.hbm %s8487_s7, %s6185_s20  ;;  %s368_s15 = scalar_lea.vmem [#allocation11], %s5489_s19 }
  0x36   : > { %s375_s22 = sshll.u32 %s368_s15, 4  ;;  %s5495_s4 = sshll.u32 %s7511_s18, 11  ;;  %s7571_s22 = int_to_ptr.vmem [resolvable:$true] %s375_s22 }
  0x37   : > { %s6187_s16 = sshll.u32 %s7409_s12, 15  ;;  %s8519_s6 = sld [smem:[#allocation26_spill]] }
  0x38   : > { %s347_s23 = scalar_lea.vmem [#allocation9], %s5495_s4  ;;  %s8520_s20 = sand.u32 1, %s7409_s12  }
  0x39   : > { %s354_s25 = sshll.u32 %s347_s23, 4  ;;  %s7584_s19 = scalar_lea.sflag [#allocation10], %s8520_s20  ;;  %s7580_s25 = int_to_ptr.vmem [resolvable:$true] %s354_s25 }
  0x3d   : > { %s7578_s9 = scalar_lea.hbm %s8519_s6, %s6187_s16  ;;  %s7190_s13 = scalar_lea.hbm %s8519_s6, 98304 }
  0x3e   : > { %s7185_s28 = scalar_lea.hbm %s7578_s9, 32768  ;;  %p7191_p0 = scmp.lt.u32.totalorder %s7578_s9, %s8519_s6 }
  0x3f   : > { %p7186_p9 = scmp.ne.s32.totalorder %s7578_s9, %s7185_s28  ;;  %p7192_p1 = scmp.lt.u32.totalorder %s7190_s13, %s7185_s28 }
  0x40   : > { %p7194_p3 = scmp.lt.u32.totalorder %s7185_s28, %s7578_s9 }
  0x41   : > { %p7188_p12 = pnand %p7186_p9, %p7538_p7  ;;  %p7193_p2 = por %p7192_p1, %p7191_p0 }
  0x43   : > { %p7189_p13 = pneg %p7188_p12  ;;  %p7195_p4 = por %p7194_p3, %p7193_p2 }
  0x45   : > { %p7196_p6 = pnand %p7195_p4, %p7189_p13 }
  0x47   : > { %7199 = shalt.err (!%p7196_p6)
}
  0x48   : > { %s7200_s4 = scalar_lea.vmem %s7580_s25, 32768  ;;  %s7414_s17 = smov [#allocation9]  }
  0x49   : > { %p7201_p8 = scmp.ne.s32.totalorder %s7580_s25, %s7200_s4  ;;  %s7205_s15 = sshll.u32 %s7414_s17, 4  ;;  %s7206_s15 = int_to_ptr.vmem [resolvable:$false] %s7205_s15 }
  0x4a   : > { %s7207_s23 = scalar_lea.vmem %s7206_s15, 65536  ;;  %p7208_p9 = scmp.lt.s32.totalorder %s7580_s25, %s7206_s15 }
  0x4b   : > { %p7203_p10 = pnand %p7201_p8, %p7538_p7  ;;  %p7209_p12 = scmp.lt.s32.totalorder %s7207_s23, %s7200_s4 }
  0x4d   : > { %p7204_p11 = pneg %p7203_p10  ;;  %p7210_p0 = por %p7209_p12, %p7208_p9 }
  0x4f   : > { %p7211_p1 = pnand %p7210_p0, %p7204_p11 }
  0x51   : > { %7214 = shalt.err (!%p7211_p1)
}
  0x52   : > { %s8495_s20 = smov 256   ;;  %s8497_s28 = smov 16  }
  0x53   : > { %6285 = dma.hbm_to_vmem [thread:$0]  (!%p7524_p5), %s7578_s9, 32768, %s7580_s25, %s7584_s19, %s8495_s20, %s8495_s20, %s8497_s28  }
  0x54   : > { %s7612_s21 = sadd.s32 4294967295, %s7409_s12   ;;  %p134_p13 = scmp.ne.s32.totalorder %s7401_s10, %s7397_s30 }
  0x55   : > { %p8501_p2 = scmp.eq.s32.totalorder %s7612_s21, 0  ;;  %p5486_p3 = scmp.ge.s32.totalorder %s7409_s12, 1 }
  0x56   : > { %p270_p4 = scmp.lt.s32.totalorder %s7409_s12, 4  ;;  %s7417_s9 = smov [#allocation3]  }
  0x57   : > { %p7621_p6 = por %p8501_p2, %p134_p13  ;;  %s286_s25 = sshll.u32 %s7417_s9, 4  ;;  %s287_s25 = int_to_ptr.vmem [resolvable:$true] %s286_s25 }
  0x58   : > { %p7626_p10 = pnand %p5486_p3, %p270_p4  ;;  %s5492_s16 = sshll.u32 %s7511_s18, 1 }
  0x59   : > { %s8521_s11 = scalar_select %p7621_p6, 1, 0 }
  0x5a   : > { %s8522_s13 = scalar_select %p7626_p10, 1, 0 }
  0x5b   : > { %p6272_p11 = pneg %p7626_p10  ;;  %s6186_s30 = sshll.u32 %s7409_s12, 5 }
  0x5c   : > { %s7643_s15 = scalar_lea.hbm %s8485_s5, %s6186_s30  ;;  %s328_s23 = scalar_lea.vmem [#allocation8], %s5492_s16 }
  0x5d   : > { %p7636_p9 = pnand %p6272_p11, %p8501_p2  ;;  %s336_s20 = sshll.u32 %s328_s23, 4  ;;  %s7645_s20 = int_to_ptr.vmem [resolvable:$true] %s336_s20 }
  0x5e   : > { %s7215_s6 = scalar_lea.hbm %s8481_s1, 256 }
  0x5f   : > { %p7216_p12 = scmp.ne.s32.totalorder %s8481_s1, %s7215_s6  ;;  %p7217_p0 = pneg %p7636_p9 }
  0x60   : > { %p7222_p3 = scmp.lt.u32.totalorder %s7215_s6, %s8481_s1 }
  0x61   : > { %p7218_p1 = pnand %p7217_p0, %p7216_p12 }
  0x63   : > { %p7219_p13 = pneg %p7218_p1 }
  0x65   : > { %p7224_p4 = pnand %p7222_p3, %p7219_p13 }
  0x67   : > { %7227 = shalt.err (!%p7224_p4)
}
  0x68   : > { %s7228_s16 = scalar_lea.vmem %s287_s25, 256  ;;  %p7236_p6 = scmp.lt.s32.totalorder %s287_s25, %s287_s25 }
  0x69   : > { %p7229_p11 = scmp.ne.s32.totalorder %s287_s25, %s7228_s16  ;;  %p7237_p10 = scmp.lt.s32.totalorder %s7228_s16, %s7228_s16 }
  0x6b   : > { %p7231_p8 = pnand %p7229_p11, %p7217_p0  ;;  %p7238_p5 = por %p7237_p10, %p7236_p6 }
  0x6d   : > { %p7232_p2 = pneg %p7231_p8 }
  0x6f   : > { %p7239_p7 = pnand %p7238_p5, %p7232_p2 }
  0x71   : > { %7242 = shalt.err (!%p7239_p7)
}
  0x72   : > { %6275 = dma.hbm_to_vmem [thread:$0]  (!%p7636_p9), %s8481_s1, 256, %s287_s25, [#allocation4]  }
  0x73   : > { %s7243_s6 = scalar_lea.hbm %s7643_s15, 32  ;;  %p8524_p0 = scmp.ne.s32.totalorder %s8518_s29, 0 }
  0x74   : > { %p7244_p12 = scmp.ne.s32.totalorder %s7643_s15, %s7243_s6  ;;  %s7248_s23 = scalar_lea.hbm %s8485_s5, 96 }
  0x75   : > { %p7249_p5 = scmp.lt.u32.totalorder %s7643_s15, %s8485_s5  ;;  %p7250_p7 = scmp.lt.u32.totalorder %s7248_s23, %s7243_s6 }
  0x76   : > { %p7246_p8 = pnand %p7244_p12, %p8524_p0  ;;  %p7252_p6 = scmp.lt.u32.totalorder %s7243_s6, %s7643_s15 }
  0x77   : > { %p7251_p2 = por %p7250_p7, %p7249_p5 }
  0x78   : > { %p7247_p1 = pneg %p7246_p8 }
  0x79   : > { %p7253_p10 = por %p7252_p6, %p7251_p2 }
  0x7b   : > { %p7254_p13 = pnand %p7253_p10, %p7247_p1 }
  0x7d   : > { %7257 = shalt.err (!%p7254_p13)
}
  0x7e   : > { %s7258_s25 = scalar_lea.vmem %s7645_s20, 32  ;;  %s7418_s4 = smov [#allocation8]  }
  0x7f   : > { %p7259_p9 = scmp.ne.s32.totalorder %s7645_s20, %s7258_s25  ;;  %s7263_s17 = sshll.u32 %s7418_s4, 4  ;;  %s7264_s17 = int_to_ptr.vmem [resolvable:$false] %s7263_s17 }
  0x80   : > { %s7265_s16 = scalar_lea.vmem %s7264_s17, 64  ;;  %p7266_p11 = scmp.lt.s32.totalorder %s7645_s20, %s7264_s17 }
  0x81   : > { %p7261_p3 = pnand %p7259_p9, %p8524_p0  ;;  %p7267_p12 = scmp.lt.s32.totalorder %s7265_s16, %s7258_s25 }
  0x83   : > { %p7262_p4 = pneg %p7261_p3  ;;  %p7268_p8 = por %p7267_p12, %p7266_p11 }
  0x85   : > { %p7269_p5 = pnand %p7268_p8, %p7262_p4 }
  0x87   : > { %7272 = shalt.err (!%p7269_p5)
}
  0x88   : > { %p8525_p1 = scmp.ne.s32.totalorder %s8517_s26, 0  ;;  %s7273_s2 = scalar_lea.hbm %s7567_s14, 8192 }
  0x89   : > { %p7274_p7 = scmp.ne.s32.totalorder %s7567_s14, %s7273_s2  ;;  %s7278_s28 = scalar_lea.hbm %s8487_s7, 24576 }
  0x8a   : > { %6282 = dma.hbm_to_vmem [thread:$0]  (!%p8525_p1), %s7643_s15, 32, %s7645_s20, %s7532_s27  }
  0x8b   : > { %p7276_p2 = pnand %p7274_p7, %p8524_p0  ;;  %p7279_p10 = scmp.lt.u32.totalorder %s7567_s14, %s8487_s7 }
  0x8c   : > { %p7280_p13 = scmp.lt.u32.totalorder %s7278_s28, %s7273_s2  ;;  %p7282_p3 = scmp.lt.u32.totalorder %s7273_s2, %s7567_s14 }
  0x8d   : > { %p7277_p6 = pneg %p7276_p2 }
  0x8e   : > { %p7281_p9 = por %p7280_p13, %p7279_p10 }
  0x90   : > { %p7283_p4 = por %p7282_p3, %p7281_p9 }
  0x92   : > { %p7284_p11 = pnand %p7283_p4, %p7277_p6 }
  0x94   : > { %7287 = shalt.err (!%p7284_p11)
}
  0x95   : > { %s7288_s27 = scalar_lea.vmem %s7571_s22, 8192  ;;  %s7419_s20 = smov [#allocation11]  }
  0x96   : > { %p7289_p12 = scmp.ne.s32.totalorder %s7571_s22, %s7288_s27  ;;  %s7293_s15 = sshll.u32 %s7419_s20, 4  ;;  %s7294_s15 = int_to_ptr.vmem [resolvable:$false] %s7293_s15 }
  0x97   : > { %s7295_s9 = scalar_lea.vmem %s7294_s15, 16384  ;;  %p7296_p7 = scmp.lt.s32.totalorder %s7571_s22, %s7294_s15 }
  0x98   : > { %p7291_p8 = pnand %p7289_p12, %p8524_p0  ;;  %p7297_p2 = scmp.lt.s32.totalorder %s7295_s9, %s7288_s27 }
  0x9a   : > { %p7292_p5 = pneg %p7291_p8  ;;  %p7298_p10 = por %p7297_p2, %p7296_p7 }
  0x9c   : > { %p7299_p13 = pnand %p7298_p10, %p7292_p5 }
  0x9e   : > { %7302 = shalt.err (!%p7299_p13)
}
  0x9f   : > { %s8526_s24 = smov 16   ;;  %s8527_s25 = smov 256  }
  0xa0   : > { %6288 = dma.hbm_to_vmem [thread:$0]  (!%p8525_p1), %s7567_s14, 8192, %s7571_s22, %s7584_s19, %s8527_s25, %s8527_s25, %s8526_s24  }
  0xa1   : > { %s5501_s4 = sshll.u32 %s7511_s18, 10  ;;  %s6189_s17 = sshll.u32 %s7409_s12, 14 }
  0xa2   : > { %s7715_s3 = scalar_lea.hbm %s8488_s8, %s6189_s17  ;;  %s389_s6 = scalar_lea.vmem [#allocation12], %s5501_s4 }
  0xa3   : > { %s396_s28 = sshll.u32 %s389_s6, 4  ;;  %s386_s30 = scalar_lea.sflag [#allocation13], %s7511_s18  ;;  %s7717_s28 = int_to_ptr.vmem [resolvable:$true] %s396_s28 }
  0xa4   : > { %s7303_s23 = scalar_lea.hbm %s7715_s3, 16384  ;;  %s7308_s22 = scalar_lea.hbm %s8488_s8, 49152 }
  0xa5   : > { %p7304_p6 = scmp.ne.s32.totalorder %s7715_s3, %s7303_s23  ;;  %p7309_p4 = scmp.lt.u32.totalorder %s7715_s3, %s8488_s8 }
  0xa6   : > { %p7310_p11 = scmp.lt.u32.totalorder %s7308_s22, %s7303_s23  ;;  %p7312_p8 = scmp.lt.u32.totalorder %s7303_s23, %s7715_s3 }
  0xa7   : > { %p7306_p9 = pnand %p7304_p6, %p8524_p0 }
  0xa8   : > { %p7311_p12 = por %p7310_p11, %p7309_p4 }
  0xa9   : > { %p7307_p3 = pneg %p7306_p9 }
  0xaa   : > { %p7313_p5 = por %p7312_p8, %p7311_p12 }
  0xac   : > { %p7314_p7 = pnand %p7313_p5, %p7307_p3 }
  0xae   : > { %7317 = shalt.err (!%p7314_p7)
}
  0xaf   : > { %s7318_s20 = scalar_lea.vmem %s7717_s28, 16384  ;;  %s7420_s15 = smov [#allocation12]  }
  0xb0   : > { %p7319_p2 = scmp.ne.s32.totalorder %s7717_s28, %s7318_s20  ;;  %s7323_s9 = sshll.u32 %s7420_s15, 4  ;;  %s7324_s9 = int_to_ptr.vmem [resolvable:$false] %s7323_s9 }
  0xb1   : > { %s7325_s4 = scalar_lea.vmem %s7324_s9, 32768  ;;  %p7326_p6 = scmp.lt.s32.totalorder %s7717_s28, %s7324_s9 }
  0xb2   : > { %p7321_p10 = pnand %p7319_p2, %p8524_p0  ;;  %p7327_p9 = scmp.lt.s32.totalorder %s7325_s4, %s7318_s20 }
  0xb4   : > { %p7322_p13 = pneg %p7321_p10  ;;  %p7328_p4 = por %p7327_p9, %p7326_p6 }
  0xb6   : > { %p7329_p11 = pnand %p7328_p4, %p7322_p13 }
  0xb8   : > { %7332 = shalt.err (!%p7329_p11)
}
  0xb9   : > { %6291 = dma.hbm_to_vmem [thread:$0]  (!%p8525_p1), %s7715_s3, 16384, %s7717_s28, %s386_s30, %s8527_s25, %s8527_s25, %s8526_s24  }
  0xba   : > { %p8528_p0 = scmp.ne.s32.totalorder %s8522_s13, 0 }
  0xbb   : > { %p8529_p3 = scmp.eq.s32.totalorder (!%p8528_p0), %s7612_s21, 0 }
  0xbc   : > { %408 = sbr.rel (%p8528_p0) target bundleno = 2439 (0x987), region = 56 }
  0xc3   : > { %7376 = dma.done.wait (%p8529_p3), [#allocation4], 256   ;;  %p8530_p12 = pmov %p8529_p3 }
  0xc4   : > { %s414_s26 = sand.u32 1, %s7612_s21   ;;  %s416_s29 = sand.u32 1, %s7401_s10  }
  0xc5   : > { %7378 = vsyncadd (%p8530_p12), [#allocation4], 4294967040  ;;  %s5506_s17 = sshll.u32 %s416_s29, 9  ;;  %s415_s16 = scalar_lea.sflag [#allocation7], %s414_s26 }
  0xc6   : > { %s7754_s18 = scalar_lea.vmem [#allocation6], %s5506_s17  ;;  %p8531_p8 = scmp.ne.s32.totalorder %s8521_s11, 0 }
  0xc8   : > { %7380 = dma.done.wait (%p8531_p8), %s415_s16, 8224  }
  0xc9   : > { %7382 = vsyncadd (%p8531_p8), %s415_s16, 4294959072  ;;  %s5507_s13 = sshll.u32 %s416_s29, 1  ;;  %s5508_s24 = sshll.u32 %s416_s29, 11 }
  0xca   : > { %s7760_s25 = scalar_lea.vmem [#allocation8], %s5507_s13  ;;  %s433_s2 = scalar_lea.sflag [#allocation10], %s414_s26 }
  0xcb   : > { %s7762_s3 = scalar_lea.vmem [#allocation9], %s5508_s24 }
  0xcc   : > { %7384 = dma.done.wait (%p8531_p8), %s433_s2, 40960  }
  0xcd   : > { %7386 = vsyncadd (%p8531_p8), %s433_s2, 4294926336  ;;  %s5510_s6 = sshll.u32 %s416_s29, 10  ;;  %s7768_s28 = scalar_lea.vmem [#allocation11], %s5506_s17 }
  0xce   : > { %s451_s30 = scalar_lea.sflag [#allocation13], %s416_s29  ;;  %s7770_s23 = scalar_lea.vmem [#allocation12], %s5510_s6 }
  0xcf   : > { %7388 = dma.done.wait (%p8531_p8), %s451_s30, 16384  }
  0xd0   : > { %7390 = vsyncadd (%p8531_p8), %s451_s30, 4294950912  ;;  %p8532_p1 = scmp.ne.s32.totalorder %s7612_s21, 0 }
  0xd1   : > { %v509_v0 = vld [vmem:[#allocation3] sm:$0xff] (!%p8532_p1)  ;;  %v510_v4 = vld [vmem:[#allocation3 + $0x8] sm:$0xff] (!%p8532_p1)  ;;  %v7421_v10 = vmov (!%p8532_p1), 0   ;;  %vm631_vm0 = vcmask (!%p8532_p1), 64512   ;;  %vm676_vm1 = vcmask (!%p8532_p1), 130048  }
  0xd2   : > { %508 = sbr.rel (%p8532_p1) target bundleno = 1240 (0x4d8), region = 84  ;;  %v7778_v1 = vcombine.high (!%p8532_p1), %v509_v0, %v509_v0  ;;  %v7780_v2 = vcombine.low (!%p8532_p1), %v509_v0, %v509_v0  ;;  %v6343_v3 = vld [vmem:[%s8480_s0 + $0x4] ss:$16 sps:$4 sm:$0xff] (!%p8532_p1)   ;;  %v7785_v5 = vcombine.high (!%p8532_p1), %v510_v4, %v510_v4  ;;  %v6341_v6 = vld [vmem:[%s8480_s0] ss:$16 sps:$4 sm:$0xff] (!%p8532_p1)   ;;  %v5518_v8 = vcombine.low (!%p8532_p1), %v510_v4, %v510_v4  ;;  %712 = vmatprep.mubr.bf16.mxu1 (!%p8532_p1), %v7421_v10 }
  0xd3   : > { %581 = vmatprep.mubr.bf16.mxu0 (!%p8532_p1), %v6343_v3  ;;  %v6348_v7 = vld [vmem:[%s8480_s0 + $0xc] ss:$16 sps:$4 sm:$0xff] (!%p8532_p1)   ;;  %680 = vmatprep.subr.bf16.mxu1 (!%p8532_p1), %v6343_v3  ;;  %v6346_v9 = vld [vmem:[%s8480_s0 + $0x8] ss:$16 sps:$4 sm:$0xff] (!%p8532_p1)   ;;  %v6351_v39 = vld [vmem:[%s8480_s0 + $0x24] ss:$16 sps:$4 sm:$0xff] (!%p8532_p1)  }
  0xd4   : > { %549 = vmatprep.subr.bf16.mxu0 (!%p8532_p1), %v7778_v1  ;;  %681 = vmatpush1.bf16.msra.mxu1 (!%p8532_p1), %v6341_v6  ;;  %v6349_v40 = vld [vmem:[%s8480_s0 + $0x20] ss:$16 sps:$4 sm:$0xff] (!%p8532_p1)   ;;  %v6354_v41 = vld [vmem:[%s8480_s0 + $0x2c] ss:$16 sps:$4 sm:$0xff] (!%p8532_p1)   ;;  %v6352_v47 = vld [vmem:[%s8480_s0 + $0x28] ss:$16 sps:$4 sm:$0xff] (!%p8532_p1)  }
  0xd5   : > { %550 = vmatpush1.bf16.xpose.msra.mxu0 (!%p8532_p1), %v7780_v2  ;;  %721 = vmatprep.subr.bf16.mxu1 (!%p8532_p1), %v6348_v7 }
  0xd6   : > { %590 = vmatprep.subr.bf16.mxu0 (!%p8532_p1), %v7785_v5 }
  0xdc   : > { %582 = vmatmul.mubr.bf16.vlgmr.msra.gmra.mrb[0].mxu0 %v6341_v6 }
  0xdd   : > { %591 = vmatpush1.bf16.xpose.msra.mxu0 %v5518_v8  ;;  %622 = vmatprep.mubr.bf16.mxu0 %v6348_v7 }
  0xde   : > { %920 = vmatprep.subr.bf16.mxu0 %v6351_v39 }
  0xe8   : > { %623 = vmatmul.mubr.bf16.vlgmr.msra.gmra.mrb[0].mxu0 %v6346_v9 }
  0xe9   : > { %952 = vmatprep.mubr.bf16.mxu0 %v7421_v10  ;;  %921 = vmatpush1.bf16.msra.mxu0 %v6349_v40 }
  0xea   : > { %961 = vmatprep.subr.bf16.mxu0 %v6354_v41 }
 0x1bb   : > { %v624_v11 = vpop.f32.mrb[0].mxu0 }
 0x1bc   : > { %v626_v12 = vpop.f32.mrb[1].mxu0  ;;  %v632_v14 = vsel %vm631_vm0, %v624_v11, -inf }
 0x1bd   : > { %v627_v13 = vpop.f32.mrb[2].mxu0 }
 0x1be   : > { %v633_v15 = vsel %vm631_vm0, %v627_v13, -inf  ;;  %v629_v16 = vpop.f32.mrb[3].mxu0 }
 0x1bf   : > { %v634_v17 = vmax.f32 %v632_v14, %v633_v15 }
 0x1c1   : > { %v635_v18 = vrot.slane %v634_v17, 4 }
 0x1c3   : > { %v636_v19 = vmax.f32 %v634_v17, %v635_v18 }
 0x1c5   : > { %v637_v20 = vrot.slane %v636_v19, 2 }
 0x1c7   : > { %v638_v21 = vmax.f32 %v636_v19, %v637_v20 }
 0x1c9   : > { %v639_v22 = vrot.slane %v638_v21, 1 }
 0x1cb   : > { %v640_v23 = vmax.f32 %v638_v21, %v639_v22 }
 0x1cd   : > { %v641_v24 = vsub.f32 %v624_v11, %v640_v23  ;;  %v642_v25 = vsub.f32 %v627_v13, %v640_v23 }
 0x1cf   : > { %v643_v26 = vmul.f32 1.442695, %v641_v24  ;;  %v645_v27 = vmul.f32 1.442695, %v642_v25 }
 0x1d1   : > { %6355 = vpow2.f32 %v643_v26 }
 0x1d2   : > { %6357 = vpow2.f32 %v645_v27 }
 0x1db   : > { %v6356_v28 = vpop.eup %6355 }
 0x1dc   : > { %v6358_v29 = vpop.eup %6357  ;;  %v647_v30 = vsel %vm631_vm0, %v6356_v28, 0.0 }
 0x1dd   : > { %v648_v31 = vsel %vm631_vm0, %v6358_v29, 0.0 }
 0x1de   : > { %v649_v32 = vadd.f32 %v648_v31, %v647_v30 }
 0x1e0   : > { %v650_v33 = vrot.slane %v649_v32, 4 }
 0x1e2   : > { %v651_v34 = vadd.f32 %v650_v33, %v649_v32 }
 0x1e4   : > { %v652_v35 = vrot.slane %v651_v34, 2 }
 0x1e6   : > { %v653_v36 = vadd.f32 %v652_v35, %v651_v34 }
 0x1e8   : > { %v654_v37 = vrot.slane %v653_v36, 1 }
 0x1ea   : > { %v655_v38 = vadd.f32 %v654_v37, %v653_v36 }
 0x1ec   : > { %6359 = vrcp.f32 %v655_v38 }
 0x1f6   : > { %v6360_v42 = vpop.eup %6359 }
 0x1f7   : > { %v657_v43 = vmul.f32 %v6360_v42, %v6356_v28  ;;  %v658_v44 = vmul.f32 %v6360_v42, %v6358_v29 }
 0x1f9   : > { %v659_v45 = vpack.c.bf16 %v658_v44, %v657_v43 }
 0x1fb   : > { %660 = vxpose.xlu0.c.b16.start.end [1/1] (short) (narrow) %v659_v45, 16 }
 0x261   : > { %v668_v46 = vpop.trf.xlu0 }
 0x262   : > { %5520 = vmatmul.mubr.msk.bf16.vlgmr.msra.gmra.mrb[0].mxu1 %vm676_vm1, %v668_v46 }
 0x263   : > { %722 = vmatpush1.bf16.msra.mxu1 %v6346_v9  ;;  %753 = vmatprep.mubr.bf16.mxu1 %v7421_v10 }
 0x264   : > { %791 = vmatprep.subr.bf16.mxu1 %v7778_v1 }
 0x26a   : > { %5521 = vmatmul.mubr.msk.bf16.vlgmr.msra.gmra.mrb[4].mxu1 %vm676_vm1, %v668_v46 }
 0x26b   : > { %823 = vmatprep.mubr.bf16.mxu1 %v6351_v39 }
 0x26c   : > { %792 = vmatpush1.bf16.xpose.msra.mxu1 %v7780_v2 }
 0x26d   : > { %832 = vmatprep.subr.bf16.mxu1 %v7785_v5 }
 0x273   : > { %824 = vmatmul.mubr.bf16.vlgmr.msra.gmra.mrb[8].mxu1 %v6349_v40 }
 0x274   : > { %833 = vmatpush1.bf16.xpose.msra.mxu1 %v5518_v8  ;;  %864 = vmatprep.mubr.bf16.mxu1 %v6354_v41 }
 0x27f   : > { %865 = vmatmul.mubr.bf16.vlgmr.msra.gmra.mrb[8].mxu1 %v6352_v47 }
 0x335   : > { %v714_v48 = vpop.f32.mrb[0].mxu1 }
 0x336   : > { %762 = vst [vmem:[#allocation2] sm:$0xff] %v714_v48  ;;  %v716_v49 = vpop.f32.mrb[1].mxu1 }
 0x337   : > { %763 = vst [vmem:[#allocation2 + $0x8] sm:$0xff] %v716_v49  ;;  %v718_v50 = vpop.f32.mrb[2].mxu1 }
 0x338   : > { %v719_v51 = vpop.f32.mrb[3].mxu1 }
 0x33d   : > { %v755_v52 = vpop.f32.mrb[4].mxu1 }
 0x33e   : > { %764 = vst [vmem:[#allocation2 + $0x10] sm:$0xff] %v755_v52  ;;  %v757_v53 = vpop.f32.mrb[5].mxu1 }
 0x33f   : > { %765 = vst [vmem:[#allocation2 + $0x18] sm:$0xff] %v757_v53  ;;  %v759_v54 = vpop.f32.mrb[6].mxu1 }
 0x340   : > { %v760_v55 = vpop.f32.mrb[7].mxu1 }
 0x352   : > { %v866_v56 = vpop.f32.mrb[8].mxu1 }
 0x353   : > { %v868_v57 = vpop.f32.mrb[9].mxu1  ;;  %v873_v59 = vsel %vm631_vm0, %v866_v56, -inf }
 0x354   : > { %v869_v58 = vpop.f32.mrb[10].mxu1 }
 0x355   : > { %v874_v60 = vsel %vm631_vm0, %v869_v58, -inf  ;;  %v871_v61 = vpop.f32.mrb[11].mxu1 }
 0x356   : > { %v875_v62 = vmax.f32 %v873_v59, %v874_v60 }
 0x358   : > { %v876_v63 = vrot.slane %v875_v62, 4 }
 0x35a   : > { %v877_v0 = vmax.f32 %v875_v62, %v876_v63 }
 0x35c   : > { %v878_v1 = vrot.slane %v877_v0, 2 }
 0x35e   : > { %v879_v2 = vmax.f32 %v877_v0, %v878_v1 }
 0x360   : > { %v880_v3 = vrot.slane %v879_v2, 1 }
 0x362   : > { %v881_v4 = vmax.f32 %v879_v2, %v880_v3 }
 0x364   : > { %v882_v5 = vsub.f32 %v866_v56, %v881_v4  ;;  %v883_v6 = vsub.f32 %v869_v58, %v881_v4 }
 0x366   : > { %v884_v7 = vmul.f32 1.442695, %v882_v5  ;;  %v886_v8 = vmul.f32 1.442695, %v883_v6 }
 0x368   : > { %6361 = vpow2.f32 %v884_v7 }
 0x369   : > { %6363 = vpow2.f32 %v886_v8 }
 0x372   : > { %v6362_v9 = vpop.eup %6361 }
 0x373   : > { %v6364_v11 = vpop.eup %6363  ;;  %v888_v12 = vsel %vm631_vm0, %v6362_v9, 0.0 }
 0x374   : > { %v889_v13 = vsel %vm631_vm0, %v6364_v11, 0.0 }
 0x375   : > { %v890_v14 = vadd.f32 %v889_v13, %v888_v12 }
 0x377   : > { %v891_v15 = vrot.slane %v890_v14, 4 }
 0x379   : > { %v892_v16 = vadd.f32 %v891_v15, %v890_v14 }
 0x37b   : > { %v893_v17 = vrot.slane %v892_v16, 2 }
 0x37d   : > { %v894_v18 = vadd.f32 %v893_v17, %v892_v16 }
 0x37f   : > { %v895_v19 = vrot.slane %v894_v18, 1 }
 0x381   : > { %v896_v20 = vadd.f32 %v895_v19, %v894_v18 }
 0x383   : > { %6365 = vrcp.f32 %v896_v20 }
 0x38d   : > { %v6366_v21 = vpop.eup %6365 }
 0x38e   : > { %v898_v22 = vmul.f32 %v6366_v21, %v6362_v9  ;;  %v899_v23 = vmul.f32 %v6366_v21, %v6364_v11 }
 0x390   : > { %v900_v24 = vpack.c.bf16 %v899_v23, %v898_v22 }
 0x392   : > { %901 = vxpose.xlu0.c.b16.start.end [1/1] (short) (narrow) %v900_v24, 16 }
 0x3f8   : > { %v909_v25 = vpop.trf.xlu0 }
 0x3f9   : > { %5530 = vmatmul.mubr.msk.bf16.vlgmr.msra.gmra.mrb[4].mxu0 %vm676_vm1, %v909_v25 }
 0x3fa   : > { %962 = vmatpush1.bf16.msra.mxu0 %v6352_v47  ;;  %993 = vmatprep.mubr.bf16.mxu0 %v7421_v10 }
 0x401   : > { %5531 = vmatmul.mubr.msk.bf16.vlgmr.msra.gmra.mrb[8].mxu0 %vm676_vm1, %v909_v25 }
 0x4cc   : > { %v954_v26 = vpop.f32.mrb[4].mxu0 }
 0x4cd   : > { %1002 = vst [vmem:[#allocation2 + $0x20] sm:$0xff] %v954_v26  ;;  %v956_v27 = vpop.f32.mrb[5].mxu0 }
 0x4ce   : > { %1003 = vst [vmem:[#allocation2 + $0x28] sm:$0xff] %v956_v27  ;;  %v958_v28 = vpop.f32.mrb[6].mxu0 }
 0x4cf   : > { %v959_v29 = vpop.f32.mrb[7].mxu0 }
 0x4d4   : > { %v995_v30 = vpop.f32.mrb[8].mxu0 }
 0x4d5   : > { %1004 = vst [vmem:[#allocation2 + $0x30] sm:$0xff] %v995_v30  ;;  %v997_v31 = vpop.f32.mrb[9].mxu0 }
 0x4d6   : > { %1005 = vst [vmem:[#allocation2 + $0x38] sm:$0xff] %v997_v31  ;;  %v999_v32 = vpop.f32.mrb[10].mxu0 }
 0x4d7   : > { %v1000_v33 = vpop.f32.mrb[11].mxu0 }
 0x4d8 PF: > { %v6367_v10 = vld [vmem:[%s7754_s18 + $0x4] ss:$8 sps:$4 sm:$0xff]   ;;  %v6371_v35 = vld [vmem:[%s7754_s18] ss:$8 sps:$4 sm:$0xff]   ;;  %v6373_v37 = vld [vmem:[%s7754_s18 + $0x14] ss:$8 sps:$4 sm:$0xff]  }
 0x4d9   : > { %v6369_v34 = vld [vmem:[%s7754_s18 + $0x104] ss:$8 sps:$4 sm:$0xff]   ;;  %1414 = vmatprep.subr.bf16.mxu1 %v6367_v10  ;;  %v6372_v36 = vld [vmem:[%s7754_s18 + $0x100] ss:$8 sps:$4 sm:$0xff]   ;;  %v6375_v38 = vld [vmem:[%s7754_s18 + $0x114] ss:$8 sps:$4 sm:$0xff]  }
 0x4da   : > { %1457 = vmatprep.subr.bf16.mxu0 %v6369_v34  ;;  %1415 = vmatpush1.bf16.msra.mxu1 %v6371_v35  ;;  %v6377_v39 = vld [vmem:[%s7754_s18 + $0x10] ss:$8 sps:$4 sm:$0xff]   ;;  %v6379_v41 = vld [vmem:[%s7754_s18 + $0x24] ss:$8 sps:$4 sm:$0xff]   ;;  %v6383_v43 = vld [vmem:[%s7754_s18 + $0x20] ss:$8 sps:$4 sm:$0xff]  }
 0x4db   : > { %1458 = vmatpush1.bf16.msra.mxu0 %v6372_v36  ;;  %1416 = vmatprep.subr.bf16.mxu1 %v6373_v37  ;;  %v6378_v40 = vld [vmem:[%s7754_s18 + $0x110] ss:$8 sps:$4 sm:$0xff]   ;;  %v6381_v42 = vld [vmem:[%s7754_s18 + $0x124] ss:$8 sps:$4 sm:$0xff]   ;;  %v6384_v44 = vld [vmem:[%s7754_s18 + $0x120] ss:$8 sps:$4 sm:$0xff]  }
 0x4dc   : > { %1459 = vmatprep.subr.bf16.mxu0 %v6375_v38  ;;  %v6385_v45 = vld [vmem:[%s7754_s18 + $0x34] ss:$8 sps:$4 sm:$0xff]   ;;  %v6389_v47 = vld [vmem:[%s7754_s18 + $0x30] ss:$8 sps:$4 sm:$0xff]   ;;  %v6391_v49 = vld [vmem:[%s7754_s18 + $0x44] ss:$8 sps:$4 sm:$0xff]  }
 0x4dd   : > { %v6387_v46 = vld [vmem:[%s7754_s18 + $0x134] ss:$8 sps:$4 sm:$0xff]   ;;  %v6390_v48 = vld [vmem:[%s7754_s18 + $0x130] ss:$8 sps:$4 sm:$0xff]   ;;  %v6393_v50 = vld [vmem:[%s7754_s18 + $0x144] ss:$8 sps:$4 sm:$0xff]  }
 0x4de   : > { %1417 = vmatpush1.bf16.msra.mxu1 %v6377_v39  ;;  %v6395_v51 = vld [vmem:[%s7754_s18 + $0x40] ss:$8 sps:$4 sm:$0xff]   ;;  %v6397_v53 = vld [vmem:[%s7754_s18 + $0x54] ss:$8 sps:$4 sm:$0xff]   ;;  %v6401_v55 = vld [vmem:[%s7754_s18 + $0x50] ss:$8 sps:$4 sm:$0xff]  }
 0x4df   : > { %1460 = vmatpush1.bf16.msra.mxu0 %v6378_v40  ;;  %1418 = vmatprep.subr.bf16.mxu1 %v6379_v41  ;;  %v6396_v52 = vld [vmem:[%s7754_s18 + $0x140] ss:$8 sps:$4 sm:$0xff]   ;;  %v6399_v54 = vld [vmem:[%s7754_s18 + $0x154] ss:$8 sps:$4 sm:$0xff]   ;;  %v6402_v56 = vld [vmem:[%s7754_s18 + $0x150] ss:$8 sps:$4 sm:$0xff]  }
 0x4e0   : > { %1461 = vmatprep.subr.bf16.mxu0 %v6381_v42  ;;  %v6403_v57 = vld [vmem:[%s7754_s18 + $0x64] ss:$8 sps:$4 sm:$0xff]   ;;  %v6407_v59 = vld [vmem:[%s7754_s18 + $0x60] ss:$8 sps:$4 sm:$0xff]   ;;  %v6409_v61 = vld [vmem:[%s7754_s18 + $0x74] ss:$8 sps:$4 sm:$0xff]  }
 0x4e1   : > { %v6405_v58 = vld [vmem:[%s7754_s18 + $0x164] ss:$8 sps:$4 sm:$0xff]   ;;  %v6408_v60 = vld [vmem:[%s7754_s18 + $0x160] ss:$8 sps:$4 sm:$0xff]   ;;  %v6411_v62 = vld [vmem:[%s7754_s18 + $0x174] ss:$8 sps:$4 sm:$0xff]  }
 0x4e2   : > { %1419 = vmatpush1.bf16.msra.mxu1 %v6383_v43  ;;  %v6413_v63 = vld [vmem:[%s7754_s18 + $0x70] ss:$8 sps:$4 sm:$0xff]   ;;  %v6415_v1 = vld [vmem:[%s7754_s18 + $0x84] ss:$8 sps:$4 sm:$0xff]   ;;  %v6419_v3 = vld [vmem:[%s7754_s18 + $0x80] ss:$8 sps:$4 sm:$0xff]  }
 0x4e3   : > { %1462 = vmatpush1.bf16.msra.mxu0 %v6384_v44  ;;  %1420 = vmatprep.subr.bf16.mxu1 %v6385_v45  ;;  %v6414_v0 = vld [vmem:[%s7754_s18 + $0x170] ss:$8 sps:$4 sm:$0xff]   ;;  %v6417_v2 = vld [vmem:[%s7754_s18 + $0x184] ss:$8 sps:$4 sm:$0xff]   ;;  %v6420_v4 = vld [vmem:[%s7754_s18 + $0x180] ss:$8 sps:$4 sm:$0xff]  }
 0x4e4   : > { %1463 = vmatprep.subr.bf16.mxu0 %v6387_v46  ;;  %v6421_v5 = vld [vmem:[%s7754_s18 + $0x94] ss:$8 sps:$4 sm:$0xff]   ;;  %v6425_v7 = vld [vmem:[%s7754_s18 + $0x90] ss:$8 sps:$4 sm:$0xff]   ;;  %v6427_v9 = vld [vmem:[%s7754_s18 + $0xa4] ss:$8 sps:$4 sm:$0xff]  }
 0x4e5   : > { %v6423_v6 = vld [vmem:[%s7754_s18 + $0x194] ss:$8 sps:$4 sm:$0xff]   ;;  %v6426_v8 = vld [vmem:[%s7754_s18 + $0x190] ss:$8 sps:$4 sm:$0xff]   ;;  %v6429_v11 = vld [vmem:[%s7754_s18 + $0x1a4] ss:$8 sps:$4 sm:$0xff]  }
 0x4e6   : > { %1421 = vmatpush1.bf16.msra.mxu1 %v6389_v47  ;;  %v6431_v12 = vld [vmem:[%s7754_s18 + $0xa0] ss:$8 sps:$4 sm:$0xff]   ;;  %v6433_v14 = vld [vmem:[%s7754_s18 + $0xb4] ss:$8 sps:$4 sm:$0xff]   ;;  %v6437_v17 = vld [vmem:[%s7754_s18 + $0xb0] ss:$8 sps:$4 sm:$0xff]  }
 0x4e7   : > { %1464 = vmatpush1.bf16.msra.mxu0 %v6390_v48  ;;  %1422 = vmatprep.subr.bf16.mxu1 %v6391_v49  ;;  %v6432_v13 = vld [vmem:[%s7754_s18 + $0x1a0] ss:$8 sps:$4 sm:$0xff]   ;;  %v6435_v15 = vld [vmem:[%s7754_s18 + $0x1b4] ss:$8 sps:$4 sm:$0xff]   ;;  %v6438_v18 = vld [vmem:[%s7754_s18 + $0x1b0] ss:$8 sps:$4 sm:$0xff]  }
 0x4e8   : > { %1465 = vmatprep.subr.bf16.mxu0 %v6393_v50  ;;  %v1007_v16 = vld [vmem:[#allocation2 + $0x8] sm:$0xff]  ;;  %v1009_v21 = vld [vmem:[#allocation2 + $0x18] sm:$0xff]  ;;  %v1006_v39 = vld [vmem:[#allocation2] sm:$0xff]  ;;  %s8533_s2 = sld [smem:[#allocation23_spill]]  ;;  %vm3432_vm2 = vcmask 130048   ;;  %s8534_s30 = sld [smem:[#allocation24_spill]] }
 0x4e9   : > { %v1011_v19 = vld [vmem:[#allocation2 + $0x28] sm:$0xff]  ;;  %v1013_v22 = vld [vmem:[#allocation2 + $0x38] sm:$0xff]  ;;  %v1010_v40 = vld [vmem:[#allocation2 + $0x20] sm:$0xff]  ;;  %p6180_p5 = scmp.ne.s32.totalorder %s7612_s21, 2 }
 0x4ea   : > { %1423 = vmatpush1.bf16.msra.mxu1 %v6395_v51  ;;  %v7878_v20 = vpack.c.bf16 %v1011_v19, %v1007_v16  ;;  %v6439_v23 = vld [vmem:[%s7754_s18 + $0xc4] ss:$8 sps:$4 sm:$0xff]   ;;  %v7882_v25 = vpack.c.bf16 %v1013_v22, %v1009_v21  ;;  %v6443_v26 = vld [vmem:[%s7754_s18 + $0xc0] ss:$8 sps:$4 sm:$0xff]   ;;  %v6445_v28 = vld [vmem:[%s7754_s18 + $0xd4] ss:$8 sps:$4 sm:$0xff]   ;;  %v7902_v45 = vpack.c.bf16 %v1010_v40, %v1006_v39 }
 0x4eb   : > { %1466 = vmatpush1.bf16.msra.mxu0 %v6396_v52  ;;  %1424 = vmatprep.subr.bf16.mxu1 %v6397_v53  ;;  %v6441_v24 = vld [vmem:[%s7754_s18 + $0x1c4] ss:$8 sps:$4 sm:$0xff]   ;;  %v6444_v27 = vld [vmem:[%s7754_s18 + $0x1c0] ss:$8 sps:$4 sm:$0xff]   ;;  %v6447_v29 = vld [vmem:[%s7754_s18 + $0x1d4] ss:$8 sps:$4 sm:$0xff]  }
 0x4ec   : > { %1467 = vmatprep.subr.bf16.mxu0 %v6399_v54  ;;  %1446 = vmatprep.mubr.bf16.mxu1 %v7878_v20  ;;  %v6449_v30 = vld [vmem:[%s7754_s18 + $0xd0] ss:$8 sps:$4 sm:$0xff]   ;;  %v6451_v32 = vld [vmem:[%s7754_s18 + $0xe4] ss:$8 sps:$4 sm:$0xff]   ;;  %v6455_v10 = vld [vmem:[%s7754_s18 + $0xe0] ss:$8 sps:$4 sm:$0xff]  }
 0x4ed   : > { %1489 = vmatprep.mubr.bf16.mxu0 %v7882_v25  ;;  %v6450_v31 = vld [vmem:[%s7754_s18 + $0x1d0] ss:$8 sps:$4 sm:$0xff]   ;;  %v6453_v33 = vld [vmem:[%s7754_s18 + $0x1e4] ss:$8 sps:$4 sm:$0xff]   ;;  %v6456_v34 = vld [vmem:[%s7754_s18 + $0x1e0] ss:$8 sps:$4 sm:$0xff]  }
 0x4ee   : > { %1425 = vmatpush1.bf16.msra.mxu1 %v6401_v55  ;;  %v6457_v35 = vld [vmem:[%s7754_s18 + $0xf4] ss:$8 sps:$4 sm:$0xff]   ;;  %v6461_v37 = vld [vmem:[%s7754_s18 + $0xf0] ss:$8 sps:$4 sm:$0xff]   ;;  %v1008_v42 = vld [vmem:[#allocation2 + $0x10] sm:$0xff]  ;;  %s8535_s14 = smov %s8534_s30 }
 0x4ef   : > { %1468 = vmatpush1.bf16.msra.mxu0 %v6402_v56  ;;  %1426 = vmatprep.subr.bf16.mxu1 %v6403_v57  ;;  %v6459_v36 = vld [vmem:[%s7754_s18 + $0x1f4] ss:$8 sps:$4 sm:$0xff]   ;;  %v6462_v38 = vld [vmem:[%s7754_s18 + $0x1f0] ss:$8 sps:$4 sm:$0xff]   ;;  %v1012_v43 = vld [vmem:[#allocation2 + $0x30] sm:$0xff] }
 0x4f0   : > { %1469 = vmatprep.subr.bf16.mxu0 %v6405_v58  ;;  %v6465_v41 = vld [vmem:[%s7762_s3 + $0x4] ss:$16 sps:$4 sm:$0xff]   ;;  %v6468_v44 = vld [vmem:[%s7762_s3 + $0xc] ss:$16 sps:$4 sm:$0xff]   ;;  %v6463_v46 = vld [vmem:[%s7762_s3] ss:$16 sps:$4 sm:$0xff]   ;;  %v7906_v48 = vpack.c.bf16 %v1012_v43, %v1008_v42 }
 0x4f1   : > { %v6466_v47 = vld [vmem:[%s7762_s3 + $0x8] ss:$16 sps:$4 sm:$0xff]   ;;  %v6471_v49 = vld [vmem:[%s7762_s3 + $0x24] ss:$16 sps:$4 sm:$0xff]   ;;  %v6474_v50 = vld [vmem:[%s7762_s3 + $0x2c] ss:$16 sps:$4 sm:$0xff]  }
 0x4f2   : > { %1427 = vmatpush1.bf16.msra.mxu1 %v6407_v59  ;;  %v6469_v51 = vld [vmem:[%s7762_s3 + $0x20] ss:$16 sps:$4 sm:$0xff]   ;;  %v6472_v52 = vld [vmem:[%s7762_s3 + $0x28] ss:$16 sps:$4 sm:$0xff]   ;;  %v6477_v53 = vld [vmem:[%s7762_s3 + $0x44] ss:$16 sps:$4 sm:$0xff]  }
 0x4f3   : > { %1470 = vmatpush1.bf16.msra.mxu0 %v6408_v60  ;;  %1428 = vmatprep.subr.bf16.mxu1 %v6409_v61  ;;  %v6480_v54 = vld [vmem:[%s7762_s3 + $0x4c] ss:$16 sps:$4 sm:$0xff]   ;;  %v6475_v55 = vld [vmem:[%s7762_s3 + $0x40] ss:$16 sps:$4 sm:$0xff]   ;;  %v6478_v56 = vld [vmem:[%s7762_s3 + $0x48] ss:$16 sps:$4 sm:$0xff]  }
 0x4f4   : > { %1471 = vmatprep.subr.bf16.mxu0 %v6411_v62  ;;  %v6483_v57 = vld [vmem:[%s7762_s3 + $0x64] ss:$16 sps:$4 sm:$0xff]   ;;  %v6486_v58 = vld [vmem:[%s7762_s3 + $0x6c] ss:$16 sps:$4 sm:$0xff]   ;;  %v6481_v59 = vld [vmem:[%s7762_s3 + $0x60] ss:$16 sps:$4 sm:$0xff]  }
 0x4f5   : > { %v6484_v60 = vld [vmem:[%s7762_s3 + $0x68] ss:$16 sps:$4 sm:$0xff]   ;;  %v6489_v61 = vld [vmem:[%s7762_s3 + $0x84] ss:$16 sps:$4 sm:$0xff]   ;;  %v6492_v62 = vld [vmem:[%s7762_s3 + $0x8c] ss:$16 sps:$4 sm:$0xff]  }
 0x4f6   : > { %1429 = vmatpush1.bf16.msra.mxu1 %v6413_v63  ;;  %v6487_v63 = vld [vmem:[%s7762_s3 + $0x80] ss:$16 sps:$4 sm:$0xff]   ;;  %v6522_v19 = vld [vmem:[%s7762_s3 + $0x12c] ss:$16 sps:$4 sm:$0xff]   ;;  %v6520_v22 = vld [vmem:[%s7762_s3 + $0x128] ss:$16 sps:$4 sm:$0xff]  }
 0x4f7   : > { %1472 = vmatpush1.bf16.msra.mxu0 %v6414_v0  ;;  %1430 = vmatprep.subr.bf16.mxu1 %v6415_v1  ;;  %v6490_v0 = vld [vmem:[%s7762_s3 + $0x88] ss:$16 sps:$4 sm:$0xff]   ;;  %v6495_v1 = vld [vmem:[%s7762_s3 + $0xa4] ss:$16 sps:$4 sm:$0xff]   ;;  %v6511_v16 = vld [vmem:[%s7762_s3 + $0x100] ss:$16 sps:$4 sm:$0xff]  }
 0x4f8   : > { %1473 = vmatprep.subr.bf16.mxu0 %v6417_v2  ;;  %v6498_v2 = vld [vmem:[%s7762_s3 + $0xac] ss:$16 sps:$4 sm:$0xff]   ;;  %v6517_v21 = vld [vmem:[%s7762_s3 + $0x120] ss:$16 sps:$4 sm:$0xff]   ;;  %v6549_v39 = vld [vmem:[%s7762_s3 + $0x1c4] ss:$16 sps:$4 sm:$0xff]  }
 0x4f9   : > { %v6552_v40 = vld [vmem:[%s7762_s3 + $0x1cc] ss:$16 sps:$4 sm:$0xff]   ;;  %v6550_v42 = vld [vmem:[%s7762_s3 + $0x1c8] ss:$16 sps:$4 sm:$0xff]   ;;  %v6555_v43 = vld [vmem:[%s7762_s3 + $0x1e4] ss:$16 sps:$4 sm:$0xff]  }
 0x4fa   : > { %1431 = vmatpush1.bf16.msra.mxu1 %v6419_v3  ;;  %v6493_v3 = vld [vmem:[%s7762_s3 + $0xa0] ss:$16 sps:$4 sm:$0xff]  }
 0x4fb   : > { %1474 = vmatpush1.bf16.msra.mxu0 %v6420_v4  ;;  %1432 = vmatprep.subr.bf16.mxu1 %v6421_v5  ;;  %v6496_v4 = vld [vmem:[%s7762_s3 + $0xa8] ss:$16 sps:$4 sm:$0xff]   ;;  %v6501_v5 = vld [vmem:[%s7762_s3 + $0xc4] ss:$16 sps:$4 sm:$0xff]  }
 0x4fc   : > { %1475 = vmatprep.subr.bf16.mxu0 %v6423_v6  ;;  %v6504_v6 = vld [vmem:[%s7762_s3 + $0xcc] ss:$16 sps:$4 sm:$0xff]  }
 0x4fe   : > { %1433 = vmatpush1.bf16.msra.mxu1 %v6425_v7  ;;  %v6499_v7 = vld [vmem:[%s7762_s3 + $0xc0] ss:$16 sps:$4 sm:$0xff]  }
 0x4ff   : > { %1476 = vmatpush1.bf16.msra.mxu0 %v6426_v8  ;;  %1434 = vmatprep.subr.bf16.mxu1 %v6427_v9  ;;  %v6502_v8 = vld [vmem:[%s7762_s3 + $0xc8] ss:$16 sps:$4 sm:$0xff]   ;;  %v6507_v9 = vld [vmem:[%s7762_s3 + $0xe4] ss:$16 sps:$4 sm:$0xff]  }
 0x500   : > { %1477 = vmatprep.subr.bf16.mxu0 %v6429_v11  ;;  %v6510_v11 = vld [vmem:[%s7762_s3 + $0xec] ss:$16 sps:$4 sm:$0xff]  }
 0x502   : > { %1435 = vmatpush1.bf16.msra.mxu1 %v6431_v12  ;;  %v6505_v12 = vld [vmem:[%s7762_s3 + $0xe0] ss:$16 sps:$4 sm:$0xff]  }
 0x503   : > { %1478 = vmatpush1.bf16.msra.mxu0 %v6432_v13  ;;  %1436 = vmatprep.subr.bf16.mxu1 %v6433_v14  ;;  %v6508_v13 = vld [vmem:[%s7762_s3 + $0xe8] ss:$16 sps:$4 sm:$0xff]   ;;  %v6513_v14 = vld [vmem:[%s7762_s3 + $0x104] ss:$16 sps:$4 sm:$0xff]  }
 0x504   : > { %1479 = vmatprep.subr.bf16.mxu0 %v6435_v15  ;;  %v6516_v15 = vld [vmem:[%s7762_s3 + $0x10c] ss:$16 sps:$4 sm:$0xff]  }
 0x506   : > { %1437 = vmatpush1.bf16.msra.mxu1 %v6437_v17  ;;  %v6514_v17 = vld [vmem:[%s7762_s3 + $0x108] ss:$16 sps:$4 sm:$0xff]  }
 0x507   : > { %1480 = vmatpush1.bf16.msra.mxu0 %v6438_v18  ;;  %1438 = vmatprep.subr.bf16.mxu1 %v6439_v23  ;;  %v6519_v18 = vld [vmem:[%s7762_s3 + $0x124] ss:$16 sps:$4 sm:$0xff]  }
 0x508   : > { %1481 = vmatprep.subr.bf16.mxu0 %v6441_v24  ;;  %v6525_v23 = vld [vmem:[%s7762_s3 + $0x144] ss:$16 sps:$4 sm:$0xff]   ;;  %v6528_v24 = vld [vmem:[%s7762_s3 + $0x14c] ss:$16 sps:$4 sm:$0xff]  }
 0x50a   : > { %1439 = vmatpush1.bf16.msra.mxu1 %v6443_v26  ;;  %v6523_v26 = vld [vmem:[%s7762_s3 + $0x140] ss:$16 sps:$4 sm:$0xff]  }
 0x50b   : > { %1482 = vmatpush1.bf16.msra.mxu0 %v6444_v27  ;;  %1440 = vmatprep.subr.bf16.mxu1 %v6445_v28  ;;  %v6526_v27 = vld [vmem:[%s7762_s3 + $0x148] ss:$16 sps:$4 sm:$0xff]   ;;  %v6531_v28 = vld [vmem:[%s7762_s3 + $0x164] ss:$16 sps:$4 sm:$0xff]  }
 0x50c   : > { %1483 = vmatprep.subr.bf16.mxu0 %v6447_v29  ;;  %v6534_v29 = vld [vmem:[%s7762_s3 + $0x16c] ss:$16 sps:$4 sm:$0xff]  }
 0x50e   : > { %1441 = vmatpush1.bf16.msra.mxu1 %v6449_v30  ;;  %v6529_v30 = vld [vmem:[%s7762_s3 + $0x160] ss:$16 sps:$4 sm:$0xff]  }
 0x50f   : > { %1484 = vmatpush1.bf16.msra.mxu0 %v6450_v31  ;;  %1442 = vmatprep.subr.bf16.mxu1 %v6451_v32  ;;  %v6532_v31 = vld [vmem:[%s7762_s3 + $0x168] ss:$16 sps:$4 sm:$0xff]   ;;  %v6537_v32 = vld [vmem:[%s7762_s3 + $0x184] ss:$16 sps:$4 sm:$0xff]  }
 0x510   : > { %1485 = vmatprep.subr.bf16.mxu0 %v6453_v33  ;;  %v6540_v33 = vld [vmem:[%s7762_s3 + $0x18c] ss:$16 sps:$4 sm:$0xff]  }
 0x512   : > { %1443 = vmatpush1.bf16.msra.mxu1 %v6455_v10  ;;  %v6535_v10 = vld [vmem:[%s7762_s3 + $0x180] ss:$16 sps:$4 sm:$0xff]  }
 0x513   : > { %1486 = vmatpush1.bf16.msra.mxu0 %v6456_v34  ;;  %1444 = vmatprep.subr.bf16.mxu1 %v6457_v35  ;;  %v6538_v34 = vld [vmem:[%s7762_s3 + $0x188] ss:$16 sps:$4 sm:$0xff]   ;;  %v6543_v35 = vld [vmem:[%s7762_s3 + $0x1a4] ss:$16 sps:$4 sm:$0xff]  }
 0x514   : > { %1487 = vmatprep.subr.bf16.mxu0 %v6459_v36  ;;  %v6546_v36 = vld [vmem:[%s7762_s3 + $0x1ac] ss:$16 sps:$4 sm:$0xff]  }
 0x516   : > { %1445 = vmatpush1.bf16.msra.mxu1 %v6461_v37  ;;  %v6541_v37 = vld [vmem:[%s7762_s3 + $0x1a0] ss:$16 sps:$4 sm:$0xff]  }
 0x517   : > { %1488 = vmatpush1.bf16.msra.mxu0 %v6462_v38  ;;  %2321 = vmatprep.subr.bf16.mxu1 %v6465_v41  ;;  %v6544_v38 = vld [vmem:[%s7762_s3 + $0x1a8] ss:$16 sps:$4 sm:$0xff]   ;;  %v6547_v41 = vld [vmem:[%s7762_s3 + $0x1c0] ss:$16 sps:$4 sm:$0xff]  }
 0x518   : > { %2403 = vmatprep.subr.bf16.mxu0 %v6468_v44  ;;  %v6558_v44 = vld [vmem:[%s7762_s3 + $0x1ec] ss:$16 sps:$4 sm:$0xff]  }
 0x519   : > { %1447 = vmatmul.mubr.bf16.vlgmr.msra.gmra.mrb[0].mxu1 %v7902_v45 }
 0x51a   : > { %1490 = vmatmul.mubr.bf16.vlgmr.msra.gmra.mrb[0].mxu0 %v7906_v48  ;;  %2322 = vmatpush1.bf16.msra.mxu1 %v6463_v46  ;;  %v6553_v46 = vld [vmem:[%s7762_s3 + $0x1e0] ss:$16 sps:$4 sm:$0xff]  }
 0x51b   : > { %2404 = vmatpush1.bf16.msra.mxu0 %v6466_v47  ;;  %2323 = vmatprep.subr.bf16.mxu1 %v6471_v49  ;;  %v6556_v47 = vld [vmem:[%s7762_s3 + $0x1e8] ss:$16 sps:$4 sm:$0xff]   ;;  %v6561_v49 = vld [vmem:[%s7762_s3 + $0x204] ss:$16 sps:$4 sm:$0xff]  }
 0x51c   : > { %2405 = vmatprep.subr.bf16.mxu0 %v6474_v50  ;;  %2353 = vmatprep.mubr.bf16.mxu1 %v7878_v20  ;;  %v6564_v50 = vld [vmem:[%s7762_s3 + $0x20c] ss:$16 sps:$4 sm:$0xff]  }
 0x51d   : > { %2435 = vmatprep.mubr.bf16.mxu0 %v7878_v20 }
 0x51e   : > { %2324 = vmatpush1.bf16.msra.mxu1 %v6469_v51  ;;  %v6559_v51 = vld [vmem:[%s7762_s3 + $0x200] ss:$16 sps:$4 sm:$0xff]  }
 0x51f   : > { %2406 = vmatpush1.bf16.msra.mxu0 %v6472_v52  ;;  %2325 = vmatprep.subr.bf16.mxu1 %v6477_v53  ;;  %v6562_v52 = vld [vmem:[%s7762_s3 + $0x208] ss:$16 sps:$4 sm:$0xff]   ;;  %v6567_v53 = vld [vmem:[%s7762_s3 + $0x224] ss:$16 sps:$4 sm:$0xff]  }
 0x520   : > { %2407 = vmatprep.subr.bf16.mxu0 %v6480_v54  ;;  %v6570_v54 = vld [vmem:[%s7762_s3 + $0x22c] ss:$16 sps:$4 sm:$0xff]  }
 0x522   : > { %2326 = vmatpush1.bf16.msra.mxu1 %v6475_v55  ;;  %v6565_v55 = vld [vmem:[%s7762_s3 + $0x220] ss:$16 sps:$4 sm:$0xff]  }
 0x523   : > { %2408 = vmatpush1.bf16.msra.mxu0 %v6478_v56  ;;  %2327 = vmatprep.subr.bf16.mxu1 %v6483_v57  ;;  %v6568_v56 = vld [vmem:[%s7762_s3 + $0x228] ss:$16 sps:$4 sm:$0xff]   ;;  %v6573_v57 = vld [vmem:[%s7762_s3 + $0x244] ss:$16 sps:$4 sm:$0xff]  }
 0x524   : > { %2409 = vmatprep.subr.bf16.mxu0 %v6486_v58  ;;  %v6576_v58 = vld [vmem:[%s7762_s3 + $0x24c] ss:$16 sps:$4 sm:$0xff]  }
 0x526   : > { %2328 = vmatpush1.bf16.msra.mxu1 %v6481_v59  ;;  %v6571_v59 = vld [vmem:[%s7762_s3 + $0x240] ss:$16 sps:$4 sm:$0xff]  }
 0x527   : > { %2410 = vmatpush1.bf16.msra.mxu0 %v6484_v60  ;;  %2329 = vmatprep.subr.bf16.mxu1 %v6489_v61  ;;  %v6574_v60 = vld [vmem:[%s7762_s3 + $0x248] ss:$16 sps:$4 sm:$0xff]   ;;  %v6579_v61 = vld [vmem:[%s7762_s3 + $0x264] ss:$16 sps:$4 sm:$0xff]  }
 0x528   : > { %2411 = vmatprep.subr.bf16.mxu0 %v6492_v62  ;;  %v6582_v62 = vld [vmem:[%s7762_s3 + $0x26c] ss:$16 sps:$4 sm:$0xff]  }
 0x52a   : > { %2330 = vmatpush1.bf16.msra.mxu1 %v6487_v63  ;;  %v6577_v63 = vld [vmem:[%s7762_s3 + $0x260] ss:$16 sps:$4 sm:$0xff]  }
 0x52b   : > { %2412 = vmatpush1.bf16.msra.mxu0 %v6490_v0  ;;  %2331 = vmatprep.subr.bf16.mxu1 %v6495_v1  ;;  %v6580_v0 = vld [vmem:[%s7762_s3 + $0x268] ss:$16 sps:$4 sm:$0xff]   ;;  %v6585_v1 = vld [vmem:[%s7762_s3 + $0x284] ss:$16 sps:$4 sm:$0xff]  }
 0x52c   : > { %2413 = vmatprep.subr.bf16.mxu0 %v6498_v2  ;;  %v6588_v2 = vld [vmem:[%s7762_s3 + $0x28c] ss:$16 sps:$4 sm:$0xff]  }
 0x52e   : > { %2332 = vmatpush1.bf16.msra.mxu1 %v6493_v3  ;;  %v6583_v3 = vld [vmem:[%s7762_s3 + $0x280] ss:$16 sps:$4 sm:$0xff]  }
 0x52f   : > { %2414 = vmatpush1.bf16.msra.mxu0 %v6496_v4  ;;  %2333 = vmatprep.subr.bf16.mxu1 %v6501_v5  ;;  %v6586_v4 = vld [vmem:[%s7762_s3 + $0x288] ss:$16 sps:$4 sm:$0xff]   ;;  %v6591_v5 = vld [vmem:[%s7762_s3 + $0x2a4] ss:$16 sps:$4 sm:$0xff]  }
 0x530   : > { %2415 = vmatprep.subr.bf16.mxu0 %v6504_v6  ;;  %v6594_v6 = vld [vmem:[%s7762_s3 + $0x2ac] ss:$16 sps:$4 sm:$0xff]  }
 0x532   : > { %2334 = vmatpush1.bf16.msra.mxu1 %v6499_v7  ;;  %v6589_v7 = vld [vmem:[%s7762_s3 + $0x2a0] ss:$16 sps:$4 sm:$0xff]  }
 0x533   : > { %2416 = vmatpush1.bf16.msra.mxu0 %v6502_v8  ;;  %2335 = vmatprep.subr.bf16.mxu1 %v6507_v9  ;;  %v6592_v8 = vld [vmem:[%s7762_s3 + $0x2a8] ss:$16 sps:$4 sm:$0xff]   ;;  %v6597_v9 = vld [vmem:[%s7762_s3 + $0x2c4] ss:$16 sps:$4 sm:$0xff]  }
 0x534   : > { %2417 = vmatprep.subr.bf16.mxu0 %v6510_v11  ;;  %v6600_v11 = vld [vmem:[%s7762_s3 + $0x2cc] ss:$16 sps:$4 sm:$0xff]  }
 0x536   : > { %2336 = vmatpush1.bf16.msra.mxu1 %v6505_v12  ;;  %v6595_v12 = vld [vmem:[%s7762_s3 + $0x2c0] ss:$16 sps:$4 sm:$0xff]  }
 0x537   : > { %2418 = vmatpush1.bf16.msra.mxu0 %v6508_v13  ;;  %2337 = vmatprep.subr.bf16.mxu1 %v6513_v14  ;;  %v6598_v13 = vld [vmem:[%s7762_s3 + $0x2c8] ss:$16 sps:$4 sm:$0xff]   ;;  %v6603_v14 = vld [vmem:[%s7762_s3 + $0x2e4] ss:$16 sps:$4 sm:$0xff]  }
 0x538   : > { %2419 = vmatprep.subr.bf16.mxu0 %v6516_v15  ;;  %v6606_v15 = vld [vmem:[%s7762_s3 + $0x2ec] ss:$16 sps:$4 sm:$0xff]  }
 0x53a   : > { %2338 = vmatpush1.bf16.msra.mxu1 %v6511_v16  ;;  %v6601_v16 = vld [vmem:[%s7762_s3 + $0x2e0] ss:$16 sps:$4 sm:$0xff]  }
 0x53b   : > { %2420 = vmatpush1.bf16.msra.mxu0 %v6514_v17  ;;  %2339 = vmatprep.subr.bf16.mxu1 %v6519_v18  ;;  %v6604_v17 = vld [vmem:[%s7762_s3 + $0x2e8] ss:$16 sps:$4 sm:$0xff]   ;;  %v6609_v18 = vld [vmem:[%s7762_s3 + $0x304] ss:$16 sps:$4 sm:$0xff]  }
 0x53c   : > { %2421 = vmatprep.subr.bf16.mxu0 %v6522_v19  ;;  %v6612_v19 = vld [vmem:[%s7762_s3 + $0x30c] ss:$16 sps:$4 sm:$0xff]  }
 0x53e   : > { %2340 = vmatpush1.bf16.msra.mxu1 %v6517_v21  ;;  %v6607_v21 = vld [vmem:[%s7762_s3 + $0x300] ss:$16 sps:$4 sm:$0xff]  }
 0x53f   : > { %2422 = vmatpush1.bf16.msra.mxu0 %v6520_v22  ;;  %2341 = vmatprep.subr.bf16.mxu1 %v6525_v23  ;;  %v6610_v22 = vld [vmem:[%s7762_s3 + $0x308] ss:$16 sps:$4 sm:$0xff]   ;;  %v6615_v23 = vld [vmem:[%s7762_s3 + $0x324] ss:$16 sps:$4 sm:$0xff]  }
 0x540   : > { %2423 = vmatprep.subr.bf16.mxu0 %v6528_v24  ;;  %v6618_v24 = vld [vmem:[%s7762_s3 + $0x32c] ss:$16 sps:$4 sm:$0xff]  }
 0x542   : > { %2342 = vmatpush1.bf16.msra.mxu1 %v6523_v26  ;;  %v6613_v26 = vld [vmem:[%s7762_s3 + $0x320] ss:$16 sps:$4 sm:$0xff]  }
 0x543   : > { %2424 = vmatpush1.bf16.msra.mxu0 %v6526_v27  ;;  %2343 = vmatprep.subr.bf16.mxu1 %v6531_v28  ;;  %v6616_v27 = vld [vmem:[%s7762_s3 + $0x328] ss:$16 sps:$4 sm:$0xff]   ;;  %v6621_v28 = vld [vmem:[%s7762_s3 + $0x344] ss:$16 sps:$4 sm:$0xff]  }
 0x544   : > { %2425 = vmatprep.subr.bf16.mxu0 %v6534_v29  ;;  %v6624_v29 = vld [vmem:[%s7762_s3 + $0x34c] ss:$16 sps:$4 sm:$0xff]  }
 0x546   : > { %2344 = vmatpush1.bf16.msra.mxu1 %v6529_v30  ;;  %v6619_v30 = vld [vmem:[%s7762_s3 + $0x340] ss:$16 sps:$4 sm:$0xff]  }
 0x547   : > { %2426 = vmatpush1.bf16.msra.mxu0 %v6532_v31  ;;  %2345 = vmatprep.subr.bf16.mxu1 %v6537_v32  ;;  %v6622_v31 = vld [vmem:[%s7762_s3 + $0x348] ss:$16 sps:$4 sm:$0xff]   ;;  %v6627_v32 = vld [vmem:[%s7762_s3 + $0x364] ss:$16 sps:$4 sm:$0xff]  }
 0x548   : > { %2427 = vmatprep.subr.bf16.mxu0 %v6540_v33  ;;  %v6630_v33 = vld [vmem:[%s7762_s3 + $0x36c] ss:$16 sps:$4 sm:$0xff]  }
 0x54a   : > { %2346 = vmatpush1.bf16.msra.mxu1 %v6535_v10  ;;  %v6625_v10 = vld [vmem:[%s7762_s3 + $0x360] ss:$16 sps:$4 sm:$0xff]  }
 0x54b   : > { %2428 = vmatpush1.bf16.msra.mxu0 %v6538_v34  ;;  %2347 = vmatprep.subr.bf16.mxu1 %v6543_v35  ;;  %v6628_v34 = vld [vmem:[%s7762_s3 + $0x368] ss:$16 sps:$4 sm:$0xff]   ;;  %v6633_v35 = vld [vmem:[%s7762_s3 + $0x384] ss:$16 sps:$4 sm:$0xff]  }
 0x54c   : > { %2429 = vmatprep.subr.bf16.mxu0 %v6546_v36  ;;  %v6636_v36 = vld [vmem:[%s7762_s3 + $0x38c] ss:$16 sps:$4 sm:$0xff]  }
 0x54e   : > { %2348 = vmatpush1.bf16.msra.mxu1 %v6541_v37  ;;  %v6631_v37 = vld [vmem:[%s7762_s3 + $0x380] ss:$16 sps:$4 sm:$0xff]  }
 0x54f   : > { %2430 = vmatpush1.bf16.msra.mxu0 %v6544_v38  ;;  %2349 = vmatprep.subr.bf16.mxu1 %v6549_v39  ;;  %v6634_v38 = vld [vmem:[%s7762_s3 + $0x388] ss:$16 sps:$4 sm:$0xff]   ;;  %v6639_v39 = vld [vmem:[%s7762_s3 + $0x3a4] ss:$16 sps:$4 sm:$0xff]  }
 0x550   : > { %2431 = vmatprep.subr.bf16.mxu0 %v6552_v40  ;;  %v6642_v40 = vld [vmem:[%s7762_s3 + $0x3ac] ss:$16 sps:$4 sm:$0xff]  }
 0x552   : > { %2350 = vmatpush1.bf16.msra.mxu1 %v6547_v41  ;;  %v6637_v41 = vld [vmem:[%s7762_s3 + $0x3a0] ss:$16 sps:$4 sm:$0xff]  }
 0x553   : > { %2432 = vmatpush1.bf16.msra.mxu0 %v6550_v42  ;;  %2351 = vmatprep.subr.bf16.mxu1 %v6555_v43  ;;  %v6640_v42 = vld [vmem:[%s7762_s3 + $0x3a8] ss:$16 sps:$4 sm:$0xff]   ;;  %v6645_v43 = vld [vmem:[%s7762_s3 + $0x3c4] ss:$16 sps:$4 sm:$0xff]  }
 0x554   : > { %2433 = vmatprep.subr.bf16.mxu0 %v6558_v44  ;;  %v6648_v44 = vld [vmem:[%s7762_s3 + $0x3cc] ss:$16 sps:$4 sm:$0xff]  }
 0x556   : > { %2352 = vmatpush1.bf16.msra.mxu1 %v6553_v46  ;;  %v6643_v46 = vld [vmem:[%s7762_s3 + $0x3c0] ss:$16 sps:$4 sm:$0xff]  }
 0x557   : > { %2434 = vmatpush1.bf16.msra.mxu0 %v6556_v47  ;;  %2362 = vmatprep.subr.bf16.mxu1 %v6561_v49  ;;  %v6646_v47 = vld [vmem:[%s7762_s3 + $0x3c8] ss:$16 sps:$4 sm:$0xff]   ;;  %v6651_v49 = vld [vmem:[%s7762_s3 + $0x3e4] ss:$16 sps:$4 sm:$0xff]  }
 0x558   : > { %2444 = vmatprep.subr.bf16.mxu0 %v6564_v50  ;;  %v6654_v50 = vld [vmem:[%s7762_s3 + $0x3ec] ss:$16 sps:$4 sm:$0xff]  }
 0x559   : > { %2354 = vmatmul.mubr.bf16.vlgmr.msra.gmra.mrb[4].mxu1 %v7902_v45 }
 0x55a   : > { %2436 = vmatmul.mubr.bf16.vlgmr.msra.gmra.mrb[4].mxu0 %v7902_v45  ;;  %2363 = vmatpush1.bf16.msra.mxu1 %v6559_v51  ;;  %v6649_v51 = vld [vmem:[%s7762_s3 + $0x3e0] ss:$16 sps:$4 sm:$0xff]  }
 0x55b   : > { %2445 = vmatpush1.bf16.msra.mxu0 %v6562_v52  ;;  %2364 = vmatprep.subr.bf16.mxu1 %v6567_v53  ;;  %v6652_v52 = vld [vmem:[%s7762_s3 + $0x3e8] ss:$16 sps:$4 sm:$0xff]   ;;  %v6657_v53 = vld [vmem:[%s7762_s3 + $0x404] ss:$16 sps:$4 sm:$0xff]  }
 0x55c   : > { %2446 = vmatprep.subr.bf16.mxu0 %v6570_v54  ;;  %2394 = vmatprep.mubr.bf16.mxu1 %v7882_v25  ;;  %v6660_v54 = vld [vmem:[%s7762_s3 + $0x40c] ss:$16 sps:$4 sm:$0xff]  }
 0x55d   : > { %2476 = vmatprep.mubr.bf16.mxu0 %v7882_v25 }
 0x55e   : > { %2365 = vmatpush1.bf16.msra.mxu1 %v6565_v55  ;;  %v6655_v55 = vld [vmem:[%s7762_s3 + $0x400] ss:$16 sps:$4 sm:$0xff]  }
 0x55f   : > { %2447 = vmatpush1.bf16.msra.mxu0 %v6568_v56  ;;  %2366 = vmatprep.subr.bf16.mxu1 %v6573_v57  ;;  %v6658_v56 = vld [vmem:[%s7762_s3 + $0x408] ss:$16 sps:$4 sm:$0xff]   ;;  %v6663_v57 = vld [vmem:[%s7762_s3 + $0x424] ss:$16 sps:$4 sm:$0xff]  }
 0x560   : > { %2448 = vmatprep.subr.bf16.mxu0 %v6576_v58  ;;  %v6666_v58 = vld [vmem:[%s7762_s3 + $0x42c] ss:$16 sps:$4 sm:$0xff]  }
 0x562   : > { %2367 = vmatpush1.bf16.msra.mxu1 %v6571_v59  ;;  %v2619_v59 = vrot.slane %v7878_v20, 4  ;;  %v6667_v20 = vld [vmem:[%s7762_s3 + $0x440] ss:$16 sps:$4 sm:$0xff]  }
 0x563   : > { %2449 = vmatpush1.bf16.msra.mxu0 %v6574_v60  ;;  %2368 = vmatprep.subr.bf16.mxu1 %v6579_v61  ;;  %v6661_v60 = vld [vmem:[%s7762_s3 + $0x420] ss:$16 sps:$4 sm:$0xff]   ;;  %v6664_v61 = vld [vmem:[%s7762_s3 + $0x428] ss:$16 sps:$4 sm:$0xff]  }
 0x564   : > { %2450 = vmatprep.subr.bf16.mxu0 %v6582_v62  ;;  %v6669_v62 = vld [vmem:[%s7762_s3 + $0x444] ss:$16 sps:$4 sm:$0xff]  }
 0x566   : > { %2369 = vmatpush1.bf16.msra.mxu1 %v6577_v63  ;;  %v6672_v63 = vld [vmem:[%s7762_s3 + $0x44c] ss:$16 sps:$4 sm:$0xff]  }
 0x567   : > { %2451 = vmatpush1.bf16.msra.mxu0 %v6580_v0  ;;  %2370 = vmatprep.subr.bf16.mxu1 %v6585_v1  ;;  %v6670_v0 = vld [vmem:[%s7762_s3 + $0x448] ss:$16 sps:$4 sm:$0xff]   ;;  %v6675_v1 = vld [vmem:[%s7762_s3 + $0x464] ss:$16 sps:$4 sm:$0xff]  }
 0x568   : > { %2452 = vmatprep.subr.bf16.mxu0 %v6588_v2  ;;  %v6678_v2 = vld [vmem:[%s7762_s3 + $0x46c] ss:$16 sps:$4 sm:$0xff]  }
 0x56a   : > { %2371 = vmatpush1.bf16.msra.mxu1 %v6583_v3  ;;  %v6673_v3 = vld [vmem:[%s7762_s3 + $0x460] ss:$16 sps:$4 sm:$0xff]  }
 0x56b   : > { %2453 = vmatpush1.bf16.msra.mxu0 %v6586_v4  ;;  %2372 = vmatprep.subr.bf16.mxu1 %v6591_v5  ;;  %v6676_v4 = vld [vmem:[%s7762_s3 + $0x468] ss:$16 sps:$4 sm:$0xff]   ;;  %v6681_v5 = vld [vmem:[%s7762_s3 + $0x484] ss:$16 sps:$4 sm:$0xff]  }
 0x56c   : > { %2454 = vmatprep.subr.bf16.mxu0 %v6594_v6  ;;  %v6684_v6 = vld [vmem:[%s7762_s3 + $0x48c] ss:$16 sps:$4 sm:$0xff]  }
 0x56e   : > { %2373 = vmatpush1.bf16.msra.mxu1 %v6589_v7  ;;  %v6679_v7 = vld [vmem:[%s7762_s3 + $0x480] ss:$16 sps:$4 sm:$0xff]  }
 0x56f   : > { %2455 = vmatpush1.bf16.msra.mxu0 %v6592_v8  ;;  %2374 = vmatprep.subr.bf16.mxu1 %v6597_v9  ;;  %v6682_v8 = vld [vmem:[%s7762_s3 + $0x488] ss:$16 sps:$4 sm:$0xff]   ;;  %v6687_v9 = vld [vmem:[%s7762_s3 + $0x4a4] ss:$16 sps:$4 sm:$0xff]  }
 0x570   : > { %2456 = vmatprep.subr.bf16.mxu0 %v6600_v11  ;;  %v6690_v11 = vld [vmem:[%s7762_s3 + $0x4ac] ss:$16 sps:$4 sm:$0xff]  }
 0x572   : > { %2375 = vmatpush1.bf16.msra.mxu1 %v6595_v12  ;;  %v6685_v12 = vld [vmem:[%s7762_s3 + $0x4a0] ss:$16 sps:$4 sm:$0xff]  }
 0x573   : > { %2457 = vmatpush1.bf16.msra.mxu0 %v6598_v13  ;;  %2376 = vmatprep.subr.bf16.mxu1 %v6603_v14  ;;  %v6688_v13 = vld [vmem:[%s7762_s3 + $0x4a8] ss:$16 sps:$4 sm:$0xff]   ;;  %v6693_v14 = vld [vmem:[%s7762_s3 + $0x4c4] ss:$16 sps:$4 sm:$0xff]  }
 0x574   : > { %2458 = vmatprep.subr.bf16.mxu0 %v6606_v15  ;;  %v6696_v15 = vld [vmem:[%s7762_s3 + $0x4cc] ss:$16 sps:$4 sm:$0xff]  }
 0x576   : > { %2377 = vmatpush1.bf16.msra.mxu1 %v6601_v16  ;;  %v6691_v16 = vld [vmem:[%s7762_s3 + $0x4c0] ss:$16 sps:$4 sm:$0xff]  }
 0x577   : > { %2459 = vmatpush1.bf16.msra.mxu0 %v6604_v17  ;;  %2378 = vmatprep.subr.bf16.mxu1 %v6609_v18  ;;  %v6694_v17 = vld [vmem:[%s7762_s3 + $0x4c8] ss:$16 sps:$4 sm:$0xff]   ;;  %v6699_v18 = vld [vmem:[%s7762_s3 + $0x4e4] ss:$16 sps:$4 sm:$0xff]  }
 0x578   : > { %2460 = vmatprep.subr.bf16.mxu0 %v6612_v19  ;;  %v6702_v19 = vld [vmem:[%s7762_s3 + $0x4ec] ss:$16 sps:$4 sm:$0xff]  }
 0x57a   : > { %2379 = vmatpush1.bf16.msra.mxu1 %v6607_v21  ;;  %v6697_v21 = vld [vmem:[%s7762_s3 + $0x4e0] ss:$16 sps:$4 sm:$0xff]  }
 0x57b   : > { %2461 = vmatpush1.bf16.msra.mxu0 %v6610_v22  ;;  %2380 = vmatprep.subr.bf16.mxu1 %v6615_v23  ;;  %v6700_v22 = vld [vmem:[%s7762_s3 + $0x4e8] ss:$16 sps:$4 sm:$0xff]   ;;  %v6705_v23 = vld [vmem:[%s7762_s3 + $0x504] ss:$16 sps:$4 sm:$0xff]  }
 0x57c   : > { %2462 = vmatprep.subr.bf16.mxu0 %v6618_v24  ;;  %v6708_v24 = vld [vmem:[%s7762_s3 + $0x50c] ss:$16 sps:$4 sm:$0xff]  }
 0x57e   : > { %2381 = vmatpush1.bf16.msra.mxu1 %v6613_v26  ;;  %v6703_v26 = vld [vmem:[%s7762_s3 + $0x500] ss:$16 sps:$4 sm:$0xff]  }
 0x57f   : > { %2463 = vmatpush1.bf16.msra.mxu0 %v6616_v27  ;;  %2382 = vmatprep.subr.bf16.mxu1 %v6621_v28  ;;  %v6706_v27 = vld [vmem:[%s7762_s3 + $0x508] ss:$16 sps:$4 sm:$0xff]   ;;  %v6711_v28 = vld [vmem:[%s7762_s3 + $0x524] ss:$16 sps:$4 sm:$0xff]  }
 0x580   : > { %2464 = vmatprep.subr.bf16.mxu0 %v6624_v29  ;;  %v6714_v29 = vld [vmem:[%s7762_s3 + $0x52c] ss:$16 sps:$4 sm:$0xff]  }
 0x582   : > { %2383 = vmatpush1.bf16.msra.mxu1 %v6619_v30  ;;  %v6709_v30 = vld [vmem:[%s7762_s3 + $0x520] ss:$16 sps:$4 sm:$0xff]  }
 0x583   : > { %2465 = vmatpush1.bf16.msra.mxu0 %v6622_v31  ;;  %2384 = vmatprep.subr.bf16.mxu1 %v6627_v32  ;;  %v6712_v31 = vld [vmem:[%s7762_s3 + $0x528] ss:$16 sps:$4 sm:$0xff]   ;;  %v6717_v32 = vld [vmem:[%s7762_s3 + $0x544] ss:$16 sps:$4 sm:$0xff]  }
 0x584   : > { %2466 = vmatprep.subr.bf16.mxu0 %v6630_v33  ;;  %v6720_v33 = vld [vmem:[%s7762_s3 + $0x54c] ss:$16 sps:$4 sm:$0xff]  }
 0x586   : > { %2385 = vmatpush1.bf16.msra.mxu1 %v6625_v10  ;;  %v6715_v10 = vld [vmem:[%s7762_s3 + $0x540] ss:$16 sps:$4 sm:$0xff]  }
 0x587   : > { %2467 = vmatpush1.bf16.msra.mxu0 %v6628_v34  ;;  %2386 = vmatprep.subr.bf16.mxu1 %v6633_v35  ;;  %v6718_v34 = vld [vmem:[%s7762_s3 + $0x548] ss:$16 sps:$4 sm:$0xff]   ;;  %v6723_v35 = vld [vmem:[%s7762_s3 + $0x564] ss:$16 sps:$4 sm:$0xff]  }
 0x588   : > { %2468 = vmatprep.subr.bf16.mxu0 %v6636_v36  ;;  %v6726_v36 = vld [vmem:[%s7762_s3 + $0x56c] ss:$16 sps:$4 sm:$0xff]  }
 0x58a   : > { %2387 = vmatpush1.bf16.msra.mxu1 %v6631_v37  ;;  %v6721_v37 = vld [vmem:[%s7762_s3 + $0x560] ss:$16 sps:$4 sm:$0xff]  }
 0x58b   : > { %2469 = vmatpush1.bf16.msra.mxu0 %v6634_v38  ;;  %2388 = vmatprep.subr.bf16.mxu1 %v6639_v39  ;;  %v6724_v38 = vld [vmem:[%s7762_s3 + $0x568] ss:$16 sps:$4 sm:$0xff]   ;;  %v6729_v39 = vld [vmem:[%s7762_s3 + $0x584] ss:$16 sps:$4 sm:$0xff]  }
 0x58c   : > { %2470 = vmatprep.subr.bf16.mxu0 %v6642_v40  ;;  %v6732_v40 = vld [vmem:[%s7762_s3 + $0x58c] ss:$16 sps:$4 sm:$0xff]  }
 0x58e   : > { %2389 = vmatpush1.bf16.msra.mxu1 %v6637_v41  ;;  %v6727_v41 = vld [vmem:[%s7762_s3 + $0x580] ss:$16 sps:$4 sm:$0xff]  }
 0x58f   : > { %2471 = vmatpush1.bf16.msra.mxu0 %v6640_v42  ;;  %2390 = vmatprep.subr.bf16.mxu1 %v6645_v43  ;;  %v6730_v42 = vld [vmem:[%s7762_s3 + $0x588] ss:$16 sps:$4 sm:$0xff]   ;;  %v6735_v43 = vld [vmem:[%s7762_s3 + $0x5a4] ss:$16 sps:$4 sm:$0xff]  }
 0x590   : > { %2472 = vmatprep.subr.bf16.mxu0 %v6648_v44  ;;  %v6738_v44 = vld [vmem:[%s7762_s3 + $0x5ac] ss:$16 sps:$4 sm:$0xff]  }
 0x592   : > { %2391 = vmatpush1.bf16.msra.mxu1 %v6643_v46  ;;  %v6733_v46 = vld [vmem:[%s7762_s3 + $0x5a0] ss:$16 sps:$4 sm:$0xff]  }
 0x593   : > { %2473 = vmatpush1.bf16.msra.mxu0 %v6646_v47  ;;  %2392 = vmatprep.subr.bf16.mxu1 %v6651_v49  ;;  %v6736_v47 = vld [vmem:[%s7762_s3 + $0x5a8] ss:$16 sps:$4 sm:$0xff]   ;;  %v6741_v49 = vld [vmem:[%s7762_s3 + $0x5c4] ss:$16 sps:$4 sm:$0xff]  }
 0x594   : > { %2474 = vmatprep.subr.bf16.mxu0 %v6654_v50  ;;  %v6744_v50 = vld [vmem:[%s7762_s3 + $0x5cc] ss:$16 sps:$4 sm:$0xff]  }
 0x596   : > { %2393 = vmatpush1.bf16.msra.mxu1 %v6649_v51  ;;  %v6739_v51 = vld [vmem:[%s7762_s3 + $0x5c0] ss:$16 sps:$4 sm:$0xff]  }
 0x597   : > { %2475 = vmatpush1.bf16.msra.mxu0 %v6652_v52  ;;  %3266 = vmatprep.subr.bf16.mxu1 %v6657_v53  ;;  %v6742_v52 = vld [vmem:[%s7762_s3 + $0x5c8] ss:$16 sps:$4 sm:$0xff]   ;;  %v6747_v53 = vld [vmem:[%s7762_s3 + $0x5e4] ss:$16 sps:$4 sm:$0xff]  }
 0x598   : > { %3348 = vmatprep.subr.bf16.mxu0 %v6660_v54  ;;  %v6750_v54 = vld [vmem:[%s7762_s3 + $0x5ec] ss:$16 sps:$4 sm:$0xff]  }
 0x599   : > { %2395 = vmatmul.mubr.bf16.vlgmr.msra.gmra.mrb[4].mxu1 %v7906_v48 }
 0x59a   : > { %2477 = vmatmul.mubr.bf16.vlgmr.msra.gmra.mrb[4].mxu0 %v7906_v48  ;;  %3267 = vmatpush1.bf16.msra.mxu1 %v6655_v55  ;;  %v6745_v55 = vld [vmem:[%s7762_s3 + $0x5e0] ss:$16 sps:$4 sm:$0xff]  }
 0x59b   : > { %3349 = vmatpush1.bf16.msra.mxu0 %v6658_v56  ;;  %3268 = vmatprep.subr.bf16.mxu1 %v6663_v57  ;;  %v6748_v56 = vld [vmem:[%s7762_s3 + $0x5e8] ss:$16 sps:$4 sm:$0xff]   ;;  %v6753_v57 = vld [vmem:[%s7762_s3 + $0x604] ss:$16 sps:$4 sm:$0xff]  }
 0x59c   : > { %3350 = vmatprep.subr.bf16.mxu0 %v6666_v58  ;;  %3298 = vmatprep.mubr.bf16.mxu1 %v2619_v59  ;;  %v6756_v58 = vld [vmem:[%s7762_s3 + $0x60c] ss:$16 sps:$4 sm:$0xff]  }
 0x59d   : > { %3380 = vmatprep.mubr.bf16.mxu0 %v2619_v59  ;;  %v6751_v59 = vld [vmem:[%s7762_s3 + $0x600] ss:$16 sps:$4 sm:$0xff]  }
 0x59e   : > { %3269 = vmatpush1.bf16.msra.mxu1 %v6661_v60  ;;  %v6754_v60 = vld [vmem:[%s7762_s3 + $0x608] ss:$16 sps:$4 sm:$0xff]  }
 0x59f   : > { %3351 = vmatpush1.bf16.msra.mxu0 %v6664_v61  ;;  %3270 = vmatprep.subr.bf16.mxu1 %v6669_v62  ;;  %v2618_v61 = vrot.slane %v7902_v45, 4  ;;  %v6759_v62 = vld [vmem:[%s7762_s3 + $0x624] ss:$16 sps:$4 sm:$0xff]   ;;  %v6763_v45 = vld [vmem:[%s7762_s3 + $0x640] ss:$16 sps:$4 sm:$0xff]  }
 0x5a0   : > { %3352 = vmatprep.subr.bf16.mxu0 %v6672_v63  ;;  %v6762_v63 = vld [vmem:[%s7762_s3 + $0x62c] ss:$16 sps:$4 sm:$0xff]  }
 0x5a2   : > { %3271 = vmatpush1.bf16.msra.mxu1 %v6667_v20  ;;  %v6757_v20 = vld [vmem:[%s7762_s3 + $0x620] ss:$16 sps:$4 sm:$0xff]  }
 0x5a3   : > { %3353 = vmatpush1.bf16.msra.mxu0 %v6670_v0  ;;  %3272 = vmatprep.subr.bf16.mxu1 %v6675_v1  ;;  %v6760_v0 = vld [vmem:[%s7762_s3 + $0x628] ss:$16 sps:$4 sm:$0xff]   ;;  %v2621_v1 = vrot.slane %v7882_v25, 4  ;;  %v1084_v25 = vlaneseq }
 0x5a4   : > { %3354 = vmatprep.subr.bf16.mxu0 %v6678_v2  ;;  %v6765_v2 = vld [vmem:[%s7762_s3 + $0x644] ss:$16 sps:$4 sm:$0xff]  }
 0x5a6   : > { %3273 = vmatpush1.bf16.msra.mxu1 %v6673_v3  ;;  %v6768_v3 = vld [vmem:[%s7762_s3 + $0x64c] ss:$16 sps:$4 sm:$0xff]  }
 0x5a7   : > { %3355 = vmatpush1.bf16.msra.mxu0 %v6676_v4  ;;  %3274 = vmatprep.subr.bf16.mxu1 %v6681_v5  ;;  %v6766_v4 = vld [vmem:[%s7762_s3 + $0x648] ss:$16 sps:$4 sm:$0xff]   ;;  %v6771_v5 = vld [vmem:[%s7762_s3 + $0x664] ss:$16 sps:$4 sm:$0xff]  }
 0x5a8   : > { %3356 = vmatprep.subr.bf16.mxu0 %v6684_v6  ;;  %v6774_v6 = vld [vmem:[%s7762_s3 + $0x66c] ss:$16 sps:$4 sm:$0xff]  }
 0x5aa   : > { %3275 = vmatpush1.bf16.msra.mxu1 %v6679_v7  ;;  %v6769_v7 = vld [vmem:[%s7762_s3 + $0x660] ss:$16 sps:$4 sm:$0xff]  }
 0x5ab   : > { %3357 = vmatpush1.bf16.msra.mxu0 %v6682_v8  ;;  %3276 = vmatprep.subr.bf16.mxu1 %v6687_v9  ;;  %v6772_v8 = vld [vmem:[%s7762_s3 + $0x668] ss:$16 sps:$4 sm:$0xff]   ;;  %v6777_v9 = vld [vmem:[%s7762_s3 + $0x684] ss:$16 sps:$4 sm:$0xff]  }
 0x5ac   : > { %3358 = vmatprep.subr.bf16.mxu0 %v6690_v11  ;;  %v6780_v11 = vld [vmem:[%s7762_s3 + $0x68c] ss:$16 sps:$4 sm:$0xff]  }
 0x5ae   : > { %3277 = vmatpush1.bf16.msra.mxu1 %v6685_v12  ;;  %v1085_v12 = vshrl.u32 %v1084_v25, 7  ;;  %v6811_v25 = vld [vmem:[%s7762_s3 + $0x740] ss:$16 sps:$4 sm:$0xff]  }
 0x5af   : > { %3359 = vmatpush1.bf16.msra.mxu0 %v6688_v13  ;;  %3278 = vmatprep.subr.bf16.mxu1 %v6693_v14  ;;  %v6775_v13 = vld [vmem:[%s7762_s3 + $0x680] ss:$16 sps:$4 sm:$0xff]   ;;  %v6778_v14 = vld [vmem:[%s7762_s3 + $0x688] ss:$16 sps:$4 sm:$0xff]  }
 0x5b0   : > { %3360 = vmatprep.subr.bf16.mxu0 %v6696_v15  ;;  %v1082_v15 = vld [vmem:[%s7760_s25] sm:$0x3] }
 0x5b2   : > { %3279 = vmatpush1.bf16.msra.mxu1 %v6691_v16  ;;  %v1086_v16 = vsub.s32 0, %v1085_v12 }
 0x5b3   : > { %3361 = vmatpush1.bf16.msra.mxu0 %v6694_v17  ;;  %3280 = vmatprep.subr.bf16.mxu1 %v6699_v18  ;;  %v6783_v17 = vld [vmem:[%s7762_s3 + $0x6a4] ss:$16 sps:$4 sm:$0xff]   ;;  %v6786_v18 = vld [vmem:[%s7762_s3 + $0x6ac] ss:$16 sps:$4 sm:$0xff]  }
 0x5b4   : > { %3362 = vmatprep.subr.bf16.mxu0 %v6702_v19  ;;  %v1090_v19 = vsub.s32 1, %v1085_v12 }
 0x5b6   : > { %3281 = vmatpush1.bf16.msra.mxu1 %v6697_v21  ;;  %v6781_v21 = vld [vmem:[%s7762_s3 + $0x6a0] ss:$16 sps:$4 sm:$0xff]  }
 0x5b7   : > { %3363 = vmatpush1.bf16.msra.mxu0 %v6700_v22  ;;  %3282 = vmatprep.subr.bf16.mxu1 %v6705_v23  ;;  %v6784_v22 = vld [vmem:[%s7762_s3 + $0x6a8] ss:$16 sps:$4 sm:$0xff]   ;;  %v1087_v23 = vrot.slane %v1082_v15, %v1086_v16 }
 0x5b8   : > { %3364 = vmatprep.subr.bf16.mxu0 %v6708_v24  ;;  %v6789_v24 = vld [vmem:[%s7762_s3 + $0x6c4] ss:$16 sps:$4 sm:$0xff]   ;;  %v6820_v16 = vld [vmem:[%s7762_s3 + $0x768] ss:$16 sps:$4 sm:$0xff]  }
 0x5ba   : > { %3283 = vmatpush1.bf16.msra.mxu1 %v6703_v26  ;;  %v6792_v26 = vld [vmem:[%s7762_s3 + $0x6cc] ss:$16 sps:$4 sm:$0xff]  }
 0x5bb   : > { %3365 = vmatpush1.bf16.msra.mxu0 %v6706_v27  ;;  %3284 = vmatprep.subr.bf16.mxu1 %v6711_v28  ;;  %v1091_v27 = vrot.slane %v1082_v15, %v1090_v19  ;;  %v6817_v15 = vld [vmem:[%s7762_s3 + $0x760] ss:$16 sps:$4 sm:$0xff]   ;;  %v6825_v19 = vld [vmem:[%s7762_s3 + $0x784] ss:$16 sps:$4 sm:$0xff]  }
 0x5bc   : > { %3366 = vmatprep.subr.bf16.mxu0 %v6714_v29 }
 0x5be   : > { %3285 = vmatpush1.bf16.msra.mxu1 %v6709_v30  ;;  %v6787_v30 = vld [vmem:[%s7762_s3 + $0x6c0] ss:$16 sps:$4 sm:$0xff]  }
 0x5bf   : > { %3367 = vmatpush1.bf16.msra.mxu0 %v6712_v31  ;;  %3286 = vmatprep.subr.bf16.mxu1 %v6717_v32 }
 0x5c0   : > { %3368 = vmatprep.subr.bf16.mxu0 %v6720_v33 }
 0x5c2   : > { %3287 = vmatpush1.bf16.msra.mxu1 %v6715_v10 }
 0x5c3   : > { %3369 = vmatpush1.bf16.msra.mxu0 %v6718_v34  ;;  %3288 = vmatprep.subr.bf16.mxu1 %v6723_v35 }
 0x5c4   : > { %3370 = vmatprep.subr.bf16.mxu0 %v6726_v36  ;;  %v6790_v36 = vld [vmem:[%s7762_s3 + $0x6c8] ss:$16 sps:$4 sm:$0xff]  }
 0x5c6   : > { %3289 = vmatpush1.bf16.msra.mxu1 %v6721_v37 }
 0x5c7   : > { %3371 = vmatpush1.bf16.msra.mxu0 %v6724_v38  ;;  %3290 = vmatprep.subr.bf16.mxu1 %v6729_v39 }
 0x5c8   : > { %3372 = vmatprep.subr.bf16.mxu0 %v6732_v40 }
 0x5ca   : > { %3291 = vmatpush1.bf16.msra.mxu1 %v6727_v41  ;;  %v6795_v41 = vld [vmem:[%s7762_s3 + $0x6e4] ss:$16 sps:$4 sm:$0xff]  }
 0x5cb   : > { %3373 = vmatpush1.bf16.msra.mxu0 %v6730_v42  ;;  %3292 = vmatprep.subr.bf16.mxu1 %v6735_v43  ;;  %v6798_v42 = vld [vmem:[%s7762_s3 + $0x6ec] ss:$16 sps:$4 sm:$0xff]  }
 0x5cc   : > { %3374 = vmatprep.subr.bf16.mxu0 %v6738_v44 }
 0x5ce   : > { %3293 = vmatpush1.bf16.msra.mxu1 %v6733_v46 }
 0x5cf   : > { %3375 = vmatpush1.bf16.msra.mxu0 %v6736_v47  ;;  %3294 = vmatprep.subr.bf16.mxu1 %v6741_v49  ;;  %v6793_v49 = vld [vmem:[%s7762_s3 + $0x6e0] ss:$16 sps:$4 sm:$0xff]  }
 0x5d0   : > { %3376 = vmatprep.subr.bf16.mxu0 %v6744_v50  ;;  %v6796_v50 = vld [vmem:[%s7762_s3 + $0x6e8] ss:$16 sps:$4 sm:$0xff]  }
 0x5d2   : > { %3295 = vmatpush1.bf16.msra.mxu1 %v6739_v51 }
 0x5d3   : > { %3377 = vmatpush1.bf16.msra.mxu0 %v6742_v52  ;;  %3296 = vmatprep.subr.bf16.mxu1 %v6747_v53  ;;  %v6801_v52 = vld [vmem:[%s7762_s3 + $0x704] ss:$16 sps:$4 sm:$0xff]   ;;  %v6804_v53 = vld [vmem:[%s7762_s3 + $0x70c] ss:$16 sps:$4 sm:$0xff]  }
 0x5d4   : > { %3378 = vmatprep.subr.bf16.mxu0 %v6750_v54 }
 0x5d6   : > { %3297 = vmatpush1.bf16.msra.mxu1 %v6745_v55 }
 0x5d7   : > { %3379 = vmatpush1.bf16.msra.mxu0 %v6748_v56  ;;  %3307 = vmatprep.subr.bf16.mxu1 %v6753_v57  ;;  %v6799_v57 = vld [vmem:[%s7762_s3 + $0x700] ss:$16 sps:$4 sm:$0xff]  }
 0x5d8   : > { %3389 = vmatprep.subr.bf16.mxu0 %v6756_v58  ;;  %v6802_v58 = vld [vmem:[%s7762_s3 + $0x708] ss:$16 sps:$4 sm:$0xff]  }
 0x5d9   : > { %3299 = vmatmul.mubr.bf16.vlgmr.msra.gmra.mrb[8].mxu1 %v2618_v61 }
 0x5da   : > { %3381 = vmatmul.mubr.bf16.vlgmr.msra.gmra.mrb[8].mxu0 %v2618_v61  ;;  %3308 = vmatpush1.bf16.msra.mxu1 %v6751_v59  ;;  %v6810_v61 = vld [vmem:[%s7762_s3 + $0x72c] ss:$16 sps:$4 sm:$0xff]  }
 0x5db   : > { %3390 = vmatpush1.bf16.msra.mxu0 %v6754_v60  ;;  %3309 = vmatprep.subr.bf16.mxu1 %v6759_v62  ;;  %v6807_v60 = vld [vmem:[%s7762_s3 + $0x724] ss:$16 sps:$4 sm:$0xff]  }
 0x5dc   : > { %3391 = vmatprep.subr.bf16.mxu0 %v6762_v63  ;;  %3339 = vmatprep.mubr.bf16.mxu1 %v2621_v1 }
 0x5dd   : > { %3421 = vmatprep.mubr.bf16.mxu0 %v2621_v1  ;;  %v6808_v1 = vld [vmem:[%s7762_s3 + $0x728] ss:$16 sps:$4 sm:$0xff]  }
 0x5de   : > { %3310 = vmatpush1.bf16.msra.mxu1 %v6757_v20 }
 0x5df   : > { %3392 = vmatpush1.bf16.msra.mxu0 %v6760_v0  ;;  %3311 = vmatprep.subr.bf16.mxu1 %v6765_v2  ;;  %v6805_v0 = vld [vmem:[%s7762_s3 + $0x720] ss:$16 sps:$4 sm:$0xff]  }
 0x5e0   : > { %3393 = vmatprep.subr.bf16.mxu0 %v6768_v3  ;;  %v6813_v3 = vld [vmem:[%s7762_s3 + $0x744] ss:$16 sps:$4 sm:$0xff]  }
 0x5e2   : > { %3312 = vmatpush1.bf16.msra.mxu1 %v6763_v45  ;;  %v6816_v45 = vld [vmem:[%s7762_s3 + $0x74c] ss:$16 sps:$4 sm:$0xff]  }
 0x5e3   : > { %3394 = vmatpush1.bf16.msra.mxu0 %v6766_v4  ;;  %3313 = vmatprep.subr.bf16.mxu1 %v6771_v5 }
 0x5e4   : > { %3395 = vmatprep.subr.bf16.mxu0 %v6774_v6 }
 0x5e6   : > { %3314 = vmatpush1.bf16.msra.mxu1 %v6769_v7  ;;  %v6814_v7 = vld [vmem:[%s7762_s3 + $0x748] ss:$16 sps:$4 sm:$0xff]  }
 0x5e7   : > { %3396 = vmatpush1.bf16.msra.mxu0 %v6772_v8  ;;  %3315 = vmatprep.subr.bf16.mxu1 %v6777_v9  ;;  %v6819_v9 = vld [vmem:[%s7762_s3 + $0x764] ss:$16 sps:$4 sm:$0xff]  }
 0x5e8   : > { %3397 = vmatprep.subr.bf16.mxu0 %v6780_v11  ;;  %v6822_v11 = vld [vmem:[%s7762_s3 + $0x76c] ss:$16 sps:$4 sm:$0xff]  }
 0x5ea   : > { %3316 = vmatpush1.bf16.msra.mxu1 %v6775_v13 }
 0x5eb   : > { %3398 = vmatpush1.bf16.msra.mxu0 %v6778_v14  ;;  %3317 = vmatprep.subr.bf16.mxu1 %v6783_v17 }
 0x5ec   : > { %3399 = vmatprep.subr.bf16.mxu0 %v6786_v18  ;;  %v1448_v28 = vpop.f32.mrb[0].mxu1 }
 0x5ed   : > { %v1491_v29 = vpop.f32.mrb[0].mxu0  ;;  %v1449_v31 = vadd.f32 %v1448_v28, %v1087_v23  ;;  %v1450_v32 = vpop.f32.mrb[1].mxu1 }
 0x5ee   : > { %v1493_v33 = vpop.f32.mrb[1].mxu0  ;;  %v1451_v10 = vadd.f32 %v1450_v32, %v1091_v27  ;;  %v1452_v34 = vpop.f32.mrb[2].mxu1  ;;  %3318 = vmatpush1.bf16.msra.mxu1 %v6781_v21  ;;  %v6828_v21 = vld [vmem:[%s7762_s3 + $0x78c] ss:$16 sps:$4 sm:$0xff]   ;;  %v6831_v32 = vld [vmem:[%s7762_s3 + $0x7a4] ss:$16 sps:$4 sm:$0xff]  }
 0x5ef   : > { %3400 = vmatpush1.bf16.msra.mxu0 %v6784_v22  ;;  %v1495_v35 = vpop.f32.mrb[2].mxu0  ;;  %v1453_v37 = vadd.f32 %v1452_v34, %v1087_v23  ;;  %v8138_v38 = vadd.f32 %v1491_v29, %v1449_v31  ;;  %v1454_v39 = vpop.f32.mrb[3].mxu1  ;;  %3319 = vmatprep.subr.bf16.mxu1 %v6789_v24  ;;  %v6823_v29 = vld [vmem:[%s7762_s3 + $0x780] ss:$16 sps:$4 sm:$0xff]  }
 0x5f0   : > { %v1497_v40 = vpop.f32.mrb[3].mxu0  ;;  %3401 = vmatprep.subr.bf16.mxu0 %v6792_v26  ;;  %v1455_v43 = vadd.f32 %v1454_v39, %v1091_v27  ;;  %v1494_v44 = vadd.f32 %v1493_v33, %v1451_v10  ;;  %v6834_v33 = vld [vmem:[%s7762_s3 + $0x7ac] ss:$16 sps:$4 sm:$0xff]   ;;  %v6837_v39 = vld [vmem:[%s7762_s3 + $0x7c4] ss:$16 sps:$4 sm:$0xff]  }
 0x5f1   : > { %v1496_v46 = vadd.f32 %v1495_v35, %v1453_v37  ;;  %v6832_v37 = vld [vmem:[%s7762_s3 + $0x7a8] ss:$16 sps:$4 sm:$0xff]  }
 0x5f2   : > { %v1498_v47 = vadd.f32 %v1497_v40, %v1455_v43  ;;  %3320 = vmatpush1.bf16.msra.mxu1 %v6787_v30  ;;  %v6826_v30 = vld [vmem:[%s7762_s3 + $0x788] ss:$16 sps:$4 sm:$0xff]   ;;  %v6840_v40 = vld [vmem:[%s7762_s3 + $0x7cc] ss:$16 sps:$4 sm:$0xff]  }
 0x5f3   : > { %3402 = vmatpush1.bf16.msra.mxu0 %v6790_v36  ;;  %v1500_v51 = vadd.f32 %v1496_v46, %v8138_v38  ;;  %3321 = vmatprep.subr.bf16.mxu1 %v6795_v41  ;;  %v6829_v36 = vld [vmem:[%s7762_s3 + $0x7a0] ss:$16 sps:$4 sm:$0xff]  }
 0x5f4   : > { %3403 = vmatprep.subr.bf16.mxu0 %v6798_v42  ;;  %v1507_v54 = vadd.f32 %v1498_v47, %v1494_v44 }
 0x5f5   : > { %v1501_v55 = vrot.slane %v1500_v51, 4 }
 0x5f6   : > { %v1508_v56 = vrot.slane %v1507_v54, 4  ;;  %3322 = vmatpush1.bf16.msra.mxu1 %v6793_v49  ;;  %v6843_v49 = vld [vmem:[%s7762_s3 + $0x7e4] ss:$16 sps:$4 sm:$0xff]  }
 0x5f7   : > { %3404 = vmatpush1.bf16.msra.mxu0 %v6796_v50  ;;  %v1502_v59 = vadd.f32 %v1501_v55, %v1500_v51  ;;  %3323 = vmatprep.subr.bf16.mxu1 %v6801_v52  ;;  %v6846_v50 = vld [vmem:[%s7762_s3 + $0x7ec] ss:$16 sps:$4 sm:$0xff]   ;;  %v6844_v55 = vld [vmem:[%s7762_s3 + $0x7e8] ss:$16 sps:$4 sm:$0xff]  }
 0x5f8   : > { %3405 = vmatprep.subr.bf16.mxu0 %v6804_v53  ;;  %v1509_v62 = vadd.f32 %v1508_v56, %v1507_v54  ;;  %v6841_v54 = vld [vmem:[%s7762_s3 + $0x7e0] ss:$16 sps:$4 sm:$0xff]  }
 0x5f9   : > { %v1503_v63 = vrot.slane %v1502_v59, 2 }
 0x5fa   : > { %v1510_v20 = vrot.slane %v1509_v62, 2  ;;  %3324 = vmatpush1.bf16.msra.mxu1 %v6799_v57 }
 0x5fb   : > { %3406 = vmatpush1.bf16.msra.mxu0 %v6802_v58  ;;  %v1504_v2 = vadd.f32 %v1503_v63, %v1502_v59  ;;  %3325 = vmatprep.subr.bf16.mxu1 %v6807_v60  ;;  %v2620_v59 = vrot.slane %v7906_v48, 4 }
 0x5fc   : > { %3407 = vmatprep.subr.bf16.mxu0 %v6810_v61  ;;  %v1511_v4 = vadd.f32 %v1510_v20, %v1509_v62 }
 0x5fd   : > { %v1505_v5 = vrot.slane %v1504_v2, 1 }
 0x5fe   : > { %v1512_v6 = vrot.slane %v1511_v4, 1  ;;  %3326 = vmatpush1.bf16.msra.mxu1 %v6805_v0 }
 0x5ff   : > { %3408 = vmatpush1.bf16.msra.mxu0 %v6808_v1  ;;  %v1506_v8 = vadd.f32 %v1505_v5, %v1504_v2  ;;  %3327 = vmatprep.subr.bf16.mxu1 %v6813_v3 }
 0x600   : > { %3409 = vmatprep.subr.bf16.mxu0 %v6816_v45  ;;  %v1513_v12 = vadd.f32 %v1512_v6, %v1511_v4 }
 0x601   : > { %v1515_v13 = vmul.f32 0.0625, %v1506_v8 }
 0x602   : > { %v1516_v14 = vmul.f32 0.0625, %v1513_v12  ;;  %3328 = vmatpush1.bf16.msra.mxu1 %v6811_v25 }
 0x603   : > { %3410 = vmatpush1.bf16.msra.mxu0 %v6814_v7  ;;  %v8162_v17 = vsub.f32 %v8138_v38, %v1515_v13  ;;  %v8164_v18 = vsub.f32 %v1496_v46, %v1515_v13  ;;  %3329 = vmatprep.subr.bf16.mxu1 %v6819_v9  ;;  %v6838_v46 = vld [vmem:[%s7762_s3 + $0x7c8] ss:$16 sps:$4 sm:$0xff]  }
 0x604   : > { %3411 = vmatprep.subr.bf16.mxu0 %v6822_v11  ;;  %v8168_v22 = vsub.f32 %v1494_v44, %v1516_v14  ;;  %v8170_v23 = vsub.f32 %v1498_v47, %v1516_v14  ;;  %v6835_v44 = vld [vmem:[%s7762_s3 + $0x7c0] ss:$16 sps:$4 sm:$0xff]  }
 0x605   : > { %v1521_v24 = vmul.f32 %v8162_v17, %v8162_v17  ;;  %v1523_v26 = vmul.f32 %v8164_v18, %v8164_v18 }
 0x606   : > { %v1522_v27 = vmul.f32 %v8168_v22, %v8168_v22  ;;  %v1524_v28 = vmul.f32 %v8170_v23, %v8170_v23  ;;  %3330 = vmatpush1.bf16.msra.mxu1 %v6817_v15 }
 0x607   : > { %3412 = vmatpush1.bf16.msra.mxu0 %v6820_v16  ;;  %v1525_v31 = vadd.f32 %v1523_v26, %v1521_v24  ;;  %3331 = vmatprep.subr.bf16.mxu1 %v6825_v19  ;;  %v7422_v16 = vmov 0.0  }
 0x608   : > { %3413 = vmatprep.subr.bf16.mxu0 %v6828_v21  ;;  %v1532_v10 = vadd.f32 %v1524_v28, %v1522_v27 }
 0x609   : > { %v1526_v34 = vrot.slane %v1525_v31, 4 }
 0x60a   : > { %v1533_v35 = vrot.slane %v1532_v10, 4  ;;  %3332 = vmatpush1.bf16.msra.mxu1 %v6823_v29 }
 0x60b   : > { %3414 = vmatpush1.bf16.msra.mxu0 %v6826_v30  ;;  %v1527_v38 = vadd.f32 %v1526_v34, %v1525_v31  ;;  %3333 = vmatprep.subr.bf16.mxu1 %v6831_v32  ;;  %v3430_v31 = vld [vmem:[%s8533_s2] sm:$0xff]  ;;  %v3431_v34 = vld [vmem:[%s8533_s2 + $0x8] sm:$0xff] }
 0x60c   : > { %3415 = vmatprep.subr.bf16.mxu0 %v6834_v33  ;;  %v1534_v41 = vadd.f32 %v1533_v35, %v1532_v10  ;;  %v3593_v32 = vld [vmem:[%s8534_s30] sm:$0xff]  ;;  %v6849_v33 = vld [vmem:[%s7770_s23 + $0x4] ss:$16 sps:$4 sm:$0xff]  }
 0x60d   : > { %v1528_v42 = vrot.slane %v1527_v38, 2  ;;  %v6852_v10 = vld [vmem:[%s7770_s23 + $0xc] ss:$16 sps:$4 sm:$0xff]   ;;  %v3594_v35 = vld [vmem:[%s8535_s14 + $0x8] sm:$0xff] }
 0x60e   : > { %v1535_v43 = vrot.slane %v1534_v41, 2  ;;  %3334 = vmatpush1.bf16.msra.mxu1 %v6829_v36  ;;  %v6847_v36 = vld [vmem:[%s7770_s23] ss:$16 sps:$4 sm:$0xff]  }
 0x60f   : > { %3416 = vmatpush1.bf16.msra.mxu0 %v6832_v37  ;;  %v1529_v47 = vadd.f32 %v1528_v42, %v1527_v38  ;;  %3335 = vmatprep.subr.bf16.mxu1 %v6837_v39  ;;  %v6850_v37 = vld [vmem:[%s7770_s23 + $0x8] ss:$16 sps:$4 sm:$0xff]   ;;  %v6855_v38 = vld [vmem:[%s7770_s23 + $0x24] ss:$16 sps:$4 sm:$0xff]   ;;  %v6858_v39 = vld [vmem:[%s7770_s23 + $0x2c] ss:$16 sps:$4 sm:$0xff]  }
 0x610   : > { %3417 = vmatprep.subr.bf16.mxu0 %v6840_v40  ;;  %v1536_v51 = vadd.f32 %v1535_v43, %v1534_v41  ;;  %v6853_v40 = vld [vmem:[%s7770_s23 + $0x20] ss:$16 sps:$4 sm:$0xff]   ;;  %v6856_v41 = vld [vmem:[%s7770_s23 + $0x28] ss:$16 sps:$4 sm:$0xff]   ;;  %v6861_v42 = vld [vmem:[%s7770_s23 + $0x44] ss:$16 sps:$4 sm:$0xff]  }
 0x611   : > { %v1530_v52 = vrot.slane %v1529_v47, 1  ;;  %v6864_v43 = vld [vmem:[%s7770_s23 + $0x4c] ss:$16 sps:$4 sm:$0xff]  }
 0x612   : > { %v1537_v53 = vrot.slane %v1536_v51, 1  ;;  %3336 = vmatpush1.bf16.msra.mxu1 %v6835_v44  ;;  %v6859_v44 = vld [vmem:[%s7770_s23 + $0x40] ss:$16 sps:$4 sm:$0xff]  }
 0x613   : > { %3418 = vmatpush1.bf16.msra.mxu0 %v6838_v46  ;;  %v1531_v56 = vadd.f32 %v1530_v52, %v1529_v47  ;;  %3337 = vmatprep.subr.bf16.mxu1 %v6843_v49  ;;  %v6862_v46 = vld [vmem:[%s7770_s23 + $0x48] ss:$16 sps:$4 sm:$0xff]   ;;  %v6867_v47 = vld [vmem:[%s7770_s23 + $0x64] ss:$16 sps:$4 sm:$0xff]   ;;  %v6870_v49 = vld [vmem:[%s7770_s23 + $0x6c] ss:$16 sps:$4 sm:$0xff]  }
 0x614   : > { %3419 = vmatprep.subr.bf16.mxu0 %v6846_v50  ;;  %v1538_v57 = vadd.f32 %v1537_v53, %v1536_v51  ;;  %v6865_v50 = vld [vmem:[%s7770_s23 + $0x60] ss:$16 sps:$4 sm:$0xff]   ;;  %v6868_v51 = vld [vmem:[%s7770_s23 + $0x68] ss:$16 sps:$4 sm:$0xff]   ;;  %v6873_v52 = vld [vmem:[%s7770_s23 + $0x84] ss:$16 sps:$4 sm:$0xff]  }
 0x615   : > { %v1539_v58 = vmul.f32 0.0625, %v1531_v56  ;;  %v6876_v53 = vld [vmem:[%s7770_s23 + $0x8c] ss:$16 sps:$4 sm:$0xff]   ;;  %v6879_v56 = vld [vmem:[%s7770_s23 + $0xa4] ss:$16 sps:$4 sm:$0xff]  }
 0x616   : > { %v1540_v60 = vmul.f32 0.0625, %v1538_v57  ;;  %3338 = vmatpush1.bf16.msra.mxu1 %v6841_v54  ;;  %v6871_v54 = vld [vmem:[%s7770_s23 + $0x80] ss:$16 sps:$4 sm:$0xff]   ;;  %v6882_v57 = vld [vmem:[%s7770_s23 + $0xac] ss:$16 sps:$4 sm:$0xff]  }
 0x617   : > { %3420 = vmatpush1.bf16.msra.mxu0 %v6844_v55  ;;  %v1541_v61 = vadd.f32 1e-05, %v1539_v58  ;;  %v6874_v55 = vld [vmem:[%s7770_s23 + $0x88] ss:$16 sps:$4 sm:$0xff]   ;;  %v6877_v58 = vld [vmem:[%s7770_s23 + $0xa0] ss:$16 sps:$4 sm:$0xff]  }
 0x618   : > { %v1542_v62 = vadd.f32 1e-05, %v1540_v60  ;;  %v6885_v60 = vld [vmem:[%s7770_s23 + $0xc4] ss:$16 sps:$4 sm:$0xff]  }
 0x619   : > { %7135 = vrsqrt.f32 %v1541_v61  ;;  %3340 = vmatmul.mubr.bf16.vlgmr.msra.gmra.mrb[8].mxu1 %v2620_v59  ;;  %v6888_v61 = vld [vmem:[%s7770_s23 + $0xcc] ss:$16 sps:$4 sm:$0xff]  }
 0x61a   : > { %3422 = vmatmul.mubr.bf16.vlgmr.msra.gmra.mrb[8].mxu0 %v2620_v59  ;;  %7137 = vrsqrt.f32 %v1542_v62  ;;  %3665 = vmatprep.mubr.f32.mxu1 %v7422_v16  ;;  %v6880_v59 = vld [vmem:[%s7770_s23 + $0xa8] ss:$16 sps:$4 sm:$0xff]   ;;  %v6883_v62 = vld [vmem:[%s7770_s23 + $0xc0] ss:$16 sps:$4 sm:$0xff]  }
 0x61b   : > { %3503 = vmatprep.mubr.f32.mxu0 %v7422_v16 }
 0x623   : > { %v7136_v63 = vpop.eup %7135 }
 0x624   : > { %v7138_v20 = vpop.eup %7137  ;;  %v1545_v0 = vmul.f32 %v7136_v63, %v8162_v17  ;;  %v1547_v1 = vmul.f32 %v7136_v63, %v8164_v18  ;;  %v6886_v63 = vld [vmem:[%s7770_s23 + $0xc8] ss:$16 sps:$4 sm:$0xff]  }
 0x625   : > { %v1548_v2 = vmul.f32 %v7138_v20, %v8170_v23  ;;  %v1546_v3 = vmul.f32 %v7138_v20, %v8168_v22  ;;  %v6891_v20 = vld [vmem:[%s7770_s23 + $0xe4] ss:$16 sps:$4 sm:$0xff]  }
 0x626   : > { %v1549_v48 = vmax.f32 %v1545_v0, 0.0  ;;  %v1551_v45 = vmax.f32 %v1547_v1, 0.0  ;;  %v6894_v0 = vld [vmem:[%s7770_s23 + $0xec] ss:$16 sps:$4 sm:$0xff]   ;;  %v6889_v1 = vld [vmem:[%s7770_s23 + $0xe0] ss:$16 sps:$4 sm:$0xff]  }
 0x627   : > { %v1552_v4 = vmax.f32 %v1548_v2, 0.0  ;;  %v1550_v5 = vmax.f32 %v1546_v3, 0.0  ;;  %v6892_v2 = vld [vmem:[%s7770_s23 + $0xe8] ss:$16 sps:$4 sm:$0xff]   ;;  %v6897_v3 = vld [vmem:[%s7770_s23 + $0x104] ss:$16 sps:$4 sm:$0xff]  }
 0x628   : > { %v8199_v6 = vpack.c.bf16 %v1551_v45, %v1549_v48  ;;  %v6900_v48 = vld [vmem:[%s7770_s23 + $0x10c] ss:$16 sps:$4 sm:$0xff]   ;;  %v6895_v45 = vld [vmem:[%s7770_s23 + $0x100] ss:$16 sps:$4 sm:$0xff]  }
 0x629   : > { %v8201_v25 = vpack.c.bf16 %v1552_v4, %v1550_v5  ;;  %v6898_v4 = vld [vmem:[%s7770_s23 + $0x108] ss:$16 sps:$4 sm:$0xff]   ;;  %v6903_v5 = vld [vmem:[%s7770_s23 + $0x124] ss:$16 sps:$4 sm:$0xff]  }
 0x66c   : > { %v2396_v7 = vpop.f32.mrb[4].mxu1 }
 0x66d   : > { %v2478_v8 = vpop.f32.mrb[4].mxu0  ;;  %v2398_v9 = vpop.f32.mrb[5].mxu1 }
 0x66e   : > { %v2480_v11 = vpop.f32.mrb[5].mxu0  ;;  %v2400_v12 = vpop.f32.mrb[6].mxu1 }
 0x66f   : > { %v2482_v13 = vpop.f32.mrb[6].mxu0  ;;  %v2401_v14 = vpop.f32.mrb[7].mxu1  ;;  %v6912_v12 = vld [vmem:[%s7770_s23 + $0x14c] ss:$16 sps:$4 sm:$0xff]  }
 0x670   : > { %v2483_v15 = vpop.f32.mrb[7].mxu0  ;;  %v6907_v13 = vld [vmem:[%s7770_s23 + $0x140] ss:$16 sps:$4 sm:$0xff]   ;;  %v6910_v14 = vld [vmem:[%s7770_s23 + $0x148] ss:$16 sps:$4 sm:$0xff]  }
 0x671   : > { %v6915_v15 = vld [vmem:[%s7770_s23 + $0x164] ss:$16 sps:$4 sm:$0xff]  }
 0x6ec   : > { %v3341_v17 = vpop.f32.mrb[8].mxu1 }
 0x6ed   : > { %v3423_v18 = vpop.f32.mrb[8].mxu0  ;;  %v6192_v19 = vpack.c.bf16 %v3341_v17, %v2396_v7  ;;  %v3343_v22 = vpop.f32.mrb[9].mxu1  ;;  %v6906_v7 = vld [vmem:[%s7770_s23 + $0x12c] ss:$16 sps:$4 sm:$0xff]   ;;  %v6913_v17 = vld [vmem:[%s7770_s23 + $0x160] ss:$16 sps:$4 sm:$0xff]  }
 0x6ee   : > { %v6196_v21 = vpack.c.bf16 %v3423_v18, %v2478_v8  ;;  %v3425_v23 = vpop.f32.mrb[9].mxu0  ;;  %v6190_v24 = vpack.c.bf16 %v3343_v22, %v2398_v9  ;;  %v3345_v27 = vpop.f32.mrb[10].mxu1  ;;  %v6901_v8 = vld [vmem:[%s7770_s23 + $0x120] ss:$16 sps:$4 sm:$0xff]   ;;  %v6904_v9 = vld [vmem:[%s7770_s23 + $0x128] ss:$16 sps:$4 sm:$0xff]  }
 0x6ef   : > { %v6194_v26 = vpack.c.bf16 %v3425_v23, %v2480_v11  ;;  %v3427_v28 = vpop.f32.mrb[10].mxu0  ;;  %v3346_v29 = vpop.f32.mrb[11].mxu1  ;;  %v6909_v11 = vld [vmem:[%s7770_s23 + $0x144] ss:$16 sps:$4 sm:$0xff]   ;;  %v6916_v18 = vld [vmem:[%s7770_s23 + $0x168] ss:$16 sps:$4 sm:$0xff]  }
 0x6f0   : > { %v3428_v30 = vpop.f32.mrb[11].mxu0  ;;  %6191 = vmatprep.subr.bf16.mxu0 %v6190_v24  ;;  %6199 = vmatprep.subr.bf16.mxu1 %v6190_v24  ;;  %v6919_v22 = vld [vmem:[%s7770_s23 + $0x180] ss:$16 sps:$4 sm:$0xff]   ;;  %v6922_v23 = vld [vmem:[%s7770_s23 + $0x188] ss:$16 sps:$4 sm:$0xff]  }
 0x6f1   : > { %6193 = vmatpush1.bf16.msra.mxu0 %v6192_v19  ;;  %6201 = vmatpush1.bf16.msra.mxu1 %v6192_v19  ;;  %v6921_v19 = vld [vmem:[%s7770_s23 + $0x184] ss:$16 sps:$4 sm:$0xff]   ;;  %v6925_v27 = vld [vmem:[%s7770_s23 + $0x1a0] ss:$16 sps:$4 sm:$0xff]   ;;  %v6928_v28 = vld [vmem:[%s7770_s23 + $0x1a8] ss:$16 sps:$4 sm:$0xff]  }
 0x6f2   : > { %6195 = vmatprep.subr.bf16.mxu0 %v6194_v26  ;;  %6203 = vmatprep.subr.bf16.mxu1 %v6194_v26  ;;  %v6927_v24 = vld [vmem:[%s7770_s23 + $0x1a4] ss:$16 sps:$4 sm:$0xff]   ;;  %v6930_v26 = vld [vmem:[%s7770_s23 + $0x1ac] ss:$16 sps:$4 sm:$0xff]  }
 0x6f3   : > { %v6933_v29 = vld [vmem:[%s7770_s23 + $0x1c4] ss:$16 sps:$4 sm:$0xff]   ;;  %v6936_v30 = vld [vmem:[%s7770_s23 + $0x1cc] ss:$16 sps:$4 sm:$0xff]  }
 0x6f4   : > { %5980 = vmatmul.mubr.msk.f32.vlgmr.msra.gmra.mrb[12].mxu0 %vm3432_vm2, %v3430_v31  ;;  %5984 = vmatmul.mubr.msk.f32.vlgmr.msra.gmra.mrb[12].mxu1 %vm3432_vm2, %v3593_v32 }
 0x6f5   : > { %6197 = vmatpush1.bf16.msra.mxu0 %v6196_v21  ;;  %6205 = vmatpush1.bf16.msra.mxu1 %v6196_v21  ;;  %v6924_v21 = vld [vmem:[%s7770_s23 + $0x18c] ss:$16 sps:$4 sm:$0xff]  }
 0x6f6   : > { %3509 = vmatprep.mubr.f32.mxu0 %v7422_v16  ;;  %3671 = vmatprep.mubr.f32.mxu1 %v7422_v16 }
 0x6f7   : > { %4618 = vmatprep.subr.bf16.mxu1 %v6849_v33  ;;  %4704 = vmatprep.subr.bf16.mxu0 %v6852_v10  ;;  %v6939_v33 = vld [vmem:[%s7770_s23 + $0x1e4] ss:$16 sps:$4 sm:$0xff]   ;;  %v6942_v10 = vld [vmem:[%s7770_s23 + $0x1ec] ss:$16 sps:$4 sm:$0xff]  }
 0x6f8   : > { %5981 = vmatmul.mubr.msk.f32.gmra.mrb[14].mxu0 %vm3432_vm2, %v3431_v34  ;;  %5985 = vmatmul.mubr.msk.f32.gmra.mrb[14].mxu1 %vm3432_vm2, %v3594_v35 }
 0x6f9   : > { %3742 = vmatprep.mubr.f32.mxu1 %v7422_v16  ;;  %3580 = vmatprep.mubr.f32.mxu0 %v7422_v16 }
 0x6fc   : > { %5986 = vmatmul.mubr.msk.f32.vlgmr.msra.gmra.mrb[16].mxu1 %vm3432_vm2, %v3593_v32  ;;  %5982 = vmatmul.mubr.msk.f32.vlgmr.msra.gmra.mrb[16].mxu0 %vm3432_vm2, %v3430_v31  ;;  %v6931_v31 = vld [vmem:[%s7770_s23 + $0x1c0] ss:$16 sps:$4 sm:$0xff]   ;;  %v6934_v32 = vld [vmem:[%s7770_s23 + $0x1c8] ss:$16 sps:$4 sm:$0xff]  }
 0x6fd   : > { %3748 = vmatprep.mubr.f32.mxu1 %v7422_v16  ;;  %4619 = vmatpush1.bf16.msra.mxu1 %v6847_v36  ;;  %v6945_v36 = vld [vmem:[%s7770_s23 + $0x204] ss:$16 sps:$4 sm:$0xff]  }
 0x6fe   : > { %4705 = vmatpush1.bf16.msra.mxu0 %v6850_v37  ;;  %4620 = vmatprep.subr.bf16.mxu1 %v6855_v38  ;;  %v6948_v37 = vld [vmem:[%s7770_s23 + $0x20c] ss:$16 sps:$4 sm:$0xff]  }
 0x6ff   : > { %4706 = vmatprep.subr.bf16.mxu0 %v6858_v39  ;;  %3586 = vmatprep.mubr.f32.mxu0 %v7422_v16  ;;  %v6918_v16 = vld [vmem:[%s7770_s23 + $0x16c] ss:$16 sps:$4 sm:$0xff]  }
 0x700   : > { %5987 = vmatmul.mubr.msk.f32.gmra.mrb[18].mxu1 %vm3432_vm2, %v3594_v35  ;;  %5983 = vmatmul.mubr.msk.f32.gmra.mrb[18].mxu0 %vm3432_vm2, %v3431_v34  ;;  %v6937_v34 = vld [vmem:[%s7770_s23 + $0x1e0] ss:$16 sps:$4 sm:$0xff]   ;;  %v6940_v35 = vld [vmem:[%s7770_s23 + $0x1e8] ss:$16 sps:$4 sm:$0xff]  }
 0x701   : > { %4621 = vmatpush1.bf16.msra.mxu1 %v6853_v40 }
 0x702   : > { %4707 = vmatpush1.bf16.msra.mxu0 %v6856_v41  ;;  %4622 = vmatprep.subr.bf16.mxu1 %v6861_v42 }
 0x703   : > { %4708 = vmatprep.subr.bf16.mxu0 %v6864_v43 }
 0x705   : > { %4623 = vmatpush1.bf16.msra.mxu1 %v6859_v44 }
 0x706   : > { %4709 = vmatpush1.bf16.msra.mxu0 %v6862_v46  ;;  %4624 = vmatprep.subr.bf16.mxu1 %v6867_v47 }
 0x707   : > { %4710 = vmatprep.subr.bf16.mxu0 %v6870_v49 }
 0x709   : > { %4625 = vmatpush1.bf16.msra.mxu1 %v6865_v50 }
 0x70a   : > { %4711 = vmatpush1.bf16.msra.mxu0 %v6868_v51  ;;  %4626 = vmatprep.subr.bf16.mxu1 %v6873_v52 }
 0x70b   : > { %4712 = vmatprep.subr.bf16.mxu0 %v6876_v53 }
 0x70d   : > { %4627 = vmatpush1.bf16.msra.mxu1 %v6871_v54  ;;  %v6943_v54 = vld [vmem:[%s7770_s23 + $0x200] ss:$16 sps:$4 sm:$0xff]  }
 0x70e   : > { %4713 = vmatpush1.bf16.msra.mxu0 %v6874_v55  ;;  %4628 = vmatprep.subr.bf16.mxu1 %v6879_v56  ;;  %v6946_v55 = vld [vmem:[%s7770_s23 + $0x208] ss:$16 sps:$4 sm:$0xff]  }
 0x70f   : > { %4714 = vmatprep.subr.bf16.mxu0 %v6882_v57 }
 0x711   : > { %4629 = vmatpush1.bf16.msra.mxu1 %v6877_v58  ;;  %v6951_v58 = vld [vmem:[%s7770_s23 + $0x224] ss:$16 sps:$4 sm:$0xff]  }
 0x712   : > { %4715 = vmatpush1.bf16.msra.mxu0 %v6880_v59  ;;  %4630 = vmatprep.subr.bf16.mxu1 %v6885_v60  ;;  %v6954_v59 = vld [vmem:[%s7770_s23 + $0x22c] ss:$16 sps:$4 sm:$0xff]  }
 0x713   : > { %4716 = vmatprep.subr.bf16.mxu0 %v6888_v61 }
 0x715   : > { %4631 = vmatpush1.bf16.msra.mxu1 %v6883_v62  ;;  %v6949_v62 = vld [vmem:[%s7770_s23 + $0x220] ss:$16 sps:$4 sm:$0xff]  }
 0x716   : > { %4717 = vmatpush1.bf16.msra.mxu0 %v6886_v63  ;;  %4632 = vmatprep.subr.bf16.mxu1 %v6891_v20  ;;  %v6952_v63 = vld [vmem:[%s7770_s23 + $0x228] ss:$16 sps:$4 sm:$0xff]  }
 0x717   : > { %4718 = vmatprep.subr.bf16.mxu0 %v6894_v0  ;;  %v6957_v0 = vld [vmem:[%s7770_s23 + $0x244] ss:$16 sps:$4 sm:$0xff]  }
 0x719   : > { %4633 = vmatpush1.bf16.msra.mxu1 %v6889_v1 }
 0x71a   : > { %4719 = vmatpush1.bf16.msra.mxu0 %v6892_v2  ;;  %4634 = vmatprep.subr.bf16.mxu1 %v6897_v3 }
 0x71b   : > { %4720 = vmatprep.subr.bf16.mxu0 %v6900_v48  ;;  %v6960_v48 = vld [vmem:[%s7770_s23 + $0x24c] ss:$16 sps:$4 sm:$0xff]  }
 0x71d   : > { %4635 = vmatpush1.bf16.msra.mxu1 %v6895_v45 }
 0x71e   : > { %4721 = vmatpush1.bf16.msra.mxu0 %v6898_v4  ;;  %4636 = vmatprep.subr.bf16.mxu1 %v6903_v5 }
 0x71f   : > { %4722 = vmatprep.subr.bf16.mxu0 %v6906_v7 }
 0x721   : > { %4637 = vmatpush1.bf16.msra.mxu1 %v6901_v8 }
 0x722   : > { %4723 = vmatpush1.bf16.msra.mxu0 %v6904_v9  ;;  %4638 = vmatprep.subr.bf16.mxu1 %v6909_v11  ;;  %v6955_v9 = vld [vmem:[%s7770_s23 + $0x240] ss:$16 sps:$4 sm:$0xff]   ;;  %v6958_v11 = vld [vmem:[%s7770_s23 + $0x248] ss:$16 sps:$4 sm:$0xff]  }
 0x723   : > { %4724 = vmatprep.subr.bf16.mxu0 %v6912_v12 }
 0x725   : > { %4639 = vmatpush1.bf16.msra.mxu1 %v6907_v13  ;;  %v6963_v13 = vld [vmem:[%s7770_s23 + $0x264] ss:$16 sps:$4 sm:$0xff]  }
 0x726   : > { %4725 = vmatpush1.bf16.msra.mxu0 %v6910_v14  ;;  %4640 = vmatprep.subr.bf16.mxu1 %v6915_v15  ;;  %v6966_v14 = vld [vmem:[%s7770_s23 + $0x26c] ss:$16 sps:$4 sm:$0xff]   ;;  %v6961_v15 = vld [vmem:[%s7770_s23 + $0x260] ss:$16 sps:$4 sm:$0xff]  }
 0x727   : > { %4726 = vmatprep.subr.bf16.mxu0 %v6918_v16  ;;  %v6964_v16 = vld [vmem:[%s7770_s23 + $0x268] ss:$16 sps:$4 sm:$0xff]  }
 0x729   : > { %4641 = vmatpush1.bf16.msra.mxu1 %v6913_v17  ;;  %v6969_v17 = vld [vmem:[%s7770_s23 + $0x284] ss:$16 sps:$4 sm:$0xff]  }
 0x72a   : > { %4727 = vmatpush1.bf16.msra.mxu0 %v6916_v18  ;;  %4642 = vmatprep.subr.bf16.mxu1 %v6921_v19  ;;  %v6972_v18 = vld [vmem:[%s7770_s23 + $0x28c] ss:$16 sps:$4 sm:$0xff]   ;;  %v6967_v19 = vld [vmem:[%s7770_s23 + $0x280] ss:$16 sps:$4 sm:$0xff]  }
 0x72b   : > { %4728 = vmatprep.subr.bf16.mxu0 %v6924_v21  ;;  %v6970_v21 = vld [vmem:[%s7770_s23 + $0x288] ss:$16 sps:$4 sm:$0xff]  }
 0x72d   : > { %4643 = vmatpush1.bf16.msra.mxu1 %v6919_v22  ;;  %v6975_v22 = vld [vmem:[%s7770_s23 + $0x2a4] ss:$16 sps:$4 sm:$0xff]  }
 0x72e   : > { %4729 = vmatpush1.bf16.msra.mxu0 %v6922_v23  ;;  %4644 = vmatprep.subr.bf16.mxu1 %v6927_v24  ;;  %v6978_v23 = vld [vmem:[%s7770_s23 + $0x2ac] ss:$16 sps:$4 sm:$0xff]   ;;  %v6973_v24 = vld [vmem:[%s7770_s23 + $0x2a0] ss:$16 sps:$4 sm:$0xff]  }
 0x72f   : > { %4730 = vmatprep.subr.bf16.mxu0 %v6930_v26  ;;  %v6976_v26 = vld [vmem:[%s7770_s23 + $0x2a8] ss:$16 sps:$4 sm:$0xff]  }
 0x731   : > { %4645 = vmatpush1.bf16.msra.mxu1 %v6925_v27  ;;  %v6981_v27 = vld [vmem:[%s7770_s23 + $0x2c4] ss:$16 sps:$4 sm:$0xff]  }
 0x732   : > { %4731 = vmatpush1.bf16.msra.mxu0 %v6928_v28  ;;  %4646 = vmatprep.subr.bf16.mxu1 %v6933_v29  ;;  %v6984_v28 = vld [vmem:[%s7770_s23 + $0x2cc] ss:$16 sps:$4 sm:$0xff]   ;;  %v6979_v29 = vld [vmem:[%s7770_s23 + $0x2c0] ss:$16 sps:$4 sm:$0xff]  }
 0x733   : > { %4732 = vmatprep.subr.bf16.mxu0 %v6936_v30  ;;  %v6982_v30 = vld [vmem:[%s7770_s23 + $0x2c8] ss:$16 sps:$4 sm:$0xff]  }
 0x735   : > { %4647 = vmatpush1.bf16.msra.mxu1 %v6931_v31  ;;  %v6987_v31 = vld [vmem:[%s7770_s23 + $0x2e4] ss:$16 sps:$4 sm:$0xff]  }
 0x736   : > { %4733 = vmatpush1.bf16.msra.mxu0 %v6934_v32  ;;  %4648 = vmatprep.subr.bf16.mxu1 %v6939_v33  ;;  %v6990_v32 = vld [vmem:[%s7770_s23 + $0x2ec] ss:$16 sps:$4 sm:$0xff]   ;;  %v6985_v33 = vld [vmem:[%s7770_s23 + $0x2e0] ss:$16 sps:$4 sm:$0xff]  }
 0x737   : > { %4734 = vmatprep.subr.bf16.mxu0 %v6942_v10  ;;  %v6988_v10 = vld [vmem:[%s7770_s23 + $0x2e8] ss:$16 sps:$4 sm:$0xff]  }
 0x739   : > { %4649 = vmatpush1.bf16.msra.mxu1 %v6937_v34  ;;  %v6993_v34 = vld [vmem:[%s7770_s23 + $0x304] ss:$16 sps:$4 sm:$0xff]  }
 0x73a   : > { %4735 = vmatpush1.bf16.msra.mxu0 %v6940_v35  ;;  %4661 = vmatprep.subr.bf16.mxu1 %v6945_v36  ;;  %v6996_v35 = vld [vmem:[%s7770_s23 + $0x30c] ss:$16 sps:$4 sm:$0xff]   ;;  %v6991_v36 = vld [vmem:[%s7770_s23 + $0x300] ss:$16 sps:$4 sm:$0xff]  }
 0x73b   : > { %4747 = vmatprep.subr.bf16.mxu0 %v6948_v37  ;;  %v6994_v37 = vld [vmem:[%s7770_s23 + $0x308] ss:$16 sps:$4 sm:$0xff]  }
 0x7c7   : > { %v3505_v38 = vpop.f32.mrb[12].mxu0  ;;  %v3667_v39 = vpop.f32.mrb[12].mxu1 }
 0x7c8   : > { %v3507_v40 = vpop.f32.mrb[13].mxu0  ;;  %v3669_v41 = vpop.f32.mrb[13].mxu1  ;;  %v3772_v44 = vmax.f32 %v3505_v38, 0.0  ;;  %v6999_v38 = vld [vmem:[%s7770_s23 + $0x324] ss:$16 sps:$4 sm:$0xff]  }
 0x7c9   : > { %v3773_v50 = vmax.f32 %v3507_v40, 0.0  ;;  %v7002_v39 = vld [vmem:[%s7770_s23 + $0x32c] ss:$16 sps:$4 sm:$0xff]   ;;  %v6997_v40 = vld [vmem:[%s7770_s23 + $0x320] ss:$16 sps:$4 sm:$0xff]  }
 0x7ca   : > { %v7000_v41 = vld [vmem:[%s7770_s23 + $0x328] ss:$16 sps:$4 sm:$0xff]  }
 0x7cb   : > { %v3511_v42 = vpop.f32.mrb[14].mxu0  ;;  %v3673_v43 = vpop.f32.mrb[14].mxu1 }
 0x7cc   : > { %v3776_v46 = vmax.f32 %v3511_v42, 0.0  ;;  %v3513_v47 = vpop.f32.mrb[15].mxu0  ;;  %v3675_v49 = vpop.f32.mrb[15].mxu1  ;;  %v7005_v42 = vld [vmem:[%s7770_s23 + $0x344] ss:$16 sps:$4 sm:$0xff]  }
 0x7cd   : > { %v3777_v51 = vmax.f32 %v3513_v47, 0.0  ;;  %v7008_v43 = vld [vmem:[%s7770_s23 + $0x34c] ss:$16 sps:$4 sm:$0xff]   ;;  %v7011_v47 = vld [vmem:[%s7770_s23 + $0x364] ss:$16 sps:$4 sm:$0xff]  }
 0x7ce   : > { %v3846_v52 = vpack.c.bf16 %v3776_v46, %v3772_v44  ;;  %v7003_v44 = vld [vmem:[%s7770_s23 + $0x340] ss:$16 sps:$4 sm:$0xff]   ;;  %v7006_v46 = vld [vmem:[%s7770_s23 + $0x348] ss:$16 sps:$4 sm:$0xff]   ;;  %v7014_v49 = vld [vmem:[%s7770_s23 + $0x36c] ss:$16 sps:$4 sm:$0xff]  }
 0x7cf   : > { %v3847_v53 = vpack.c.bf16 %v3777_v51, %v3773_v50  ;;  %v3744_v56 = vpop.f32.mrb[16].mxu1  ;;  %v3582_v57 = vpop.f32.mrb[16].mxu0  ;;  %v7009_v50 = vld [vmem:[%s7770_s23 + $0x360] ss:$16 sps:$4 sm:$0xff]   ;;  %v7012_v51 = vld [vmem:[%s7770_s23 + $0x368] ss:$16 sps:$4 sm:$0xff]  }
 0x7d0   : > { %v3746_v60 = vpop.f32.mrb[17].mxu1  ;;  %v3584_v61 = vpop.f32.mrb[17].mxu0  ;;  %v3774_v20 = vmax.f32 %v3744_v56, 0.0  ;;  %v7023_v56 = vld [vmem:[%s7770_s23 + $0x3a4] ss:$16 sps:$4 sm:$0xff]  }
 0x7d1   : > { %4650 = vmatprep.mubr.bf16.mxu1 %v3847_v53  ;;  %4736 = vmatprep.mubr.bf16.mxu0 %v3847_v53  ;;  %v3775_v1 = vmax.f32 %v3746_v60, 0.0  ;;  %v7020_v53 = vld [vmem:[%s7770_s23 + $0x38c] ss:$16 sps:$4 sm:$0xff]   ;;  %v7029_v60 = vld [vmem:[%s7770_s23 + $0x3c4] ss:$16 sps:$4 sm:$0xff]  }
 0x7d2   : > { %4651 = vmatmul.mubr.bf16.vlgmr.msra.gmra.mrb[20].mxu1 %v3846_v52  ;;  %4737 = vmatmul.mubr.bf16.vlgmr.msra.gmra.mrb[20].mxu0 %v3846_v52  ;;  %v7017_v52 = vld [vmem:[%s7770_s23 + $0x384] ss:$16 sps:$4 sm:$0xff]   ;;  %v7026_v57 = vld [vmem:[%s7770_s23 + $0x3ac] ss:$16 sps:$4 sm:$0xff]  }
 0x7d3   : > { %4662 = vmatpush1.bf16.msra.mxu1 %v6943_v54  ;;  %4748 = vmatpush1.bf16.msra.mxu0 %v6946_v55  ;;  %v3750_v2 = vpop.f32.mrb[18].mxu1  ;;  %v3588_v3 = vpop.f32.mrb[18].mxu0  ;;  %v7015_v54 = vld [vmem:[%s7770_s23 + $0x380] ss:$16 sps:$4 sm:$0xff]   ;;  %v7018_v55 = vld [vmem:[%s7770_s23 + $0x388] ss:$16 sps:$4 sm:$0xff]  }
 0x7d4   : > { %4663 = vmatprep.subr.bf16.mxu1 %v6951_v58  ;;  %4749 = vmatprep.subr.bf16.mxu0 %v6954_v59  ;;  %v3778_v45 = vmax.f32 %v3750_v2, 0.0  ;;  %v3752_v4 = vpop.f32.mrb[19].mxu1  ;;  %v3590_v5 = vpop.f32.mrb[19].mxu0  ;;  %v7021_v58 = vld [vmem:[%s7770_s23 + $0x3a0] ss:$16 sps:$4 sm:$0xff]  }
 0x7d5   : > { %v3779_v7 = vmax.f32 %v3752_v4, 0.0  ;;  %v7024_v59 = vld [vmem:[%s7770_s23 + $0x3a8] ss:$16 sps:$4 sm:$0xff]   ;;  %v7032_v61 = vld [vmem:[%s7770_s23 + $0x3cc] ss:$16 sps:$4 sm:$0xff]  }
 0x7d6   : > { %v8297_v8 = vpack.c.bf16 %v3778_v45, %v3774_v20  ;;  %v7035_v20 = vld [vmem:[%s7770_s23 + $0x3e4] ss:$16 sps:$4 sm:$0xff]   ;;  %v7036_v2 = vld [vmem:[%s7770_s23 + $0x3e8] ss:$16 sps:$4 sm:$0xff]   ;;  %v7039_v45 = vld [vmem:[%s7768_s28] ss:$16 sps:$4 sm:$0xff]  }
 0x7d7   : > { %4664 = vmatpush1.bf16.msra.mxu1 %v6949_v62  ;;  %4750 = vmatpush1.bf16.msra.mxu0 %v6952_v63  ;;  %v3849_v12 = vpack.c.bf16 %v3779_v7, %v3775_v1  ;;  %v7027_v62 = vld [vmem:[%s7770_s23 + $0x3c0] ss:$16 sps:$4 sm:$0xff]   ;;  %v7030_v63 = vld [vmem:[%s7770_s23 + $0x3c8] ss:$16 sps:$4 sm:$0xff]   ;;  %v7041_v3 = vld [vmem:[%s7768_s28 + $0x4] ss:$16 sps:$4 sm:$0xff]  }
 0x7d8   : > { %4665 = vmatprep.subr.bf16.mxu1 %v6957_v0  ;;  %4751 = vmatprep.subr.bf16.mxu0 %v6960_v48  ;;  %v7038_v0 = vld [vmem:[%s7770_s23 + $0x3ec] ss:$16 sps:$4 sm:$0xff]   ;;  %v7033_v1 = vld [vmem:[%s7770_s23 + $0x3e0] ss:$16 sps:$4 sm:$0xff]   ;;  %v7042_v4 = vld [vmem:[%s7768_s28 + $0x8] ss:$16 sps:$4 sm:$0xff]  }
 0x7d9   : > { %4693 = vmatprep.mubr.bf16.mxu1 %v3849_v12  ;;  %4779 = vmatprep.mubr.bf16.mxu0 %v3849_v12  ;;  %v7044_v48 = vld [vmem:[%s7768_s28 + $0xc] ss:$16 sps:$4 sm:$0xff]   ;;  %v7047_v5 = vld [vmem:[%s7768_s28 + $0x24] ss:$16 sps:$4 sm:$0xff]  }
 0x7da   : > { %v7050_v7 = vld [vmem:[%s7768_s28 + $0x2c] ss:$16 sps:$4 sm:$0xff]   ;;  %v7053_v12 = vld [vmem:[%s7768_s28 + $0x44] ss:$16 sps:$4 sm:$0xff]  }
 0x7db   : > { %4666 = vmatpush1.bf16.msra.mxu1 %v6955_v9  ;;  %4752 = vmatpush1.bf16.msra.mxu0 %v6958_v11  ;;  %v7045_v9 = vld [vmem:[%s7768_s28 + $0x20] ss:$16 sps:$4 sm:$0xff]   ;;  %v7048_v11 = vld [vmem:[%s7768_s28 + $0x28] ss:$16 sps:$4 sm:$0xff]  }
 0x7dc   : > { %4667 = vmatprep.subr.bf16.mxu1 %v6963_v13  ;;  %4753 = vmatprep.subr.bf16.mxu0 %v6966_v14  ;;  %v7056_v13 = vld [vmem:[%s7768_s28 + $0x4c] ss:$16 sps:$4 sm:$0xff]   ;;  %v7054_v14 = vld [vmem:[%s7768_s28 + $0x48] ss:$16 sps:$4 sm:$0xff]  }
 0x7df   : > { %4668 = vmatpush1.bf16.msra.mxu1 %v6961_v15  ;;  %4754 = vmatpush1.bf16.msra.mxu0 %v6964_v16  ;;  %v7059_v15 = vld [vmem:[%s7768_s28 + $0x64] ss:$16 sps:$4 sm:$0xff]   ;;  %v7062_v16 = vld [vmem:[%s7768_s28 + $0x6c] ss:$16 sps:$4 sm:$0xff]  }
 0x7e0   : > { %4669 = vmatprep.subr.bf16.mxu1 %v6969_v17  ;;  %4755 = vmatprep.subr.bf16.mxu0 %v6972_v18  ;;  %v7060_v17 = vld [vmem:[%s7768_s28 + $0x68] ss:$16 sps:$4 sm:$0xff]   ;;  %v7065_v18 = vld [vmem:[%s7768_s28 + $0x84] ss:$16 sps:$4 sm:$0xff]  }
 0x7e3   : > { %4670 = vmatpush1.bf16.msra.mxu1 %v6967_v19  ;;  %4756 = vmatpush1.bf16.msra.mxu0 %v6970_v21  ;;  %v7068_v19 = vld [vmem:[%s7768_s28 + $0x8c] ss:$16 sps:$4 sm:$0xff]   ;;  %v7063_v21 = vld [vmem:[%s7768_s28 + $0x80] ss:$16 sps:$4 sm:$0xff]  }
 0x7e4   : > { %4671 = vmatprep.subr.bf16.mxu1 %v6975_v22  ;;  %4757 = vmatprep.subr.bf16.mxu0 %v6978_v23  ;;  %v7066_v22 = vld [vmem:[%s7768_s28 + $0x88] ss:$16 sps:$4 sm:$0xff]   ;;  %v7071_v23 = vld [vmem:[%s7768_s28 + $0xa4] ss:$16 sps:$4 sm:$0xff]  }
 0x7e7   : > { %4672 = vmatpush1.bf16.msra.mxu1 %v6973_v24  ;;  %4758 = vmatpush1.bf16.msra.mxu0 %v6976_v26  ;;  %v7074_v24 = vld [vmem:[%s7768_s28 + $0xac] ss:$16 sps:$4 sm:$0xff]   ;;  %v7069_v26 = vld [vmem:[%s7768_s28 + $0xa0] ss:$16 sps:$4 sm:$0xff]  }
 0x7e8   : > { %4673 = vmatprep.subr.bf16.mxu1 %v6981_v27  ;;  %4759 = vmatprep.subr.bf16.mxu0 %v6984_v28  ;;  %v7072_v27 = vld [vmem:[%s7768_s28 + $0xa8] ss:$16 sps:$4 sm:$0xff]   ;;  %v7077_v28 = vld [vmem:[%s7768_s28 + $0xc4] ss:$16 sps:$4 sm:$0xff]  }
 0x7eb   : > { %4674 = vmatpush1.bf16.msra.mxu1 %v6979_v29  ;;  %4760 = vmatpush1.bf16.msra.mxu0 %v6982_v30  ;;  %v7080_v29 = vld [vmem:[%s7768_s28 + $0xcc] ss:$16 sps:$4 sm:$0xff]   ;;  %v7075_v30 = vld [vmem:[%s7768_s28 + $0xc0] ss:$16 sps:$4 sm:$0xff]  }
 0x7ec   : > { %4675 = vmatprep.subr.bf16.mxu1 %v6987_v31  ;;  %4761 = vmatprep.subr.bf16.mxu0 %v6990_v32  ;;  %v7078_v31 = vld [vmem:[%s7768_s28 + $0xc8] ss:$16 sps:$4 sm:$0xff]   ;;  %v7083_v32 = vld [vmem:[%s7768_s28 + $0xe4] ss:$16 sps:$4 sm:$0xff]  }
 0x7ef   : > { %4676 = vmatpush1.bf16.msra.mxu1 %v6985_v33  ;;  %4762 = vmatpush1.bf16.msra.mxu0 %v6988_v10  ;;  %v7086_v33 = vld [vmem:[%s7768_s28 + $0xec] ss:$16 sps:$4 sm:$0xff]   ;;  %v7081_v10 = vld [vmem:[%s7768_s28 + $0xe0] ss:$16 sps:$4 sm:$0xff]  }
 0x7f0   : > { %4677 = vmatprep.subr.bf16.mxu1 %v6993_v34  ;;  %4763 = vmatprep.subr.bf16.mxu0 %v6996_v35  ;;  %v7084_v34 = vld [vmem:[%s7768_s28 + $0xe8] ss:$16 sps:$4 sm:$0xff]   ;;  %v7089_v35 = vld [vmem:[%s7768_s28 + $0x104] ss:$16 sps:$4 sm:$0xff]  }
 0x7f3   : > { %4678 = vmatpush1.bf16.msra.mxu1 %v6991_v36  ;;  %4764 = vmatpush1.bf16.msra.mxu0 %v6994_v37  ;;  %v7092_v36 = vld [vmem:[%s7768_s28 + $0x10c] ss:$16 sps:$4 sm:$0xff]   ;;  %v7087_v37 = vld [vmem:[%s7768_s28 + $0x100] ss:$16 sps:$4 sm:$0xff]  }
 0x7f4   : > { %4679 = vmatprep.subr.bf16.mxu1 %v6999_v38  ;;  %4765 = vmatprep.subr.bf16.mxu0 %v7002_v39  ;;  %v7090_v38 = vld [vmem:[%s7768_s28 + $0x108] ss:$16 sps:$4 sm:$0xff]   ;;  %v7095_v39 = vld [vmem:[%s7768_s28 + $0x124] ss:$16 sps:$4 sm:$0xff]  }
 0x7f7   : > { %4680 = vmatpush1.bf16.msra.mxu1 %v6997_v40  ;;  %4766 = vmatpush1.bf16.msra.mxu0 %v7000_v41  ;;  %v7098_v40 = vld [vmem:[%s7768_s28 + $0x12c] ss:$16 sps:$4 sm:$0xff]   ;;  %v7093_v41 = vld [vmem:[%s7768_s28 + $0x120] ss:$16 sps:$4 sm:$0xff]  }
 0x7f8   : > { %4681 = vmatprep.subr.bf16.mxu1 %v7005_v42  ;;  %4767 = vmatprep.subr.bf16.mxu0 %v7008_v43  ;;  %v7096_v42 = vld [vmem:[%s7768_s28 + $0x128] ss:$16 sps:$4 sm:$0xff]   ;;  %v7101_v43 = vld [vmem:[%s7768_s28 + $0x144] ss:$16 sps:$4 sm:$0xff]  }
 0x7fb   : > { %4682 = vmatpush1.bf16.msra.mxu1 %v7003_v44  ;;  %4768 = vmatpush1.bf16.msra.mxu0 %v7006_v46  ;;  %v7104_v44 = vld [vmem:[%s7768_s28 + $0x14c] ss:$16 sps:$4 sm:$0xff]   ;;  %v7099_v46 = vld [vmem:[%s7768_s28 + $0x140] ss:$16 sps:$4 sm:$0xff]  }
 0x7fc   : > { %4683 = vmatprep.subr.bf16.mxu1 %v7011_v47  ;;  %4769 = vmatprep.subr.bf16.mxu0 %v7014_v49  ;;  %v7102_v47 = vld [vmem:[%s7768_s28 + $0x148] ss:$16 sps:$4 sm:$0xff]   ;;  %v7107_v49 = vld [vmem:[%s7768_s28 + $0x164] ss:$16 sps:$4 sm:$0xff]  }
 0x7ff   : > { %4684 = vmatpush1.bf16.msra.mxu1 %v7009_v50  ;;  %4770 = vmatpush1.bf16.msra.mxu0 %v7012_v51  ;;  %v7110_v50 = vld [vmem:[%s7768_s28 + $0x16c] ss:$16 sps:$4 sm:$0xff]   ;;  %v7105_v51 = vld [vmem:[%s7768_s28 + $0x160] ss:$16 sps:$4 sm:$0xff]  }
 0x800   : > { %4685 = vmatprep.subr.bf16.mxu1 %v7017_v52  ;;  %4771 = vmatprep.subr.bf16.mxu0 %v7020_v53  ;;  %v7108_v52 = vld [vmem:[%s7768_s28 + $0x168] ss:$16 sps:$4 sm:$0xff]   ;;  %v7113_v53 = vld [vmem:[%s7768_s28 + $0x184] ss:$16 sps:$4 sm:$0xff]  }
 0x803   : > { %4686 = vmatpush1.bf16.msra.mxu1 %v7015_v54  ;;  %4772 = vmatpush1.bf16.msra.mxu0 %v7018_v55  ;;  %v7116_v54 = vld [vmem:[%s7768_s28 + $0x18c] ss:$16 sps:$4 sm:$0xff]   ;;  %v7111_v55 = vld [vmem:[%s7768_s28 + $0x180] ss:$16 sps:$4 sm:$0xff]  }
 0x804   : > { %4687 = vmatprep.subr.bf16.mxu1 %v7023_v56  ;;  %4773 = vmatprep.subr.bf16.mxu0 %v7026_v57  ;;  %v7114_v56 = vld [vmem:[%s7768_s28 + $0x188] ss:$16 sps:$4 sm:$0xff]   ;;  %v7119_v57 = vld [vmem:[%s7768_s28 + $0x1a4] ss:$16 sps:$4 sm:$0xff]  }
 0x807   : > { %4688 = vmatpush1.bf16.msra.mxu1 %v7021_v58  ;;  %4774 = vmatpush1.bf16.msra.mxu0 %v7024_v59  ;;  %v7122_v58 = vld [vmem:[%s7768_s28 + $0x1ac] ss:$16 sps:$4 sm:$0xff]   ;;  %v7117_v59 = vld [vmem:[%s7768_s28 + $0x1a0] ss:$16 sps:$4 sm:$0xff]  }
 0x808   : > { %4689 = vmatprep.subr.bf16.mxu1 %v7029_v60  ;;  %4775 = vmatprep.subr.bf16.mxu0 %v7032_v61  ;;  %v7120_v60 = vld [vmem:[%s7768_s28 + $0x1a8] ss:$16 sps:$4 sm:$0xff]   ;;  %v7125_v61 = vld [vmem:[%s7768_s28 + $0x1c4] ss:$16 sps:$4 sm:$0xff]  }
 0x80b   : > { %4690 = vmatpush1.bf16.msra.mxu1 %v7027_v62  ;;  %4776 = vmatpush1.bf16.msra.mxu0 %v7030_v63  ;;  %v7128_v62 = vld [vmem:[%s7768_s28 + $0x1cc] ss:$16 sps:$4 sm:$0xff]   ;;  %v7123_v63 = vld [vmem:[%s7768_s28 + $0x1c0] ss:$16 sps:$4 sm:$0xff]  }
 0x80c   : > { %4691 = vmatprep.subr.bf16.mxu1 %v7035_v20  ;;  %4777 = vmatprep.subr.bf16.mxu0 %v7038_v0  ;;  %v7126_v20 = vld [vmem:[%s7768_s28 + $0x1c8] ss:$16 sps:$4 sm:$0xff]   ;;  %v7131_v0 = vld [vmem:[%s7768_s28 + $0x1e4] ss:$16 sps:$4 sm:$0xff]  }
 0x80f   : > { %4692 = vmatpush1.bf16.msra.mxu1 %v7033_v1  ;;  %4778 = vmatpush1.bf16.msra.mxu0 %v7036_v2  ;;  %v7134_v1 = vld [vmem:[%s7768_s28 + $0x1ec] ss:$16 sps:$4 sm:$0xff]   ;;  %v7129_v2 = vld [vmem:[%s7768_s28 + $0x1e0] ss:$16 sps:$4 sm:$0xff]  }
 0x810   : > { %5110 = vmatprep.subr.bf16.mxu1 %v7041_v3  ;;  %5153 = vmatprep.subr.bf16.mxu0 %v7044_v48  ;;  %v7132_v3 = vld [vmem:[%s7768_s28 + $0x1e8] ss:$16 sps:$4 sm:$0xff]  }
 0x812   : > { %4694 = vmatmul.mubr.bf16.vlgmr.msra.gmra.mrb[20].mxu1 %v8297_v8  ;;  %4780 = vmatmul.mubr.bf16.vlgmr.msra.gmra.mrb[20].mxu0 %v8297_v8  ;;  %v7051_v8 = vld [vmem:[%s7768_s28 + $0x40] ss:$16 sps:$4 sm:$0xff]  }
 0x813   : > { %5111 = vmatpush1.bf16.msra.mxu1 %v7039_v45  ;;  %5142 = vmatprep.mubr.bf16.mxu1 %v8201_v25 }
 0x814   : > { %5154 = vmatpush1.bf16.msra.mxu0 %v7042_v4  ;;  %5185 = vmatprep.mubr.bf16.mxu0 %v8201_v25  ;;  %v7057_v25 = vld [vmem:[%s7768_s28 + $0x60] ss:$16 sps:$4 sm:$0xff]  }
 0x815   : > { %5112 = vmatprep.subr.bf16.mxu1 %v7047_v5  ;;  %5155 = vmatprep.subr.bf16.mxu0 %v7050_v7 }
 0x817   : > { %5113 = vmatpush1.bf16.msra.mxu1 %v7045_v9 }
 0x818   : > { %5156 = vmatpush1.bf16.msra.mxu0 %v7048_v11  ;;  %5114 = vmatprep.subr.bf16.mxu1 %v7053_v12 }
 0x819   : > { %5157 = vmatprep.subr.bf16.mxu0 %v7056_v13 }
 0x81b   : > { %5115 = vmatpush1.bf16.msra.mxu1 %v7051_v8 }
 0x81c   : > { %5158 = vmatpush1.bf16.msra.mxu0 %v7054_v14  ;;  %5116 = vmatprep.subr.bf16.mxu1 %v7059_v15 }
 0x81d   : > { %5159 = vmatprep.subr.bf16.mxu0 %v7062_v16 }
 0x81f   : > { %5117 = vmatpush1.bf16.msra.mxu1 %v7057_v25 }
 0x820   : > { %5160 = vmatpush1.bf16.msra.mxu0 %v7060_v17  ;;  %5118 = vmatprep.subr.bf16.mxu1 %v7065_v18 }
 0x821   : > { %5161 = vmatprep.subr.bf16.mxu0 %v7068_v19 }
 0x823   : > { %5119 = vmatpush1.bf16.msra.mxu1 %v7063_v21 }
 0x824   : > { %5162 = vmatpush1.bf16.msra.mxu0 %v7066_v22  ;;  %5120 = vmatprep.subr.bf16.mxu1 %v7071_v23 }
 0x825   : > { %5163 = vmatprep.subr.bf16.mxu0 %v7074_v24 }
 0x827   : > { %5121 = vmatpush1.bf16.msra.mxu1 %v7069_v26 }
 0x828   : > { %5164 = vmatpush1.bf16.msra.mxu0 %v7072_v27  ;;  %5122 = vmatprep.subr.bf16.mxu1 %v7077_v28 }
 0x829   : > { %5165 = vmatprep.subr.bf16.mxu0 %v7080_v29 }
 0x82b   : > { %5123 = vmatpush1.bf16.msra.mxu1 %v7075_v30 }
 0x82c   : > { %5166 = vmatpush1.bf16.msra.mxu0 %v7078_v31  ;;  %5124 = vmatprep.subr.bf16.mxu1 %v7083_v32 }
 0x82d   : > { %5167 = vmatprep.subr.bf16.mxu0 %v7086_v33 }
 0x82f   : > { %5125 = vmatpush1.bf16.msra.mxu1 %v7081_v10 }
 0x830   : > { %5168 = vmatpush1.bf16.msra.mxu0 %v7084_v34  ;;  %5126 = vmatprep.subr.bf16.mxu1 %v7089_v35 }
 0x831   : > { %5169 = vmatprep.subr.bf16.mxu0 %v7092_v36 }
 0x833   : > { %5127 = vmatpush1.bf16.msra.mxu1 %v7087_v37 }
 0x834   : > { %5170 = vmatpush1.bf16.msra.mxu0 %v7090_v38  ;;  %5128 = vmatprep.subr.bf16.mxu1 %v7095_v39 }
 0x835   : > { %5171 = vmatprep.subr.bf16.mxu0 %v7098_v40 }
 0x837   : > { %5129 = vmatpush1.bf16.msra.mxu1 %v7093_v41 }
 0x838   : > { %5172 = vmatpush1.bf16.msra.mxu0 %v7096_v42  ;;  %5130 = vmatprep.subr.bf16.mxu1 %v7101_v43 }
 0x839   : > { %5173 = vmatprep.subr.bf16.mxu0 %v7104_v44 }
 0x83b   : > { %5131 = vmatpush1.bf16.msra.mxu1 %v7099_v46 }
 0x83c   : > { %5174 = vmatpush1.bf16.msra.mxu0 %v7102_v47  ;;  %5132 = vmatprep.subr.bf16.mxu1 %v7107_v49 }
 0x83d   : > { %5175 = vmatprep.subr.bf16.mxu0 %v7110_v50 }
 0x83f   : > { %5133 = vmatpush1.bf16.msra.mxu1 %v7105_v51 }
 0x840   : > { %5176 = vmatpush1.bf16.msra.mxu0 %v7108_v52  ;;  %5134 = vmatprep.subr.bf16.mxu1 %v7113_v53 }
 0x841   : > { %5177 = vmatprep.subr.bf16.mxu0 %v7116_v54 }
 0x843   : > { %5135 = vmatpush1.bf16.msra.mxu1 %v7111_v55 }
 0x844   : > { %5178 = vmatpush1.bf16.msra.mxu0 %v7114_v56  ;;  %5136 = vmatprep.subr.bf16.mxu1 %v7119_v57 }
 0x845   : > { %5179 = vmatprep.subr.bf16.mxu0 %v7122_v58 }
 0x847   : > { %5137 = vmatpush1.bf16.msra.mxu1 %v7117_v59 }
 0x848   : > { %5180 = vmatpush1.bf16.msra.mxu0 %v7120_v60  ;;  %5138 = vmatprep.subr.bf16.mxu1 %v7125_v61 }
 0x849   : > { %5181 = vmatprep.subr.bf16.mxu0 %v7128_v62 }
 0x84b   : > { %5139 = vmatpush1.bf16.msra.mxu1 %v7123_v63 }
 0x84c   : > { %5182 = vmatpush1.bf16.msra.mxu0 %v7126_v20  ;;  %5140 = vmatprep.subr.bf16.mxu1 %v7131_v0 }
 0x84d   : > { %5183 = vmatprep.subr.bf16.mxu0 %v7134_v1 }
 0x84f   : > { %5141 = vmatpush1.bf16.msra.mxu1 %v7129_v2 }
 0x850   : > { %5184 = vmatpush1.bf16.msra.mxu0 %v7132_v3 }
 0x852   : > { %5143 = vmatmul.mubr.bf16.vlgmr.msra.gmra.mrb[20].mxu1 %v8199_v6 }
 0x853   : > { %5186 = vmatmul.mubr.bf16.vlgmr.msra.gmra.mrb[20].mxu0 %v8199_v6 }
 0x925   : > { %v5144_v48 = vpop.f32.mrb[20].mxu1 }
 0x926   : > { %v5187_v45 = vpop.f32.mrb[20].mxu0  ;;  %v5146_v4 = vpop.f32.mrb[21].mxu1 }
 0x927   : > { %v5189_v5 = vpop.f32.mrb[21].mxu0  ;;  %v5148_v7 = vpop.f32.mrb[22].mxu1 }
 0x928   : > { %v5196_v9 = vadd.f32 %v5148_v7, %v5144_v48  ;;  %v5191_v11 = vpop.f32.mrb[22].mxu0  ;;  %v5150_v12 = vpop.f32.mrb[23].mxu1 }
 0x929   : > { %v5210_v13 = vadd.f32 %v5191_v11, %v5187_v45  ;;  %v5203_v8 = vadd.f32 %v5150_v12, %v5146_v4  ;;  %v5193_v14 = vpop.f32.mrb[23].mxu0 }
 0x92a   : > { %v5197_v15 = vrot.slane %v5196_v9, 4  ;;  %v5217_v16 = vadd.f32 %v5193_v14, %v5189_v5 }
 0x92b   : > { %v5211_v25 = vrot.slane %v5210_v13, 4  ;;  %v5204_v17 = vrot.slane %v5203_v8, 4 }
 0x92c   : > { %v5198_v18 = vadd.f32 %v5197_v15, %v5196_v9  ;;  %v5218_v19 = vrot.slane %v5217_v16, 4 }
 0x92d   : > { %v5212_v21 = vadd.f32 %v5211_v25, %v5210_v13  ;;  %v5205_v22 = vadd.f32 %v5204_v17, %v5203_v8 }
 0x92e   : > { %v5199_v6 = vrot.slane %v5198_v18, 2  ;;  %v5219_v23 = vadd.f32 %v5218_v19, %v5217_v16 }
 0x92f   : > { %v5213_v24 = vrot.slane %v5212_v21, 2  ;;  %v5206_v26 = vrot.slane %v5205_v22, 2 }
 0x930   : > { %v5200_v27 = vadd.f32 %v5199_v6, %v5198_v18  ;;  %v5220_v28 = vrot.slane %v5219_v23, 2 }
 0x931   : > { %v5214_v29 = vadd.f32 %v5213_v24, %v5212_v21  ;;  %v5207_v30 = vadd.f32 %v5206_v26, %v5205_v22 }
 0x932   : > { %v5201_v31 = vrot.slane %v5200_v27, 1  ;;  %v5221_v32 = vadd.f32 %v5220_v28, %v5219_v23 }
 0x933   : > { %v5215_v33 = vrot.slane %v5214_v29, 1  ;;  %v5208_v10 = vrot.slane %v5207_v30, 1 }
 0x934   : > { %v5202_v34 = vadd.f32 %v5201_v31, %v5200_v27  ;;  %v5222_v35 = vrot.slane %v5221_v32, 1 }
 0x935   : > { %v5216_v36 = vadd.f32 %v5215_v33, %v5214_v29  ;;  %v5209_v37 = vadd.f32 %v5208_v10, %v5207_v30 }
 0x936   : > { %v5224_v38 = vmul.f32 0.0625, %v5202_v34  ;;  %v5223_v39 = vadd.f32 %v5222_v35, %v5221_v32 }
 0x937   : > { %v5226_v40 = vmul.f32 0.0625, %v5216_v36  ;;  %v5225_v41 = vmul.f32 0.0625, %v5209_v37 }
 0x938   : > { %v5228_v42 = vsub.f32 %v5144_v48, %v5224_v38  ;;  %v5232_v43 = vsub.f32 %v5148_v7, %v5224_v38  ;;  %v5227_v44 = vmul.f32 0.0625, %v5223_v39  ;;  %v7147_v39 = vld [vmem:[#allocation2] sm:$0xff] }
 0x939   : > { %v5230_v46 = vsub.f32 %v5187_v45, %v5226_v40  ;;  %v5234_v47 = vsub.f32 %v5191_v11, %v5226_v40  ;;  %v8423_v49 = vsub.f32 %v5146_v4, %v5225_v41  ;;  %v8425_v50 = vsub.f32 %v5150_v12, %v5225_v41  ;;  %v7148_v41 = vld [vmem:[#allocation2 + $0x20] sm:$0xff] }
 0x93a   : > { %v5236_v51 = vmul.f32 %v5228_v42, %v5228_v42  ;;  %v5240_v52 = vmul.f32 %v5232_v43, %v5232_v43  ;;  %v8427_v53 = vsub.f32 %v5189_v5, %v5227_v44  ;;  %v8429_v54 = vsub.f32 %v5193_v14, %v5227_v44 }
 0x93b   : > { %v5238_v55 = vmul.f32 %v5230_v46, %v5230_v46  ;;  %v5242_v56 = vmul.f32 %v5234_v47, %v5234_v47  ;;  %v5237_v57 = vmul.f32 %v8423_v49, %v8423_v49  ;;  %v5241_v58 = vmul.f32 %v8425_v50, %v8425_v50 }
 0x93c   : > { %v5244_v59 = vadd.f32 %v5240_v52, %v5236_v51  ;;  %v5239_v60 = vmul.f32 %v8427_v53, %v8427_v53  ;;  %v5243_v61 = vmul.f32 %v8429_v54, %v8429_v54 }
 0x93d   : > { %v5258_v62 = vadd.f32 %v5242_v56, %v5238_v55  ;;  %v5251_v63 = vadd.f32 %v5241_v58, %v5237_v57  ;;  %v7149_v55 = vld [vmem:[#allocation2 + $0x10] sm:$0xff] }
 0x93e   : > { %v5245_v20 = vrot.slane %v5244_v59, 4  ;;  %v5265_v0 = vadd.f32 %v5243_v61, %v5239_v60  ;;  %v7150_v57 = vld [vmem:[#allocation2 + $0x30] sm:$0xff]  ;;  %v7152_v61 = vld [vmem:[#allocation2 + $0x28] sm:$0xff] }
 0x93f   : > { %v5259_v1 = vrot.slane %v5258_v62, 4  ;;  %v5252_v2 = vrot.slane %v5251_v63, 4 }
 0x940   : > { %v5246_v3 = vadd.f32 %v5245_v20, %v5244_v59  ;;  %v5266_v48 = vrot.slane %v5265_v0, 4 }
 0x941   : > { %v5260_v45 = vadd.f32 %v5259_v1, %v5258_v62  ;;  %v5253_v4 = vadd.f32 %v5252_v2, %v5251_v63  ;;  %v7154_v1 = vld [vmem:[#allocation2 + $0x38] sm:$0xff] }
 0x942   : > { %v5247_v5 = vrot.slane %v5246_v3, 2  ;;  %v5267_v7 = vadd.f32 %v5266_v48, %v5265_v0  ;;  %v7153_v0 = vld [vmem:[#allocation2 + $0x18] sm:$0xff] }
 0x943   : > { %v5261_v9 = vrot.slane %v5260_v45, 2  ;;  %v5254_v11 = vrot.slane %v5253_v4, 2 }
 0x944   : > { %v5248_v12 = vadd.f32 %v5247_v5, %v5246_v3  ;;  %v5268_v13 = vrot.slane %v5267_v7, 2 }
 0x945   : > { %v5262_v8 = vadd.f32 %v5261_v9, %v5260_v45  ;;  %v5255_v14 = vadd.f32 %v5254_v11, %v5253_v4 }
 0x946   : > { %v5249_v15 = vrot.slane %v5248_v12, 1  ;;  %v5269_v16 = vadd.f32 %v5268_v13, %v5267_v7 }
 0x947   : > { %v5263_v25 = vrot.slane %v5262_v8, 1  ;;  %v5256_v17 = vrot.slane %v5255_v14, 1 }
 0x948   : > { %v5250_v18 = vadd.f32 %v5249_v15, %v5248_v12  ;;  %v5270_v19 = vrot.slane %v5269_v16, 1 }
 0x949   : > { %v5264_v21 = vadd.f32 %v5263_v25, %v5262_v8  ;;  %v5257_v22 = vadd.f32 %v5256_v17, %v5255_v14 }
 0x94a   : > { %v5272_v6 = vmul.f32 0.0625, %v5250_v18  ;;  %v5271_v23 = vadd.f32 %v5270_v19, %v5269_v16 }
 0x94b   : > { %v5274_v24 = vmul.f32 0.0625, %v5264_v21  ;;  %v5273_v26 = vmul.f32 0.0625, %v5257_v22 }
 0x94c   : > { %v5276_v27 = vadd.f32 1e-05, %v5272_v6  ;;  %v5275_v28 = vmul.f32 0.0625, %v5271_v23 }
 0x94d   : > { %v5278_v29 = vadd.f32 1e-05, %v5274_v24  ;;  %v5277_v30 = vadd.f32 1e-05, %v5273_v26 }
 0x94e   : > { %7139 = vrsqrt.f32 %v5276_v27  ;;  %v5279_v31 = vadd.f32 1e-05, %v5275_v28 }
 0x94f   : > { %7141 = vrsqrt.f32 %v5278_v29 }
 0x950   : > { %7143 = vrsqrt.f32 %v5277_v30 }
 0x951   : > { %7145 = vrsqrt.f32 %v5279_v31 }
 0x958   : > { %v7140_v32 = vpop.eup %7139 }
 0x959   : > { %v7142_v33 = vpop.eup %7141  ;;  %v5284_v10 = vmul.f32 %v7140_v32, %v5228_v42  ;;  %v5288_v34 = vmul.f32 %v7140_v32, %v5232_v43 }
 0x95a   : > { %v7144_v35 = vpop.eup %7143  ;;  %v5286_v36 = vmul.f32 %v7142_v33, %v5230_v46  ;;  %v5290_v37 = vmul.f32 %v7142_v33, %v5234_v47  ;;  %v7151_v47 = vld [vmem:[#allocation2 + $0x8] sm:$0xff] }
 0x95b   : > { %v7146_v38 = vpop.eup %7145  ;;  %v5292_v40 = vadd.f32 %v7147_v39, %v5284_v10  ;;  %v5296_v44 = vadd.f32 %v7148_v41, %v5288_v34  ;;  %v5285_v51 = vmul.f32 %v7144_v35, %v8423_v49  ;;  %v5289_v52 = vmul.f32 %v7144_v35, %v8425_v50 }
 0x95c   : > { %v5294_v56 = vadd.f32 %v7149_v55, %v5286_v36  ;;  %v5298_v58 = vadd.f32 %v7150_v57, %v5290_v37  ;;  %v5287_v59 = vmul.f32 %v7146_v38, %v8427_v53  ;;  %v5291_v42 = vmul.f32 %v7146_v38, %v8429_v54  ;;  %5319 = sbr.rel (%p6180_p5) target bundleno = 2407 (0x967), region = 88 }
 0x95d   : > { %v5300_v43 = vmax.f32 %v5292_v40, 0.0  ;;  %v5304_v46 = vmax.f32 %v5296_v44, 0.0  ;;  %v5293_v60 = vadd.f32 %v7151_v47, %v5285_v51  ;;  %v5297_v62 = vadd.f32 %v7152_v61, %v5289_v52 }
 0x95e   : > { %v5302_v63 = vmax.f32 %v5294_v56, 0.0  ;;  %v5306_v20 = vmax.f32 %v5298_v58, 0.0  ;;  %v5295_v49 = vadd.f32 %v7153_v0, %v5287_v59  ;;  %v5299_v50 = vadd.f32 %v7154_v1, %v5291_v42 }
 0x95f   : > { %5308 = vst [vmem:[#allocation2] sm:$0xff] %v5300_v43  ;;  %5312 = vst [vmem:[#allocation2 + $0x20] sm:$0xff] %v5304_v46  ;;  %v5301_v2 = vmax.f32 %v5293_v60, 0.0  ;;  %v5305_v3 = vmax.f32 %v5297_v62, 0.0 }
 0x960   : > { %5310 = vst [vmem:[#allocation2 + $0x10] sm:$0xff] %v5302_v63  ;;  %5314 = vst [vmem:[#allocation2 + $0x30] sm:$0xff] %v5306_v20  ;;  %v5303_v53 = vmax.f32 %v5295_v49, 0.0  ;;  %v5307_v54 = vmax.f32 %v5299_v50, 0.0 }
 0x961   : > { %5309 = vst [vmem:[#allocation2 + $0x8] sm:$0xff] %v5301_v2  ;;  %5313 = vst [vmem:[#allocation2 + $0x28] sm:$0xff] %v5305_v3 }
 0x962   : > { %5311 = vst [vmem:[#allocation2 + $0x18] sm:$0xff] %v5303_v53  ;;  %5315 = vst [vmem:[#allocation2 + $0x38] sm:$0xff] %v5307_v54 }
 0x963   : > { %5320 = vst [vmem:[#allocation14] sm:$0xff] %v5300_v43  ;;  %5321 = vst [vmem:[#allocation14 + $0x8] sm:$0xff] %v5301_v2 }
 0x964   : > { %5322 = vst [vmem:[#allocation14 + $0x10] sm:$0xff] %v5302_v63  ;;  %5323 = vst [vmem:[#allocation14 + $0x18] sm:$0xff] %v5303_v53 }
 0x965   : > { %5324 = vst [vmem:[#allocation14 + $0x20] sm:$0xff] %v5304_v46  ;;  %5325 = vst [vmem:[#allocation14 + $0x28] sm:$0xff] %v5305_v3 }
 0x966   : > { %5326 = vst [vmem:[#allocation14 + $0x30] sm:$0xff] %v5306_v20  ;;  %5327 = vst [vmem:[#allocation14 + $0x38] sm:$0xff] %v5307_v54 }
 0x967 PF: > { %p6295_p7 = scmp.eq.s32.totalorder %s7612_s21, 2  ;;  %s7423_s28 = smov [#allocation14]  }
 0x968   : > { %s5334_s23 = sshll.u32 %s7423_s28, 4  ;;  %s5335_s23 = int_to_ptr.vmem [resolvable:$true] %s5334_s23 }
 0x969   : > { %s7333_s27 = scalar_lea.vmem %s5335_s23, 1024  ;;  %p7340_p6 = scmp.lt.s32.totalorder %s5335_s23, %s5335_s23 }
 0x96a   : > { %p7334_p2 = scmp.ne.s32.totalorder %s5335_s23, %s7333_s27  ;;  %p7341_p9 = scmp.lt.s32.totalorder %s7333_s27, %s7333_s27 }
 0x96c   : > { %p7335_p10 = pnand %p7334_p2, %p6295_p7  ;;  %p7342_p4 = por %p7341_p9, %p7340_p6 }
 0x96e   : > { %p7336_p13 = pneg %p7335_p10 }
 0x970   : > { %p7343_p11 = pnand %p7342_p4, %p7336_p13 }
 0x972   : > { %7346 = shalt.err (!%p7343_p11)
}
 0x973   : > { %s8536_s9 = sld [smem:[#allocation27_spill]] }
 0x979   : > { %s7347_s4 = scalar_lea.hbm %s8536_s9, 1024 }
 0x97a   : > { %p7348_p0 = scmp.ne.s32.totalorder %s8536_s9, %s7347_s4  ;;  %p7353_p8 = scmp.lt.u32.totalorder %s7347_s4, %s8536_s9 }
 0x97c   : > { %p7349_p3 = pnand %p7348_p0, %p6295_p7 }
 0x97e   : > { %p7350_p12 = pneg %p7349_p3 }
 0x980   : > { %p7355_p1 = pnand %p7353_p8, %p7350_p12 }
 0x982   : > { %7358 = shalt.err (!%p7355_p1)
}
 0x983   : > { %s7424_s13 = smov 512   ;;  %s7425_s24 = smov 32  }
 0x984   : > { %6269 = dma.vmem_to_hbm [thread:$0]  (%p6295_p7), %s5335_s23, 1024, %s8536_s9, [#allocation5], %s7424_s13, %s7424_s13, %s7425_s24  }
 0x985   : > { %7392 = dma.done.wait (%p6295_p7), [#allocation5], 1024  }
 0x986   : > { %7394 = vsyncadd (%p6295_p7), [#allocation5], 4294966272 }
 0x987 PF: > { %s8537_s12 = sld [smem:[#allocation21_spill]]  ;;  %s8538_s3 = sld [smem:[#allocation20_spill]] }
 0x988   : > { %s8539_s11 = sld [smem:[#allocation22_spill]]  ;;  %s8540_s30 = smov %s7401_s10 }
 0x98d   : > { %p27_p5 = scmp.ge.s32.totalorder %s8537_s12, 5   ;;  %s8541_s10 = smov %s8538_s3 }
 0x98f   :  { %29 = sbr.rel (!%p27_p5) target bundleno = 15 (0xf), region = 156 }
 0x996   :  { %5350 = vsyncpa [#allocation4], 1 }
 0x997   :  { %5352 = vsyncpa [#allocation4 + $0x1], 1 }
 0x998   :  { %5353 = vsyncpa [#allocation7], 1 }
 0x999   :  { %5355 = vsyncpa [#allocation7 + $0x1], 1 }
 0x99a   :  { %5356 = vsyncpa [#allocation10], 1 }
 0x99b   :  { %5358 = vsyncpa [#allocation10 + $0x1], 1 }
 0x99c   :  { %5359 = vsyncpa [#allocation13], 1 }
 0x99d   :  { %5361 = vsyncpa [#allocation13 + $0x1], 1 }
 0x99e   :  { %5362 = vsyncpa [#allocation5], 1 }
 0x99f   :  { %5364 = vsyncpa [#allocation5 + $0x1], 1 }

</bundles_post_ra>
